<compile_context>
chip_gen: v6e
topology: v6e:2x2x1
jax: 0.10.0
libtpu: 0.0.40
codegen_flags: <defaults>
</compile_context>

<pallas_src>
import functools
import math

import jax
import jax.numpy as jnp
from jax import lax
from jax.experimental import pallas as pl
from jax.experimental.pallas import tpu as pltpu

_LANE = 128


def _round_up(x, m):
    return ((x + m - 1) // m) * m


def _choose_row_tile(hout, wout, target_rows=512):
    """Pick TH (output rows per grid step) so TH*Wout is a multiple of 128 (lane-dense
    output blocks) and roughly `target_rows` matmul rows per step."""
    th_unit = _LANE // math.gcd(wout, _LANE)
    th = th_unit * max(1, target_rows // (th_unit * wout))
    th = min(th, _round_up(hout, th_unit))
    t = -(-hout // th)
    return th, t


def _group_kernel(x_ref, w1_ref, b1_ref, w2_ref, b2_ref, o_ref, y1p_ref, acc_ref, *,
                  Cp, Q, cout, H, W, Wout, TH, k, stride, padding):
    """Fused _Group forward for one (batch element, output-row tile) grid point.

    x_ref   : (1, Cin, H*W)        input image (resident across row tiles)
    w1_ref  : (2*Cp, Cin)  bf16    1x1-conv weight, out-channels padded to 2*Cp
    b1_ref  : (2*Cp, 1)    f32
    w2_ref  : (k*k*Cp, 2*Q) bf16   kxk-conv weight as matmul matrix, rows (ki,kj,c)
    b2_ref  : (1, 2*Q)     f32
    o_ref   : (1, cout, TH*Wout)   NCHW output tile (lane-dense spatial minor dim)
    y1p_ref : (Hp, Wp, Cp) f32     spatially padded layer-1 output (scratch, per image)
    acc_ref : (TH*Wout, 2*Q) f32   layer-2 accumulator (scratch)
    """
    t = pl.program_id(1)

    # ---- layer 1: 1x1 conv + MFM for the whole image, once per batch element ----
    @pl.when(t == 0)
    def _layer1():
        y1p_ref[...] = jnp.zeros_like(y1p_ref)          # zero border / padded rows
        x = x_ref[0].astype(jnp.bfloat16)               # (Cin, H*W)
        y = jnp.dot(w1_ref[...], x, preferred_element_type=jnp.float32)  # (2Cp, H*W)
        y = y + b1_ref[...]
        y1 = jnp.maximum(y[:Cp, :], y[Cp:, :])          # MFM 2/1 -> (Cp, H*W)
        y1 = jnp.transpose(y1).reshape(H, W, Cp)        # channels on lanes
        y1p_ref[pl.ds(padding, H), pl.ds(padding, W), :] = y1

    # ---- layer 2: kxk conv + MFM on output-row tile t (k*k shifted-window matmuls) ----
    acc_ref[...] = jnp.broadcast_to(b2_ref[...], (TH * Wout, 2 * Q))
    row0 = t * (TH * stride)
    for ki in range(k):
        for kj in range(k):
            if stride == 1:
                win = y1p_ref[pl.ds(row0 + ki, TH), pl.ds(kj, Wout), :]
            else:
                band = y1p_ref[pl.ds(row0 + ki, (TH - 1) * stride + 1), :, :]
                win = lax.slice(
                    band, (0, kj, 0),
                    ((TH - 1) * stride + 1, kj + (Wout - 1) * stride + 1, Cp),
                    (stride, stride, 1))
            win = win.reshape(TH * Wout, Cp).astype(jnp.bfloat16)
            wtap = w2_ref[pl.ds((ki * k + kj) * Cp, Cp), :]
            acc_ref[...] += jnp.dot(win, wtap, preferred_element_type=jnp.float32)

    acc = acc_ref[...]
    mfm = jnp.maximum(acc[:, :Q], acc[:, Q:])           # MFM 2/1 -> (TH*Wout, Q)
    out_t = jnp.transpose(mfm)                          # (Q, TH*Wout): lane-dense store
    o_ref[0] = out_t[:cout, :].astype(o_ref.dtype)


def init_group_params(key, in_channels, out_channels, kernel_size):
    """Deterministic synthetic parameters, PyTorch Conv2d (OIHW) layout."""
    k1, k2, k3, k4 = jax.random.split(key, 4)
    w1 = jax.random.normal(k1, (2 * in_channels, in_channels, 1, 1), jnp.float32) * 0.1
    b1 = jax.random.normal(k2, (2 * in_channels,), jnp.float32) * 0.1
    w2 = jax.random.normal(
        k3, (2 * out_channels, in_channels, kernel_size, kernel_size), jnp.float32) * 0.1
    b2 = jax.random.normal(k4, (2 * out_channels,), jnp.float32) * 0.1
    return {"w1": w1, "b1": b1, "w2": w2, "b2": b2}


def _prepare_kernel_params(params, Cin, cout, k, Cp, Q):
    """Torch OIHW conv params -> zero-padded, bf16 matmul matrices for the kernel."""
    w1 = params["w1"][:, :, 0, 0]                       # (2*Cin, Cin)
    b1 = params["b1"]
    w2 = params["w2"]                                   # (2*cout, Cin, k, k)
    b2 = params["b2"]

    w1k = jnp.zeros((2 * Cp, Cin), jnp.float32)
    w1k = w1k.at[:Cin, :].set(w1[:Cin, :]).at[Cp:Cp + Cin, :].set(w1[Cin:, :])
    b1k = jnp.zeros((2 * Cp, 1), jnp.float32)
    b1k = b1k.at[:Cin, 0].set(b1[:Cin]).at[Cp:Cp + Cin, 0].set(b1[Cin:])

    w2t = jnp.transpose(w2, (2, 3, 1, 0))               # (k, k, Cin, 2*cout)
    w2t = jnp.pad(w2t, ((0, 0), (0, 0), (0, Cp - Cin), (0, 0)))
    w2t = w2t.reshape(k * k * Cp, 2 * cout)
    w2k = jnp.zeros((k * k * Cp, 2 * Q), jnp.float32)
    w2k = w2k.at[:, :cout].set(w2t[:, :cout]).at[:, Q:Q + cout].set(w2t[:, cout:])
    b2k = jnp.zeros((1, 2 * Q), jnp.float32)
    b2k = b2k.at[0, :cout].set(b2[:cout]).at[0, Q:Q + cout].set(b2[cout:])

    return w1k.astype(jnp.bfloat16), b1k, w2k.astype(jnp.bfloat16), b2k


@functools.partial(jax.jit, static_argnames=("kernel_size", "stride", "padding"))
def group_forward(x_nchw, params, *, kernel_size, stride, padding):
    """Forward pass of _Group.  x_nchw: (N, Cin, H, W) -> (N, Cout, Hout, Wout)."""
    N, Cin, H, W = x_nchw.shape
    k, s, p = kernel_size, stride, padding
    cout = params["w2"].shape[0] // 2
    Hout = (H + 2 * p - k) // s + 1
    Wout = (W + 2 * p - k) // s + 1
    Cp = _round_up(Cin, _LANE)           # padded layer-1 / contraction channels
    Q = _round_up(cout, _LANE)           # padded layer-2 output channels (accumulator)
    TH, T = _choose_row_tile(Hout, Wout)
    Hout_pad = TH * T
    Wp = W + 2 * p
    Hp = max(H + 2 * p, (Hout_pad - 1) * s + k)

    w1k, b1k, w2k, b2k = _prepare_kernel_params(params, Cin, cout, k, Cp, Q)
    x2 = x_nchw.reshape(N, Cin, H * W)   # free: NCHW is already (N, C, H*W)-contiguous

    kernel = functools.partial(
        _group_kernel, Cp=Cp, Q=Q, cout=cout, H=H, W=W, Wout=Wout, TH=TH,
        k=k, stride=s, padding=p)

    out = pl.pallas_call(
        kernel,
        out_shape=jax.ShapeDtypeStruct((N, cout, Hout_pad * Wout), jnp.float32),
        grid_spec=pltpu.PrefetchScalarGridSpec(
            num_scalar_prefetch=0,
            grid=(N, T),
            in_specs=[
                pl.BlockSpec((1, Cin, H * W), lambda n, t: (n, 0, 0)),   # image (resident over t)
                pl.BlockSpec((2 * Cp, Cin), lambda n, t: (0, 0)),        # w1 (pinned)
                pl.BlockSpec((2 * Cp, 1), lambda n, t: (0, 0)),          # b1 (pinned)
                pl.BlockSpec((k * k * Cp, 2 * Q), lambda n, t: (0, 0)),  # w2 (pinned)
                pl.BlockSpec((1, 2 * Q), lambda n, t: (0, 0)),           # b2 (pinned)
            ],
            out_specs=pl.BlockSpec((1, cout, TH * Wout), lambda n, t: (n, 0, t)),
            scratch_shapes=[
                pltpu.VMEM((Hp, Wp, Cp), jnp.float32),        # padded layer-1 output
                pltpu.VMEM((TH * Wout, 2 * Q), jnp.float32),  # layer-2 accumulator
            ],
        ),
        compiler_params=pltpu.CompilerParams(
            dimension_semantics=("parallel", "arbitrary"),
            vmem_limit_bytes=32 * 1024 * 1024,
        ),
    )(x2, w1k, b1k, w2k, b2k)

    out = out[:, :, : Hout * Wout].reshape(N, cout, Hout, Wout)
    return out


def _reference_forward(x_nchw, params, kernel_size, stride, padding):
    """Pure-JAX (lax.conv) reference with matching bf16-input / f32-accumulate math."""
    dn = ("NCHW", "OIHW", "NCHW")

    def conv_mfm(x, w, b, s_, p_):
        y = lax.conv_general_dilated(
            x.astype(jnp.bfloat16), w.astype(jnp.bfloat16),
            window_strides=(s_, s_), padding=((p_, p_), (p_, p_)),
            dimension_numbers=dn, preferred_element_type=jnp.float32)
        y = y + b.reshape(1, -1, 1, 1)
        half = w.shape[0] // 2
        return jnp.maximum(y[:, :half], y[:, half:])

    y1 = conv_mfm(x_nchw, params["w1"], params["b1"], 1, 0)
    return conv_mfm(y1, params["w2"], params["b2"], stride, padding)


if __name__ == "__main__":
    # _Group(in_channels=4, out_channels=8, kernel_size=3, stride=1, padding=1)
    N, Cin, H, W = 2, 4, 16, 16
    Cout, K, S, P = 8, 3, 1, 1

    key = jax.random.PRNGKey(0)
    kx, kp = jax.random.split(key)
    x = jax.random.normal(kx, (N, Cin, H, W), jnp.float32)
    params = init_group_params(kp, Cin, Cout, K)

    out = group_forward(x, params, kernel_size=K, stride=S, padding=P)
    out = jax.block_until_ready(out)
    assert out.shape == (N, Cout, H, W), out.shape

    ref = _reference_forward(x, params, K, S, P)
    err = float(jnp.max(jnp.abs(out - ref)))
    assert jnp.allclose(out, ref, atol=1e-2, rtol=5e-2), err

    print("KERNEL_OK")
</pallas_src>

<mosaic_0001>
module attributes {stable_mosaic.version = 11 : i64} {
  func.func @_group_kernel(%arg0: i32, %arg1: i32, %arg2: memref<1x4x256xf32, #tpu.memory_space<vmem>>, %arg3: memref<256x4xbf16, #tpu.memory_space<vmem>>, %arg4: memref<256x1xf32, #tpu.memory_space<vmem>>, %arg5: memref<1152x256xbf16, #tpu.memory_space<vmem>>, %arg6: memref<1x256xf32, #tpu.memory_space<vmem>>, %arg7: memref<1x8x256xf32, #tpu.memory_space<vmem>>, %arg8: memref<18x18x128xf32, #tpu.memory_space<vmem>>, %arg9: memref<256x256xf32, #tpu.memory_space<vmem>>) attributes {dimension_semantics = [#tpu.dimension_semantics<parallel>, #tpu.dimension_semantics<arbitrary>], iteration_bounds = array<i64: 2, 1>, scalar_prefetch = 0 : i64, scratch_operands = 2 : i64, tpu.core_type = #tpu.core_type<tc>, window_params = [{transform_indices = @transform_0, window_bounds = array<i64: 1, 4, 256>}, {pipeline_mode = #tpu.pipeline_mode<synchronous>, transform_indices = @transform_1, window_bounds = array<i64: 256, 4>}, {pipeline_mode = #tpu.pipeline_mode<synchronous>, transform_indices = @transform_2, window_bounds = array<i64: 256, 1>}, {pipeline_mode = #tpu.pipeline_mode<synchronous>, transform_indices = @transform_3, window_bounds = array<i64: 1152, 256>}, {pipeline_mode = #tpu.pipeline_mode<synchronous>, transform_indices = @transform_4, window_bounds = array<i64: 1, 256>}, {transform_indices = @transform_5, window_bounds = array<i64: 1, 8, 256>}]} {
    %c0_i32 = arith.constant 0 : i32
    %0 = arith.cmpi eq, %arg1, %c0_i32 : i32
    %1 = arith.extui %0 : i1 to i32
    %c0_i32_0 = arith.constant 0 : i32
    %2 = arith.cmpi ne, %1, %c0_i32_0 : i32
    scf.if %2 {
      %cst_86 = arith.constant 0.000000e+00 : f32
      %107 = vector.broadcast %cst_86 : f32 to vector<18x18x128xf32>
      %c0_87 = arith.constant 0 : index
      %c0_88 = arith.constant 0 : index
      %c0_89 = arith.constant 0 : index
      %108 = vector.load %arg8[%c0_87, %c0_88, %c0_89] : memref<18x18x128xf32, #tpu.memory_space<vmem>>, vector<18x18x128xf32>
      tpu.vector_store %arg8[%c0_87, %c0_88, %c0_89], %107 {strides = array<i32>} : memref<18x18x128xf32, #tpu.memory_space<vmem>>, vector<18x18x128xf32>,
      %c0_90 = arith.constant 0 : index
      %c0_91 = arith.constant 0 : index
      %c0_92 = arith.constant 0 : index
      %109 = vector.load %arg2[%c0_90, %c0_91, %c0_92] : memref<1x4x256xf32, #tpu.memory_space<vmem>>, vector<1x4x256xf32>
      %110 = vector.shape_cast %109 : vector<1x4x256xf32> to vector<4x256xf32>
      %111 = arith.truncf %110 : vector<4x256xf32> to vector<4x256xbf16>
      %c0_93 = arith.constant 0 : index
      %c0_94 = arith.constant 0 : index
      %112 = vector.load %arg3[%c0_93, %c0_94] : memref<256x4xbf16, #tpu.memory_space<vmem>>, vector<256x4xbf16>
      %cst_95 = arith.constant dense<0.000000e+00> : vector<256x256xf32>
      %113 = tpu.matmul %112, %111, %cst_95 {dimension_numbers = #tpu.dot_dimension_numbers<[1], [0], [0], [1], [0, 0, 1, 1], [], []>} : vector<256x4xbf16>, vector<4x256xbf16>, vector<256x256xf32> -> vector<256x256xf32>
      %c0_96 = arith.constant 0 : index
      %c0_97 = arith.constant 0 : index
      %114 = vector.load %arg4[%c0_96, %c0_97] : memref<256x1xf32, #tpu.memory_space<vmem>>, vector<256x1xf32>
      %115 = vector.broadcast %114 : vector<256x1xf32> to vector<256x256xf32>
      %116 = arith.addf %113, %115 : vector<256x256xf32>
      %117 = vector.extract_strided_slice %116 {offsets = [0, 0], sizes = [128, 256], strides = [1, 1]} : vector<256x256xf32> to vector<128x256xf32>
      %118 = vector.extract_strided_slice %116 {offsets = [128, 0], sizes = [128, 256], strides = [1, 1]} : vector<256x256xf32> to vector<128x256xf32>
      %119 = arith.maximumf %117, %118 : vector<128x256xf32>
      %120 = tpu.transpose %119, [1, 0] : vector<128x256xf32> -> vector<256x128xf32>
      %121 = vector.shape_cast %120 : vector<256x128xf32> to vector<16x16x128xf32>
      %c1_98 = arith.constant 1 : index
      %c1_99 = arith.constant 1 : index
      %c0_100 = arith.constant 0 : index
      %122 = vector.load %arg8[%c1_98, %c1_99, %c0_100] : memref<18x18x128xf32, #tpu.memory_space<vmem>>, vector<16x16x128xf32>
      tpu.vector_store %arg8[%c1_98, %c1_99, %c0_100], %121 {strides = array<i32>} : memref<18x18x128xf32, #tpu.memory_space<vmem>>, vector<16x16x128xf32>,
    } else {
    }
    %c0 = arith.constant 0 : index
    %c0_1 = arith.constant 0 : index
    %3 = vector.load %arg6[%c0, %c0_1] : memref<1x256xf32, #tpu.memory_space<vmem>>, vector<1x256xf32>
    %4 = vector.shape_cast %3 : vector<1x256xf32> to vector<1x256xf32>
    %5 = vector.broadcast %4 : vector<1x256xf32> to vector<256x256xf32>
    %c0_2 = arith.constant 0 : index
    %c0_3 = arith.constant 0 : index
    %6 = vector.load %arg9[%c0_2, %c0_3] : memref<256x256xf32, #tpu.memory_space<vmem>>, vector<256x256xf32>
    tpu.vector_store %arg9[%c0_2, %c0_3], %5 {strides = array<i32>} : memref<256x256xf32, #tpu.memory_space<vmem>>, vector<256x256xf32>,
    %c16_i32 = arith.constant 16 : i32
    %7 = arith.muli %arg1, %c16_i32 : i32
    %c0_i32_4 = arith.constant 0 : i32
    %8 = arith.addi %7, %c0_i32_4 : i32
    %9 = arith.index_cast %8 : i32 to index
    %c0_5 = arith.constant 0 : index
    %c0_6 = arith.constant 0 : index
    %10 = vector.load %arg8[%9, %c0_5, %c0_6] : memref<18x18x128xf32, #tpu.memory_space<vmem>>, vector<16x16x128xf32>
    %11 = vector.shape_cast %10 : vector<16x16x128xf32> to vector<256x128xf32>
    %12 = arith.truncf %11 : vector<256x128xf32> to vector<256x128xbf16>
    %c0_7 = arith.constant 0 : index
    %c0_8 = arith.constant 0 : index
    %13 = vector.load %arg5[%c0_7, %c0_8] : memref<1152x256xbf16, #tpu.memory_space<vmem>>, vector<128x256xbf16>
    %c0_9 = arith.constant 0 : index
    %c0_10 = arith.constant 0 : index
    %14 = vector.load %arg9[%c0_9, %c0_10] : memref<256x256xf32, #tpu.memory_space<vmem>>, vector<256x256xf32>
    %cst = arith.constant dense<0.000000e+00> : vector<256x256xf32>
    %15 = tpu.matmul %12, %13, %cst {dimension_numbers = #tpu.dot_dimension_numbers<[1], [0], [0], [1], [0, 0, 1, 1], [], []>} : vector<256x128xbf16>, vector<128x256xbf16>, vector<256x256xf32> -> vector<256x256xf32>
    %16 = arith.addf %14, %15 : vector<256x256xf32>
    %c0_11 = arith.constant 0 : index
    %c0_12 = arith.constant 0 : index
    %17 = vector.load %arg9[%c0_11, %c0_12] : memref<256x256xf32, #tpu.memory_space<vmem>>, vector<256x256xf32>
    tpu.vector_store %arg9[%c0_11, %c0_12], %16 {strides = array<i32>} : memref<256x256xf32, #tpu.memory_space<vmem>>, vector<256x256xf32>,
    %c0_i32_13 = arith.constant 0 : i32
    %18 = arith.addi %7, %c0_i32_13 : i32
    %19 = arith.index_cast %18 : i32 to index
    %c1 = arith.constant 1 : index
    %c0_14 = arith.constant 0 : index
    %20 = vector.load %arg8[%19, %c1, %c0_14] : memref<18x18x128xf32, #tpu.memory_space<vmem>>, vector<16x16x128xf32>
    %21 = vector.shape_cast %20 : vector<16x16x128xf32> to vector<256x128xf32>
    %22 = arith.truncf %21 : vector<256x128xf32> to vector<256x128xbf16>
    %c128 = arith.constant 128 : index
    %c0_15 = arith.constant 0 : index
    %23 = vector.load %arg5[%c128, %c0_15] : memref<1152x256xbf16, #tpu.memory_space<vmem>>, vector<128x256xbf16>
    %c0_16 = arith.constant 0 : index
    %c0_17 = arith.constant 0 : index
    %24 = vector.load %arg9[%c0_16, %c0_17] : memref<256x256xf32, #tpu.memory_space<vmem>>, vector<256x256xf32>
    %cst_18 = arith.constant dense<0.000000e+00> : vector<256x256xf32>
    %25 = tpu.matmul %22, %23, %cst_18 {dimension_numbers = #tpu.dot_dimension_numbers<[1], [0], [0], [1], [0, 0, 1, 1], [], []>} : vector<256x128xbf16>, vector<128x256xbf16>, vector<256x256xf32> -> vector<256x256xf32>
    %26 = arith.addf %24, %25 : vector<256x256xf32>
    %c0_19 = arith.constant 0 : index
    %c0_20 = arith.constant 0 : index
    %27 = vector.load %arg9[%c0_19, %c0_20] : memref<256x256xf32, #tpu.memory_space<vmem>>, vector<256x256xf32>
    tpu.vector_store %arg9[%c0_19, %c0_20], %26 {strides = array<i32>} : memref<256x256xf32, #tpu.memory_space<vmem>>, vector<256x256xf32>,
    %c0_i32_21 = arith.constant 0 : i32
    %28 = arith.addi %7, %c0_i32_21 : i32
    %29 = arith.index_cast %28 : i32 to index
    %c2 = arith.constant 2 : index
    %c0_22 = arith.constant 0 : index
    %30 = vector.load %arg8[%29, %c2, %c0_22] : memref<18x18x128xf32, #tpu.memory_space<vmem>>, vector<16x16x128xf32>
    %31 = vector.shape_cast %30 : vector<16x16x128xf32> to vector<256x128xf32>
    %32 = arith.truncf %31 : vector<256x128xf32> to vector<256x128xbf16>
    %c256 = arith.constant 256 : index
    %c0_23 = arith.constant 0 : index
    %33 = vector.load %arg5[%c256, %c0_23] : memref<1152x256xbf16, #tpu.memory_space<vmem>>, vector<128x256xbf16>
    %c0_24 = arith.constant 0 : index
    %c0_25 = arith.constant 0 : index
    %34 = vector.load %arg9[%c0_24, %c0_25] : memref<256x256xf32, #tpu.memory_space<vmem>>, vector<256x256xf32>
    %cst_26 = arith.constant dense<0.000000e+00> : vector<256x256xf32>
    %35 = tpu.matmul %32, %33, %cst_26 {dimension_numbers = #tpu.dot_dimension_numbers<[1], [0], [0], [1], [0, 0, 1, 1], [], []>} : vector<256x128xbf16>, vector<128x256xbf16>, vector<256x256xf32> -> vector<256x256xf32>
    %36 = arith.addf %34, %35 : vector<256x256xf32>
    %c0_27 = arith.constant 0 : index
    %c0_28 = arith.constant 0 : index
    %37 = vector.load %arg9[%c0_27, %c0_28] : memref<256x256xf32, #tpu.memory_space<vmem>>, vector<256x256xf32>
    tpu.vector_store %arg9[%c0_27, %c0_28], %36 {strides = array<i32>} : memref<256x256xf32, #tpu.memory_space<vmem>>, vector<256x256xf32>,
    %c1_i32 = arith.constant 1 : i32
    %38 = arith.addi %7, %c1_i32 : i32
    %39 = arith.index_cast %38 : i32 to index
    %c0_29 = arith.constant 0 : index
    %c0_30 = arith.constant 0 : index
    %40 = vector.load %arg8[%39, %c0_29, %c0_30] : memref<18x18x128xf32, #tpu.memory_space<vmem>>, vector<16x16x128xf32>
    %41 = vector.shape_cast %40 : vector<16x16x128xf32> to vector<256x128xf32>
    %42 = arith.truncf %41 : vector<256x128xf32> to vector<256x128xbf16>
    %c384 = arith.constant 384 : index
    %c0_31 = arith.constant 0 : index
    %43 = vector.load %arg5[%c384, %c0_31] : memref<1152x256xbf16, #tpu.memory_space<vmem>>, vector<128x256xbf16>
    %c0_32 = arith.constant 0 : index
    %c0_33 = arith.constant 0 : index
    %44 = vector.load %arg9[%c0_32, %c0_33] : memref<256x256xf32, #tpu.memory_space<vmem>>, vector<256x256xf32>
    %cst_34 = arith.constant dense<0.000000e+00> : vector<256x256xf32>
    %45 = tpu.matmul %42, %43, %cst_34 {dimension_numbers = #tpu.dot_dimension_numbers<[1], [0], [0], [1], [0, 0, 1, 1], [], []>} : vector<256x128xbf16>, vector<128x256xbf16>, vector<256x256xf32> -> vector<256x256xf32>
    %46 = arith.addf %44, %45 : vector<256x256xf32>
    %c0_35 = arith.constant 0 : index
    %c0_36 = arith.constant 0 : index
    %47 = vector.load %arg9[%c0_35, %c0_36] : memref<256x256xf32, #tpu.memory_space<vmem>>, vector<256x256xf32>
    tpu.vector_store %arg9[%c0_35, %c0_36], %46 {strides = array<i32>} : memref<256x256xf32, #tpu.memory_space<vmem>>, vector<256x256xf32>,
    %c1_i32_37 = arith.constant 1 : i32
    %48 = arith.addi %7, %c1_i32_37 : i32
    %49 = arith.index_cast %48 : i32 to index
    %c1_38 = arith.constant 1 : index
    %c0_39 = arith.constant 0 : index
    %50 = vector.load %arg8[%49, %c1_38, %c0_39] : memref<18x18x128xf32, #tpu.memory_space<vmem>>, vector<16x16x128xf32>
    %51 = vector.shape_cast %50 : vector<16x16x128xf32> to vector<256x128xf32>
    %52 = arith.truncf %51 : vector<256x128xf32> to vector<256x128xbf16>
    %c512 = arith.constant 512 : index
    %c0_40 = arith.constant 0 : index
    %53 = vector.load %arg5[%c512, %c0_40] : memref<1152x256xbf16, #tpu.memory_space<vmem>>, vector<128x256xbf16>
    %c0_41 = arith.constant 0 : index
    %c0_42 = arith.constant 0 : index
    %54 = vector.load %arg9[%c0_41, %c0_42] : memref<256x256xf32, #tpu.memory_space<vmem>>, vector<256x256xf32>
    %cst_43 = arith.constant dense<0.000000e+00> : vector<256x256xf32>
    %55 = tpu.matmul %52, %53, %cst_43 {dimension_numbers = #tpu.dot_dimension_numbers<[1], [0], [0], [1], [0, 0, 1, 1], [], []>} : vector<256x128xbf16>, vector<128x256xbf16>, vector<256x256xf32> -> vector<256x256xf32>
    %56 = arith.addf %54, %55 : vector<256x256xf32>
    %c0_44 = arith.constant 0 : index
    %c0_45 = arith.constant 0 : index
    %57 = vector.load %arg9[%c0_44, %c0_45] : memref<256x256xf32, #tpu.memory_space<vmem>>, vector<256x256xf32>
    tpu.vector_store %arg9[%c0_44, %c0_45], %56 {strides = array<i32>} : memref<256x256xf32, #tpu.memory_space<vmem>>, vector<256x256xf32>,
    %c1_i32_46 = arith.constant 1 : i32
    %58 = arith.addi %7, %c1_i32_46 : i32
    %59 = arith.index_cast %58 : i32 to index
    %c2_47 = arith.constant 2 : index
    %c0_48 = arith.constant 0 : index
    %60 = vector.load %arg8[%59, %c2_47, %c0_48] : memref<18x18x128xf32, #tpu.memory_space<vmem>>, vector<16x16x128xf32>
    %61 = vector.shape_cast %60 : vector<16x16x128xf32> to vector<256x128xf32>
    %62 = arith.truncf %61 : vector<256x128xf32> to vector<256x128xbf16>
    %c640 = arith.constant 640 : index
    %c0_49 = arith.constant 0 : index
    %63 = vector.load %arg5[%c640, %c0_49] : memref<1152x256xbf16, #tpu.memory_space<vmem>>, vector<128x256xbf16>
    %c0_50 = arith.constant 0 : index
    %c0_51 = arith.constant 0 : index
    %64 = vector.load %arg9[%c0_50, %c0_51] : memref<256x256xf32, #tpu.memory_space<vmem>>, vector<256x256xf32>
    %cst_52 = arith.constant dense<0.000000e+00> : vector<256x256xf32>
    %65 = tpu.matmul %62, %63, %cst_52 {dimension_numbers = #tpu.dot_dimension_numbers<[1], [0], [0], [1], [0, 0, 1, 1], [], []>} : vector<256x128xbf16>, vector<128x256xbf16>, vector<256x256xf32> -> vector<256x256xf32>
    %66 = arith.addf %64, %65 : vector<256x256xf32>
    %c0_53 = arith.constant 0 : index
    %c0_54 = arith.constant 0 : index
    %67 = vector.load %arg9[%c0_53, %c0_54] : memref<256x256xf32, #tpu.memory_space<vmem>>, vector<256x256xf32>
    tpu.vector_store %arg9[%c0_53, %c0_54], %66 {strides = array<i32>} : memref<256x256xf32, #tpu.memory_space<vmem>>, vector<256x256xf32>,
    %c2_i32 = arith.constant 2 : i32
    %68 = arith.addi %7, %c2_i32 : i32
    %69 = arith.index_cast %68 : i32 to index
    %c0_55 = arith.constant 0 : index
    %c0_56 = arith.constant 0 : index
    %70 = vector.load %arg8[%69, %c0_55, %c0_56] : memref<18x18x128xf32, #tpu.memory_space<vmem>>, vector<16x16x128xf32>
    %71 = vector.shape_cast %70 : vector<16x16x128xf32> to vector<256x128xf32>
    %72 = arith.truncf %71 : vector<256x128xf32> to vector<256x128xbf16>
    %c768 = arith.constant 768 : index
    %c0_57 = arith.constant 0 : index
    %73 = vector.load %arg5[%c768, %c0_57] : memref<1152x256xbf16, #tpu.memory_space<vmem>>, vector<128x256xbf16>
    %c0_58 = arith.constant 0 : index
    %c0_59 = arith.constant 0 : index
    %74 = vector.load %arg9[%c0_58, %c0_59] : memref<256x256xf32, #tpu.memory_space<vmem>>, vector<256x256xf32>
    %cst_60 = arith.constant dense<0.000000e+00> : vector<256x256xf32>
    %75 = tpu.matmul %72, %73, %cst_60 {dimension_numbers = #tpu.dot_dimension_numbers<[1], [0], [0], [1], [0, 0, 1, 1], [], []>} : vector<256x128xbf16>, vector<128x256xbf16>, vector<256x256xf32> -> vector<256x256xf32>
    %76 = arith.addf %74, %75 : vector<256x256xf32>
    %c0_61 = arith.constant 0 : index
    %c0_62 = arith.constant 0 : index
    %77 = vector.load %arg9[%c0_61, %c0_62] : memref<256x256xf32, #tpu.memory_space<vmem>>, vector<256x256xf32>
    tpu.vector_store %arg9[%c0_61, %c0_62], %76 {strides = array<i32>} : memref<256x256xf32, #tpu.memory_space<vmem>>, vector<256x256xf32>,
    %c2_i32_63 = arith.constant 2 : i32
    %78 = arith.addi %7, %c2_i32_63 : i32
    %79 = arith.index_cast %78 : i32 to index
    %c1_64 = arith.constant 1 : index
    %c0_65 = arith.constant 0 : index
    %80 = vector.load %arg8[%79, %c1_64, %c0_65] : memref<18x18x128xf32, #tpu.memory_space<vmem>>, vector<16x16x128xf32>
    %81 = vector.shape_cast %80 : vector<16x16x128xf32> to vector<256x128xf32>
    %82 = arith.truncf %81 : vector<256x128xf32> to vector<256x128xbf16>
    %c896 = arith.constant 896 : index
    %c0_66 = arith.constant 0 : index
    %83 = vector.load %arg5[%c896, %c0_66] : memref<1152x256xbf16, #tpu.memory_space<vmem>>, vector<128x256xbf16>
    %c0_67 = arith.constant 0 : index
    %c0_68 = arith.constant 0 : index
    %84 = vector.load %arg9[%c0_67, %c0_68] : memref<256x256xf32, #tpu.memory_space<vmem>>, vector<256x256xf32>
    %cst_69 = arith.constant dense<0.000000e+00> : vector<256x256xf32>
    %85 = tpu.matmul %82, %83, %cst_69 {dimension_numbers = #tpu.dot_dimension_numbers<[1], [0], [0], [1], [0, 0, 1, 1], [], []>} : vector<256x128xbf16>, vector<128x256xbf16>, vector<256x256xf32> -> vector<256x256xf32>
    %86 = arith.addf %84, %85 : vector<256x256xf32>
    %c0_70 = arith.constant 0 : index
    %c0_71 = arith.constant 0 : index
    %87 = vector.load %arg9[%c0_70, %c0_71] : memref<256x256xf32, #tpu.memory_space<vmem>>, vector<256x256xf32>
    tpu.vector_store %arg9[%c0_70, %c0_71], %86 {strides = array<i32>} : memref<256x256xf32, #tpu.memory_space<vmem>>, vector<256x256xf32>,
    %c2_i32_72 = arith.constant 2 : i32
    %88 = arith.addi %7, %c2_i32_72 : i32
    %89 = arith.index_cast %88 : i32 to index
    %c2_73 = arith.constant 2 : index
    %c0_74 = arith.constant 0 : index
    %90 = vector.load %arg8[%89, %c2_73, %c0_74] : memref<18x18x128xf32, #tpu.memory_space<vmem>>, vector<16x16x128xf32>
    %91 = vector.shape_cast %90 : vector<16x16x128xf32> to vector<256x128xf32>
    %92 = arith.truncf %91 : vector<256x128xf32> to vector<256x128xbf16>
    %c1024 = arith.constant 1024 : index
    %c0_75 = arith.constant 0 : index
    %93 = vector.load %arg5[%c1024, %c0_75] : memref<1152x256xbf16, #tpu.memory_space<vmem>>, vector<128x256xbf16>
    %c0_76 = arith.constant 0 : index
    %c0_77 = arith.constant 0 : index
    %94 = vector.load %arg9[%c0_76, %c0_77] : memref<256x256xf32, #tpu.memory_space<vmem>>, vector<256x256xf32>
    %cst_78 = arith.constant dense<0.000000e+00> : vector<256x256xf32>
    %95 = tpu.matmul %92, %93, %cst_78 {dimension_numbers = #tpu.dot_dimension_numbers<[1], [0], [0], [1], [0, 0, 1, 1], [], []>} : vector<256x128xbf16>, vector<128x256xbf16>, vector<256x256xf32> -> vector<256x256xf32>
    %96 = arith.addf %94, %95 : vector<256x256xf32>
    %c0_79 = arith.constant 0 : index
    %c0_80 = arith.constant 0 : index
    %97 = vector.load %arg9[%c0_79, %c0_80] : memref<256x256xf32, #tpu.memory_space<vmem>>, vector<256x256xf32>
    tpu.vector_store %arg9[%c0_79, %c0_80], %96 {strides = array<i32>} : memref<256x256xf32, #tpu.memory_space<vmem>>, vector<256x256xf32>,
    %c0_81 = arith.constant 0 : index
    %c0_82 = arith.constant 0 : index
    %98 = vector.load %arg9[%c0_81, %c0_82] : memref<256x256xf32, #tpu.memory_space<vmem>>, vector<256x256xf32>
    %99 = vector.extract_strided_slice %98 {offsets = [0, 0], sizes = [256, 128], strides = [1, 1]} : vector<256x256xf32> to vector<256x128xf32>
    %100 = vector.extract_strided_slice %98 {offsets = [0, 128], sizes = [256, 128], strides = [1, 1]} : vector<256x256xf32> to vector<256x128xf32>
    %101 = arith.maximumf %99, %100 : vector<256x128xf32>
    %102 = tpu.transpose %101, [1, 0] : vector<256x128xf32> -> vector<128x256xf32>
    %103 = vector.extract_strided_slice %102 {offsets = [0, 0], sizes = [8, 256], strides = [1, 1]} : vector<128x256xf32> to vector<8x256xf32>
    %c0_83 = arith.constant 0 : index
    %c0_84 = arith.constant 0 : index
    %c0_85 = arith.constant 0 : index
    %104 = vector.load %arg7[%c0_83, %c0_84, %c0_85] : memref<1x8x256xf32, #tpu.memory_space<vmem>>, vector<1x8x256xf32>
    %105 = vector.shape_cast %104 : vector<1x8x256xf32> to vector<8x256xf32>
    %106 = vector.shape_cast %103 : vector<8x256xf32> to vector<1x8x256xf32>
    tpu.vector_store %arg7[%c0_83, %c0_84, %c0_85], %106 {strides = array<i32>} : memref<1x8x256xf32, #tpu.memory_space<vmem>>, vector<1x8x256xf32>,
    return
  }
  func.func @transform_0(%arg0: i32, %arg1: i32) -> (i32, i32, i32) {
    %c0_i32 = arith.constant 0 : i32
    %c0_i32_0 = arith.constant 0 : i32
    %c0_i32_1 = arith.constant 0 : i32
    return %arg0, %c0_i32, %c0_i32_0 : i32, i32, i32
  }
  func.func @transform_1(%arg0: i32, %arg1: i32) -> (i32, i32) {
    %c0_i32 = arith.constant 0 : i32
    %c0_i32_0 = arith.constant 0 : i32
    %c0_i32_1 = arith.constant 0 : i32
    return %c0_i32, %c0_i32_0 : i32, i32
  }
  func.func @transform_2(%arg0: i32, %arg1: i32) -> (i32, i32) {
    %c0_i32 = arith.constant 0 : i32
    %c0_i32_0 = arith.constant 0 : i32
    %c0_i32_1 = arith.constant 0 : i32
    return %c0_i32, %c0_i32_0 : i32, i32
  }
  func.func @transform_3(%arg0: i32, %arg1: i32) -> (i32, i32) {
    %c0_i32 = arith.constant 0 : i32
    %c0_i32_0 = arith.constant 0 : i32
    %c0_i32_1 = arith.constant 0 : i32
    return %c0_i32, %c0_i32_0 : i32, i32
  }
  func.func @transform_4(%arg0: i32, %arg1: i32) -> (i32, i32) {
    %c0_i32 = arith.constant 0 : i32
    %c0_i32_0 = arith.constant 0 : i32
    %c0_i32_1 = arith.constant 0 : i32
    return %c0_i32, %c0_i32_0 : i32, i32
  }
  func.func @transform_5(%arg0: i32, %arg1: i32) -> (i32, i32, i32) {
    %c0_i32 = arith.constant 0 : i32
    %c0_i32_0 = arith.constant 0 : i32
    return %arg0, %c0_i32, %arg1 : i32, i32, i32
  }
}

</mosaic_0001>

<bundles_post_ra>
// kernel: group_forward.1
= control target key start
LH: loop header
LB: loop body
LE: loop exit
PB: predicated region body
PF: predicated region fallthrough
CT: control target
= control target key end

     0   :  { %s6811_s18 = smov 0   ;;  %s6813_s19 = smov 0   ;;  %s8810_s0 = inlined_call_operand.vmem [shape: f32[2,4,256], index: 0, kind: input, shape index: {}]   ;;  %s8811_s1 = inlined_call_operand.vmem [shape: bf16[256,4], index: 1, kind: input, shape index: {}]   ;;  %s8812_s2 = inlined_call_operand.vmem [shape: f32[256,1], index: 2, kind: input, shape index: {}]   ;;  %s8813_s3 = inlined_call_operand.vmem [shape: bf16[1152,256], index: 3, kind: input, shape index: {}]   ;;  %s8814_s4 = inlined_call_operand.vmem [shape: f32[1,256], index: 4, kind: input, shape index: {}]   ;;  %s8815_s5 = inlined_call_operand.vmem [shape: f32[2,8,256], index: 5, kind: output, shape index: {}]  }
   0x1   :  { %s6815_s20 = smov 0  }
   0x2 LB: > { %s27_s21 = sadd.s32 1, %s6772_s19  ;;  %p6098_p0 = scmp.ge.s32.totalorder %s6776_s20, 1  ;;  %s6776_s20 = sphi %s6815_s20, %s15_s20   ;;  %s6772_s19 = sphi %s6813_s19, %s9031_s19   ;;  %s6768_s18 = sphi %s6811_s18, %s9030_s18  }
   0x3   : > { %p29_p1 = scmp.ge.s32.totalorder %s27_s21, 2  ;;  %p201_p2 = scmp.lt.s32.totalorder %s6776_s20, 3 }
   0x5   : > { %s9033_s21 = smov (%p29_p1, %s27_s21), 0  ;;  %p202_p3 = pnand %p6098_p0, %p201_p2 }
   0x7   : > { %205 = sbr.rel (%p202_p3) target bundleno = 1311 (0x51f), region = 40 }
   0xc   : > { %p233_p4 = scmp.lt.s32.totalorder %s6768_s18, 1  ;;  %v8816_v0 = vmov 0   ;;  %vm666_vm0 = vcmask 1041408   ;;  %v345_v6 = vld [vmem:[%s8812_s2] sm:$0xff]  ;;  %v346_v8 = vld [vmem:[%s8812_s2 + $0x8] sm:$0xff]  ;;  %vm617_vm1 = vcmask 31744  }
   0xd   : > { %705 = vmatprep.mubr.bf16.mxu0 %v8816_v0  ;;  %6518 = vset.pattern.permute.xlu0 %v8816_v0  ;;  %v6521_v7 = vld [vmem:[%s8811_s1] sm:$0xff]   ;;  %v362_v10 = vld [vmem:[%s8812_s2 + $0x88] sm:$0xff]  ;;  %v347_v11 = vld [vmem:[%s8812_s2 + $0x10] sm:$0xff] }
   0xe   : > { %s9035_s18 = smov (!%p233_p4, %s6768_s18), 1  ;;  %6519 = vset.pattern.permute.xlu1 %v8816_v0  ;;  %1314 = vmatprep.mubr.bf16.mxu1 %v8816_v0  ;;  %v361_v9 = vld [vmem:[%s8812_s2 + $0x80] sm:$0xff]  ;;  %v363_v12 = vld [vmem:[%s8812_s2 + $0x90] sm:$0xff]  ;;  %v6522_v13 = vld [vmem:[%s8811_s1 + $0x8] sm:$0xff]  }
   0xf   : > { %s6474_s22 = sshll.u32 %s9035_s18, 3  ;;  %379 = vperm.xlu0 %6518, %v345_v6   ;;  %384 = vperm.xlu1 %6519, %v346_v8   ;;  %v348_v14 = vld [vmem:[%s8812_s2 + $0x18] sm:$0xff]  ;;  %v349_v16 = vld [vmem:[%s8812_s2 + $0x20] sm:$0xff]  ;;  %v6523_v18 = vld [vmem:[%s8811_s1 + $0x10] sm:$0xff]   ;;  %s6475_s9 = sshll.u32 %s9035_s18, 4 }
  0x10   : > { %s237_s25 = scalar_lea.vmem %s8810_s0, %s6474_s22  ;;  %v364_v15 = vld [vmem:[%s8812_s2 + $0x98] sm:$0xff]  ;;  %v365_v17 = vld [vmem:[%s8812_s2 + $0xa0] sm:$0xff]  ;;  %v350_v19 = vld [vmem:[%s8812_s2 + $0x28] sm:$0xff]  ;;  %s246_s12 = scalar_lea.vmem %s8815_s5, %s6475_s9 }
  0x11   : > { %v307_v1 = vld [vmem:[%s237_s25] sm:$0xff]  ;;  %v366_v20 = vld [vmem:[%s8812_s2 + $0xa8] sm:$0xff]  ;;  %v351_v21 = vld [vmem:[%s8812_s2 + $0x30] sm:$0xff] }
  0x12   : > { %v309_v2 = vcombine.high %v307_v1, %v307_v1  ;;  %v311_v3 = vpack.c.bf16 %v307_v1, %v307_v1  ;;  %v367_v22 = vld [vmem:[%s8812_s2 + $0xb0] sm:$0xff]  ;;  %v6524_v23 = vld [vmem:[%s8811_s1 + $0x18] sm:$0xff]   ;;  %v353_v26 = vld [vmem:[%s8812_s2 + $0x40] sm:$0xff] }
  0x13   : > { %459 = vperm.xlu0 %6518, %v361_v9   ;;  %464 = vperm.xlu1 %6519, %v362_v10   ;;  %v352_v24 = vld [vmem:[%s8812_s2 + $0x38] sm:$0xff]  ;;  %v369_v27 = vld [vmem:[%s8812_s2 + $0xc0] sm:$0xff]  ;;  %v354_v29 = vld [vmem:[%s8812_s2 + $0x48] sm:$0xff] }
  0x14   : > { %v312_v4 = vpack.c.bf16 %v309_v2, %v309_v2  ;;  %v668_v5 = vsel %vm666_vm0, %v311_v3, 0  ;;  %v368_v25 = vld [vmem:[%s8812_s2 + $0xb8] sm:$0xff]  ;;  %v6525_v28 = vld [vmem:[%s8811_s1 + $0x20] sm:$0xff]   ;;  %v370_v30 = vld [vmem:[%s8812_s2 + $0xc8] sm:$0xff] }
  0x15   : > { %v355_v31 = vld [vmem:[%s8812_s2 + $0x50] sm:$0xff]  ;;  %v6526_v33 = vld [vmem:[%s8811_s1 + $0x28] sm:$0xff]   ;;  %v356_v34 = vld [vmem:[%s8812_s2 + $0x58] sm:$0xff] }
  0x16   : > { %6119 = vmatprep.subr.msk.bf16.mxu0 %vm666_vm0, %v312_v4  ;;  %v371_v32 = vld [vmem:[%s8812_s2 + $0xd0] sm:$0xff]  ;;  %v372_v35 = vld [vmem:[%s8812_s2 + $0xd8] sm:$0xff]  ;;  %v357_v36 = vld [vmem:[%s8812_s2 + $0x60] sm:$0xff] }
  0x17   : > { %688 = vmatpush1.bf16.msra.mxu0 %v668_v5  ;;  %389 = vperm.xlu0 %6518, %v347_v11   ;;  %v373_v37 = vld [vmem:[%s8812_s2 + $0xe0] sm:$0xff]  ;;  %v6527_v38 = vld [vmem:[%s8811_s1 + $0x30] sm:$0xff]   ;;  %v358_v39 = vld [vmem:[%s8812_s2 + $0x68] sm:$0xff] }
  0x18   : > { %469 = vperm.xlu1 %6519, %v363_v12   ;;  %v374_v40 = vld [vmem:[%s8812_s2 + $0xe8] sm:$0xff]  ;;  %v359_v41 = vld [vmem:[%s8812_s2 + $0x70] sm:$0xff]  ;;  %v6528_v43 = vld [vmem:[%s8811_s1 + $0x38] sm:$0xff]  }
  0x19   : > { %v375_v42 = vld [vmem:[%s8812_s2 + $0xf0] sm:$0xff]  ;;  %v360_v44 = vld [vmem:[%s8812_s2 + $0x78] sm:$0xff]  ;;  %v6529_v46 = vld [vmem:[%s8811_s1 + $0x40] sm:$0xff]  }
  0x1a   : > { %6120 = vmatmul.mubr.msk.bf16.vlgmr.msra.gmra.mxu0 %vm617_vm1, %v6521_v7  ;;  %v376_v45 = vld [vmem:[%s8812_s2 + $0xf8] sm:$0xff]  ;;  %v6530_v47 = vld [vmem:[%s8811_s1 + $0x48] sm:$0xff]   ;;  %v6531_v48 = vld [vmem:[%s8811_s1 + $0x50] sm:$0xff]  }
  0x1b   : > { %715 = vmatprep.mubr.bf16.mxu0 %v8816_v0  ;;  %394 = vperm.xlu0 %6518, %v348_v14   ;;  %v6532_v49 = vld [vmem:[%s8811_s1 + $0x58] sm:$0xff]   ;;  %v6533_v50 = vld [vmem:[%s8811_s1 + $0x60] sm:$0xff]   ;;  %v6534_v51 = vld [vmem:[%s8811_s1 + $0x68] sm:$0xff]  }
  0x1c   : > { %474 = vperm.xlu1 %6519, %v364_v15   ;;  %v6535_v52 = vld [vmem:[%s8811_s1 + $0x70] sm:$0xff]   ;;  %v6536_v53 = vld [vmem:[%s8811_s1 + $0x78] sm:$0xff]   ;;  %v6542_v58 = vld [vmem:[%s8813_s3 + $0xe4] ss:$8 sps:$4 sm:$0xff]   ;;  %v6779_v15 = vmov 0.0  }
  0x1d   : > { %v6537_v55 = vld [vmem:[%s8813_s3 + $0xf0] ss:$8 sps:$4 sm:$0xff]   ;;  %v6539_v56 = vld [vmem:[%s8813_s3 + $0xf4] ss:$8 sps:$4 sm:$0xff]   ;;  %v6540_v60 = vld [vmem:[%s8813_s3 + $0xe0] ss:$8 sps:$4 sm:$0xff]  }
  0x1e   : > { %1811 = vmatprep.subr.bf16.mxu0 %v6539_v56  ;;  %v6546_v61 = vld [vmem:[%s8813_s3 + $0x74] ss:$8 sps:$4 sm:$0xff]   ;;  %v6548_v62 = vld [vmem:[%s8813_s3 + $0x70] ss:$8 sps:$4 sm:$0xff]   ;;  %v6549_v1 = vld [vmem:[%s8813_s3 + $0x64] ss:$8 sps:$4 sm:$0xff]  }
  0x1f   : > { %399 = vperm.xlu0 %6518, %v349_v16   ;;  %1812 = vmatpush1.bf16.msra.mxu0 %v6537_v55  ;;  %v6545_v63 = vld [vmem:[%s8813_s3 + $0xd4] ss:$8 sps:$4 sm:$0xff]   ;;  %v6551_v3 = vld [vmem:[%s8813_s3 + $0x60] ss:$8 sps:$4 sm:$0xff]   ;;  %v6543_v5 = vld [vmem:[%s8813_s3 + $0xd0] ss:$8 sps:$4 sm:$0xff]  }
  0x20   : > { %479 = vperm.xlu1 %6519, %v365_v17   ;;  %1813 = vmatprep.subr.bf16.mxu0 %v6542_v58  ;;  %v6552_v6 = vld [vmem:[%s8813_s3 + $0x54] ss:$8 sps:$4 sm:$0xff]   ;;  %v6560_v7 = vld [vmem:[%s8813_s3 + $0xc4] ss:$8 sps:$4 sm:$0xff]   ;;  %v7066_v9 = vld [vmem:[%s8813_s3 + $0x50] ss:$8 sps:$4 sm:$0xff]  }
  0x21   : > { %1282 = vmatprep.subr.bf16.mxu1 %v6546_v61  ;;  %v6555_v11 = vld [vmem:[%s8813_s3 + $0x44] ss:$8 sps:$4 sm:$0xff]   ;;  %v6558_v12 = vld [vmem:[%s8813_s3 + $0xc0] ss:$8 sps:$4 sm:$0xff]   ;;  %256 = vst [vmem:[#allocation2 + $0x18] sm:$0xff] %v6779_v15  ;;  %257 = vst [vmem:[#allocation2 + $0x20] sm:$0xff] %v6779_v15 }
  0x22   : > { %6121 = vmatmul.mubr.msk.bf16.gmra.mxu0 %vm617_vm1, %v6522_v13  ;;  %1283 = vmatpush1.bf16.msra.mxu1 %v6548_v62  ;;  %v7079_v13 = vld [vmem:[%s8813_s3 + $0xb4] ss:$8 sps:$4 sm:$0xff]   ;;  %253 = vst [vmem:[#allocation2] sm:$0xff] %v6779_v15  ;;  %254 = vst [vmem:[#allocation2 + $0x8] sm:$0xff] %v6779_v15  ;;  %v6557_v16 = vld [vmem:[%s8813_s3 + $0x40] ss:$8 sps:$4 sm:$0xff]  }
  0x23   : > { %725 = vmatprep.mubr.bf16.mxu0 %v8816_v0  ;;  %404 = vperm.xlu0 %6518, %v350_v19   ;;  %255 = vst [vmem:[#allocation2 + $0x10] sm:$0x3] %v6779_v15  ;;  %258 = vst [vmem:[#allocation2 + $0x28] sm:$0x3] %v6779_v15  ;;  %v6564_v19 = vld [vmem:[%s8813_s3 + $0xb0] ss:$8 sps:$4 sm:$0xff]  }
  0x24   : > { %484 = vperm.xlu1 %6519, %v366_v20   ;;  %1814 = vmatpush1.bf16.msra.mxu0 %v6540_v60  ;;  %259 = vst [vmem:[#allocation2 + $0x30] sm:$0xff] %v6779_v15  ;;  %260 = vst [vmem:[#allocation2 + $0x38] sm:$0xff] %v6779_v15  ;;  %v6572_v20 = vld [vmem:[%s8813_s3 + $0xa4] ss:$8 sps:$4 sm:$0xff]  }
  0x25   : > { %1284 = vmatprep.subr.bf16.mxu1 %v6549_v1  ;;  %1815 = vmatprep.subr.bf16.mxu0 %v6545_v63  ;;  %261 = vst [vmem:[#allocation2 + $0x40] sm:$0x3] %v6779_v15  ;;  %262 = vst [vmem:[#allocation2 + $0x48] sm:$0xff] %v6779_v15 }
  0x26   : > { %1285 = vmatpush1.bf16.msra.mxu1 %v6551_v3  ;;  %263 = vst [vmem:[#allocation2 + $0x50] sm:$0xff] %v6779_v15  ;;  %264 = vst [vmem:[#allocation2 + $0x58] sm:$0x3] %v6779_v15 }
  0x27   : > { %409 = vperm.xlu0 %6518, %v351_v21   ;;  %1286 = vmatprep.subr.bf16.mxu1 %v6552_v6  ;;  %265 = vst [vmem:[#allocation2 + $0x60] sm:$0xff] %v6779_v15  ;;  %266 = vst [vmem:[#allocation2 + $0x68] sm:$0xff] %v6779_v15 }
  0x28   : > { %489 = vperm.xlu1 %6519, %v367_v22   ;;  %1816 = vmatpush1.bf16.msra.mxu0 %v6543_v5  ;;  %267 = vst [vmem:[#allocation2 + $0x70] sm:$0x3] %v6779_v15  ;;  %268 = vst [vmem:[#allocation2 + $0x78] sm:$0xff] %v6779_v15  ;;  %v6563_v22 = vld [vmem:[%s8813_s3 + $0x30] ss:$8 sps:$4 sm:$0xff]  }
  0x29   : > { %1817 = vmatprep.subr.bf16.mxu0 %v6560_v7  ;;  %269 = vst [vmem:[#allocation2 + $0x80] sm:$0xff] %v6779_v15  ;;  %270 = vst [vmem:[#allocation2 + $0x88] sm:$0x3] %v6779_v15  ;;  %v1603_v7 = vld [vmem:[#allocation2 + $0x1] sm:$0xff] }
  0x2a   : > { %6122 = vmatmul.mubr.msk.bf16.gmra.mxu0 %vm617_vm1, %v6523_v18  ;;  %271 = vst [vmem:[#allocation2 + $0x90] sm:$0xff] %v6779_v15  ;;  %272 = vst [vmem:[#allocation2 + $0x98] sm:$0xff] %v6779_v15  ;;  %1287 = vmatpush1.bf16.msra.mxu1 %v7066_v9  ;;  %v6561_v18 = vld [vmem:[%s8813_s3 + $0x34] ss:$8 sps:$4 sm:$0xff]   ;;  %v1604_v9 = vld [vmem:[#allocation2 + $0x9] sm:$0xff] }
  0x2b   : > { %735 = vmatprep.mubr.bf16.mxu0 %v8816_v0  ;;  %414 = vperm.xlu0 %6518, %v352_v24   ;;  %273 = vst [vmem:[#allocation2 + $0xa0] sm:$0x3] %v6779_v15  ;;  %274 = vst [vmem:[#allocation2 + $0xa8] sm:$0xff] %v6779_v15  ;;  %v6567_v24 = vld [vmem:[%s8813_s3 + $0x24] ss:$8 sps:$4 sm:$0xff]  }
  0x2c   : > { %494 = vperm.xlu1 %6519, %v368_v25   ;;  %275 = vst [vmem:[#allocation2 + $0xb0] sm:$0xff] %v6779_v15  ;;  %276 = vst [vmem:[#allocation2 + $0xb8] sm:$0x3] %v6779_v15  ;;  %1288 = vmatprep.subr.bf16.mxu1 %v6555_v11  ;;  %v6570_v25 = vld [vmem:[%s8813_s3 + $0xa0] ss:$8 sps:$4 sm:$0xff]  }
  0x2d   : > { %277 = vst [vmem:[#allocation2 + $0xc0] sm:$0xff] %v6779_v15  ;;  %278 = vst [vmem:[#allocation2 + $0xc8] sm:$0xff] %v6779_v15  ;;  %1818 = vmatpush1.bf16.msra.mxu0 %v6558_v12 }
  0x2e   : > { %279 = vst [vmem:[#allocation2 + $0xd0] sm:$0x3] %v6779_v15  ;;  %280 = vst [vmem:[#allocation2 + $0xd8] sm:$0xff] %v6779_v15  ;;  %1819 = vmatprep.subr.bf16.mxu0 %v7079_v13  ;;  %1289 = vmatpush1.bf16.msra.mxu1 %v6557_v16  ;;  %v1635_v13 = vpack.c.bf16 %v1604_v9, %v1603_v7 }
  0x2f   : > { %419 = vperm.xlu0 %6518, %v353_v26   ;;  %281 = vst [vmem:[#allocation2 + $0xe0] sm:$0xff] %v6779_v15  ;;  %282 = vst [vmem:[#allocation2 + $0xe8] sm:$0x3] %v6779_v15  ;;  %1290 = vmatprep.subr.bf16.mxu1 %v6561_v18  ;;  %v6578_v26 = vld [vmem:[%s8813_s3 + $0x94] ss:$8 sps:$4 sm:$0xff]  }
  0x30   : > { %499 = vperm.xlu1 %6519, %v369_v27   ;;  %283 = vst [vmem:[#allocation2 + $0xf0] sm:$0xff] %v6779_v15  ;;  %284 = vst [vmem:[#allocation2 + $0xf8] sm:$0xff] %v6779_v15 }
  0x31   : > { %285 = vst [vmem:[#allocation2 + $0x100] sm:$0x3] %v6779_v15  ;;  %286 = vst [vmem:[#allocation2 + $0x108] sm:$0xff] %v6779_v15  ;;  %1820 = vmatpush1.bf16.msra.mxu0 %v6564_v19 }
  0x32   : > { %6123 = vmatmul.mubr.msk.bf16.gmra.mxu0 %vm617_vm1, %v6524_v23  ;;  %287 = vst [vmem:[#allocation2 + $0x110] sm:$0xff] %v6779_v15  ;;  %288 = vst [vmem:[#allocation2 + $0x118] sm:$0x3] %v6779_v15  ;;  %1821 = vmatprep.subr.bf16.mxu0 %v6572_v20 }
  0x33   : > { %745 = vmatprep.mubr.bf16.mxu0 %v8816_v0  ;;  %424 = vperm.xlu0 %6518, %v354_v29   ;;  %289 = vst [vmem:[#allocation2 + $0x120] sm:$0xff] %v6779_v15  ;;  %290 = vst [vmem:[#allocation2 + $0x128] sm:$0xff] %v6779_v15 }
  0x34   : > { %504 = vperm.xlu1 %6519, %v370_v30   ;;  %291 = vst [vmem:[#allocation2 + $0x130] sm:$0x3] %v6779_v15  ;;  %292 = vst [vmem:[#allocation2 + $0x138] sm:$0xff] %v6779_v15  ;;  %1291 = vmatpush1.bf16.msra.mxu1 %v6563_v22  ;;  %v6573_v30 = vld [vmem:[%s8813_s3 + $0x14] ss:$8 sps:$4 sm:$0xff]   ;;  %v6780_v22 = vmov 0.0|0.0  }
  0x35   : > { %293 = vst [vmem:[#allocation2 + $0x140] sm:$0xff] %v6779_v15  ;;  %294 = vst [vmem:[#allocation2 + $0x148] sm:$0x3] %v6779_v15  ;;  %1292 = vmatprep.subr.bf16.mxu1 %v6567_v24  ;;  %1822 = vmatpush1.bf16.msra.mxu0 %v6570_v25 }
  0x36   : > { %295 = vst [vmem:[#allocation2 + $0x150] sm:$0xff] %v6779_v15  ;;  %296 = vst [vmem:[#allocation2 + $0x158] sm:$0xff] %v6779_v15  ;;  %1823 = vmatprep.subr.bf16.mxu0 %v6578_v26 }
  0x37   : > { %429 = vperm.xlu0 %6518, %v355_v31   ;;  %297 = vst [vmem:[#allocation2 + $0x160] sm:$0x3] %v6779_v15  ;;  %298 = vst [vmem:[#allocation2 + $0x168] sm:$0xff] %v6779_v15  ;;  %v6576_v31 = vld [vmem:[%s8813_s3 + $0x90] ss:$8 sps:$4 sm:$0xff]  }
  0x38   : > { %509 = vperm.xlu1 %6519, %v371_v32   ;;  %299 = vst [vmem:[#allocation2 + $0x170] sm:$0xff] %v6779_v15  ;;  %300 = vst [vmem:[#allocation2 + $0x178] sm:$0x3] %v6779_v15  ;;  %v6584_v32 = vld [vmem:[%s8813_s3 + $0x84] ss:$8 sps:$4 sm:$0xff]  }
  0x39   : > { %301 = vst [vmem:[#allocation2 + $0x180] sm:$0xff] %v6779_v15  ;;  %302 = vst [vmem:[#allocation2 + $0x188] sm:$0xff] %v6779_v15  ;;  %1824 = vmatpush1.bf16.msra.mxu0 %v6576_v31 }
  0x3a   : > { %6124 = vmatmul.mubr.msk.bf16.gmra.mxu0 %vm617_vm1, %v6525_v28  ;;  %303 = vst [vmem:[#allocation2 + $0x190] sm:$0x3] %v6779_v15  ;;  %304 = vst [vmem:[#allocation2 + $0x198] sm:$0xff] %v6779_v15  ;;  %v6569_v28 = vld [vmem:[%s8813_s3 + $0x20] ss:$8 sps:$4 sm:$0xff]   ;;  %1825 = vmatprep.subr.bf16.mxu0 %v6584_v32 }
  0x3b   : > { %755 = vmatprep.mubr.bf16.mxu0 %v8816_v0  ;;  %434 = vperm.xlu0 %6518, %v356_v34   ;;  %305 = vst [vmem:[#allocation2 + $0x1a0] sm:$0xff] %v6779_v15  ;;  %306 = vst [vmem:[#allocation2 + $0x1a8] sm:$0x3] %v6779_v15  ;;  %v6575_v34 = vld [vmem:[%s8813_s3 + $0x10] ss:$8 sps:$4 sm:$0xff]  }
  0x3c   : > { %514 = vperm.xlu1 %6519, %v372_v35   ;;  %1293 = vmatpush1.bf16.msra.mxu1 %v6569_v28 }
  0x3d   : > { %1294 = vmatprep.subr.bf16.mxu1 %v6573_v30 }
  0x3f   : > { %439 = vperm.xlu0 %6518, %v357_v36   ;;  %v6579_v36 = vld [vmem:[%s8813_s3 + $0x4] ss:$8 sps:$4 sm:$0xff]  }
  0x40   : > { %519 = vperm.xlu1 %6519, %v373_v37   ;;  %v6582_v37 = vld [vmem:[%s8813_s3 + $0x80] ss:$8 sps:$4 sm:$0xff]   ;;  %1295 = vmatpush1.bf16.msra.mxu1 %v6575_v34 }
  0x41   : > { %1296 = vmatprep.subr.bf16.mxu1 %v6579_v36  ;;  %1826 = vmatpush1.bf16.msra.mxu0 %v6582_v37  ;;  %v6585_v37 = vld [vmem:[%s8813_s3 + $0x170] ss:$8 sps:$4 sm:$0xff]  }
  0x42   : > { %6125 = vmatmul.mubr.msk.bf16.gmra.mxu0 %vm617_vm1, %v6526_v33 }
  0x43   : > { %765 = vmatprep.mubr.bf16.mxu0 %v8816_v0  ;;  %444 = vperm.xlu0 %6518, %v358_v39   ;;  %v6581_v39 = vld [vmem:[%s8813_s3] ss:$8 sps:$4 sm:$0xff]  }
  0x44   : > { %524 = vperm.xlu1 %6519, %v374_v40   ;;  %1297 = vmatpush1.bf16.msra.mxu1 %v6581_v39 }
  0x47   : > { %449 = vperm.xlu0 %6518, %v359_v41   ;;  %1315 = vmatmul.mubr.bf16.vlgmr.msra.gmra.mxu1 %v6780_v22 }
  0x48   : > { %529 = vperm.xlu1 %6519, %v375_v42   ;;  %1324 = vmatprep.mubr.bf16.mxu1 %v8816_v0 }
  0x4a   : > { %6126 = vmatmul.mubr.msk.bf16.gmra.mxu0 %vm617_vm1, %v6527_v38 }
  0x4b   : > { %775 = vmatprep.mubr.bf16.mxu0 %v8816_v0  ;;  %454 = vperm.xlu0 %6518, %v360_v44  }
  0x4c   : > { %534 = vperm.xlu1 %6519, %v376_v45  }
  0x52   : > { %6127 = vmatmul.mubr.msk.bf16.gmra.mxu0 %vm617_vm1, %v6528_v43 }
  0x53   : > { %785 = vmatprep.mubr.bf16.mxu0 %v8816_v0 }
  0x5a   : > { %6128 = vmatmul.mubr.msk.bf16.gmra.mxu0 %vm617_vm1, %v6529_v46 }
  0x5b   : > { %795 = vmatprep.mubr.bf16.mxu0 %v8816_v0 }
  0x62   : > { %6129 = vmatmul.mubr.msk.bf16.gmra.mxu0 %vm617_vm1, %v6530_v47 }
  0x63   : > { %805 = vmatprep.mubr.bf16.mxu0 %v8816_v0 }
  0x6a   : > { %6130 = vmatmul.mubr.msk.bf16.gmra.mxu0 %vm617_vm1, %v6531_v48 }
  0x6b   : > { %815 = vmatprep.mubr.bf16.mxu0 %v8816_v0 }
  0x72   : > { %6131 = vmatmul.mubr.msk.bf16.gmra.mxu0 %vm617_vm1, %v6532_v49 }
  0x73   : > { %825 = vmatprep.mubr.bf16.mxu0 %v8816_v0 }
  0x7a   : > { %6132 = vmatmul.mubr.msk.bf16.gmra.mxu0 %vm617_vm1, %v6533_v50 }
  0x7b   : > { %835 = vmatprep.mubr.bf16.mxu0 %v8816_v0 }
  0x82   : > { %6133 = vmatmul.mubr.msk.bf16.gmra.mxu0 %vm617_vm1, %v6534_v51 }
  0x83   : > { %845 = vmatprep.mubr.bf16.mxu0 %v8816_v0 }
  0x8a   : > { %6134 = vmatmul.mubr.msk.bf16.gmra.mxu0 %vm617_vm1, %v6535_v52  ;;  %v380_v40 = vpop.permute.xlu0 %379  ;;  %v385_v42 = vpop.permute.xlu1 %384 }
  0x8b   : > { %855 = vmatprep.mubr.bf16.mxu0 %v8816_v0 }
  0x8e   : > { %v460_v45 = vpop.permute.xlu0 %459  ;;  %v465_v47 = vpop.permute.xlu1 %464 }
  0x92   : > { %6135 = vmatmul.mubr.msk.bf16.gmra.mxu0 %vm617_vm1, %v6536_v53  ;;  %v390_v50 = vpop.permute.xlu0 %389 }
  0x93   : > { %1843 = vmatprep.mubr.bf16.mxu0 %v8816_v0  ;;  %v470_v52 = vpop.permute.xlu1 %469 }
  0x96   : > { %v395_v56 = vpop.permute.xlu0 %394 }
  0x97   : > { %v475_v60 = vpop.permute.xlu1 %474 }
  0x9a   : > { %v7173_v63 = vpop.permute.xlu0 %399  ;;  %1844 = vmatmul.mubr.bf16.vlgmr.msra.gmra.mxu0 %v1635_v13 }
  0x9b   : > { %v7177_v3 = vpop.permute.xlu1 %479  ;;  %1853 = vmatprep.mubr.bf16.mxu0 %v8816_v0 }
  0x9e   : > { %v7183_v11 = vpop.permute.xlu0 %404 }
  0x9f   : > { %v7187_v15 = vpop.permute.xlu1 %484 }
  0xa2   : > { %v7193_v28 = vpop.permute.xlu0 %409 }
  0xda   : > { %v7015_v54 = vpop.f32.mrf.mxu0 }
  0xdb   : > { %v708_v18 = vadd.f32 %v7015_v54, %v380_v40  ;;  %v7196_v54 = vpop.permute.xlu1 %489 }
  0xdc   : > { %v7023_v57 = vpop.f32.mrf.mxu0 }
  0xdd   : > { %v710_v24 = vadd.f32 %v7023_v57, %v380_v40  ;;  %v6587_v57 = vld [vmem:[%s8813_s3 + $0x174] ss:$8 sps:$4 sm:$0xff]  }
  0xde   : > { %v7028_v59 = vpop.f32.mrf.mxu0  ;;  %2340 = vmatprep.subr.bf16.mxu1 %v6587_v57 }
  0xdf   : > { %v712_v31 = vadd.f32 %v7028_v59, %v385_v42  ;;  %2341 = vmatpush1.bf16.msra.mxu1 %v6585_v37 }
  0xe0   : > { %v7045_v2 = vpop.f32.mrf.mxu0 }
  0xe1   : > { %v714_v39 = vadd.f32 %v7045_v2, %v385_v42  ;;  %v495_v2 = vpop.permute.xlu1 %494 }
  0xe2   : > { %v7050_v4 = vpop.f32.mrf.mxu0 }
  0xe3   : > { %v718_v7 = vadd.f32 %v7050_v4, %v390_v50 }
  0xe4   : > { %v7061_v8 = vpop.f32.mrf.mxu0 }
  0xe6   : > { %v7068_v10 = vpop.f32.mrf.mxu0 }
  0xe8   : > { %v7081_v14 = vpop.f32.mrf.mxu0 }
  0xea   : > { %v7087_v17 = vpop.f32.mrf.mxu0 }
  0xec   : > { %v7099_v21 = vpop.f32.mrf.mxu0 }
  0xed   : > { %v730_v37 = vadd.f32 %v7099_v21, %v7173_v63  ;;  %v6590_v21 = vld [vmem:[%s8813_s3 + $0x164] ss:$8 sps:$4 sm:$0xff]  }
  0xee   : > { %v7104_v23 = vpop.f32.mrf.mxu0  ;;  %2342 = vmatprep.subr.bf16.mxu1 %v6590_v21 }
  0xf0   : > { %v7115_v27 = vpop.f32.mrf.mxu0 }
  0xf2   : > { %v7120_v29 = vpop.f32.mrf.mxu0 }
  0xf4   : > { %v7131_v33 = vpop.f32.mrf.mxu0 }
  0xf6   : > { %v7136_v35 = vpop.f32.mrf.mxu0 }
  0xf8   : > { %v7144_v38 = vpop.f32.mrf.mxu0 }
  0xfa   : > { %v7149_v41 = vpop.f32.mrf.mxu0 }
  0xfc   : > { %v7151_v43 = vpop.f32.mrf.mxu0 }
  0xfe   : > { %v7153_v44 = vpop.f32.mrf.mxu0 }
 0x100   : > { %v7155_v46 = vpop.f32.mrf.mxu0 }
 0x102   : > { %v7157_v48 = vpop.f32.mrf.mxu0 }
 0x104   : > { %v7159_v49 = vpop.f32.mrf.mxu0 }
 0x106   : > { %v7161_v51 = vpop.f32.mrf.mxu0 }
 0x108   : > { %v7163_v53 = vpop.f32.mrf.mxu0 }
 0x10a   : > { %v7165_v55 = vpop.f32.mrf.mxu0 }
 0x10c   : > { %v7167_v58 = vpop.f32.mrf.mxu0 }
 0x10e   : > { %v7169_v61 = vpop.f32.mrf.mxu0 }
 0x110   : > { %v7171_v62 = vpop.f32.mrf.mxu0 }
 0x112   : > { %v7175_v1 = vpop.f32.mrf.mxu0 }
 0x114   : > { %v7179_v5 = vpop.f32.mrf.mxu0 }
 0x116   : > { %v7181_v6 = vpop.f32.mrf.mxu0 }
 0x118   : > { %v7185_v12 = vpop.f32.mrf.mxu0 }
 0x11a   : > { %v787_v16 = vpop.f32.mrf.mxu0 }
 0x11b   : > { %v788_v19 = vadd.f32 %v787_v16, %v460_v45  ;;  %v7206_v16 = vpop.permute.xlu0 %414 }
 0x11c   : > { %v789_v20 = vpop.f32.mrf.mxu0 }
 0x11d   : > { %v866_v25 = vmax.f32 %v708_v18, %v788_v19  ;;  %v790_v26 = vadd.f32 %v789_v20, %v460_v45  ;;  %v720_v19 = vadd.f32 %v7061_v8, %v390_v50  ;;  %v728_v8 = vadd.f32 %v7087_v17, %v7173_v63 }
 0x11e   : > { %v791_v30 = vpop.f32.mrf.mxu0  ;;  %v734_v63 = vadd.f32 %v7115_v27, %v7183_v11 }
 0x11f   : > { %v867_v32 = vmax.f32 %v710_v24, %v790_v26  ;;  %v792_v34 = vadd.f32 %v791_v30, %v465_v47  ;;  %898 = vxpose.xlu0.b32.start [1/16] %v866_v25, 128  ;;  %v724_v26 = vadd.f32 %v7081_v14, %v395_v56 }
 0x120   : > { %v793_v36 = vpop.f32.mrf.mxu0 }
 0x121   : > { %v868_v40 = vmax.f32 %v712_v31, %v792_v34  ;;  %v794_v45 = vadd.f32 %v793_v36, %v465_v47  ;;  %930 = vxpose.xlu1.b32.start [1/16] %v867_v32, 128  ;;  %v722_v47 = vadd.f32 %v7068_v10, %v395_v56  ;;  %v420_v32 = vpop.permute.xlu0 %419  ;;  %v500_v36 = vpop.permute.xlu1 %499 }
 0x122   : > { %v797_v59 = vpop.f32.mrf.mxu0 }
 0x123   : > { %v869_v9 = vmax.f32 %v714_v39, %v794_v45  ;;  %v798_v13 = vadd.f32 %v797_v59, %v470_v52  ;;  %899 = vxpose.xlu0.b32.cont [2/16] %v868_v40, 128  ;;  %v6588_v59 = vld [vmem:[%s8813_s3 + $0x160] ss:$8 sps:$4 sm:$0xff]  }
 0x124   : > { %v799_v18 = vpop.f32.mrf.mxu0  ;;  %2343 = vmatpush1.bf16.msra.mxu1 %v6588_v59 }
 0x125   : > { %v870_v20 = vmax.f32 %v718_v7, %v798_v13  ;;  %v800_v22 = vadd.f32 %v799_v18, %v470_v52  ;;  %931 = vxpose.xlu1.b32.cont [2/16] %v869_v9, 128  ;;  %v425_v40 = vpop.permute.xlu0 %424  ;;  %v505_v7 = vpop.permute.xlu1 %504  ;;  %v738_v13 = vadd.f32 %v7120_v29, %v7193_v28 }
 0x126   : > { %v801_v42 = vpop.f32.mrf.mxu0 }
 0x127   : > { %v871_v24 = vmax.f32 %v720_v19, %v800_v22  ;;  %v802_v25 = vadd.f32 %v801_v42, %v475_v60  ;;  %900 = vxpose.xlu0.b32.cont [3/16] %v870_v20, 128  ;;  %v740_v22 = vadd.f32 %v7131_v33, %v7193_v28  ;;  %v748_v28 = vadd.f32 %v7149_v41, %v420_v32  ;;  %v6591_v41 = vld [vmem:[%s8813_s3 + $0x150] ss:$8 sps:$4 sm:$0xff]  }
 0x128   : > { %v803_v4 = vpop.f32.mrf.mxu0 }
 0x129   : > { %v872_v30 = vmax.f32 %v722_v47, %v802_v25  ;;  %v804_v31 = vadd.f32 %v803_v4, %v475_v60  ;;  %932 = vxpose.xlu1.b32.cont [3/16] %v871_v24, 128  ;;  %v732_v60 = vadd.f32 %v7104_v23, %v7183_v11  ;;  %v742_v47 = vadd.f32 %v7136_v35, %v7206_v16  ;;  %v510_v25 = vpop.permute.xlu1 %509 }
 0x12a   : > { %v807_v34 = vpop.f32.mrf.mxu0  ;;  %v750_v35 = vadd.f32 %v7151_v43, %v420_v32  ;;  %v754_v43 = vadd.f32 %v7155_v46, %v425_v40 }
 0x12b   : > { %v873_v50 = vmax.f32 %v724_v26, %v804_v31  ;;  %v808_v52 = vadd.f32 %v807_v34, %v7177_v3  ;;  %901 = vxpose.xlu0.b32.cont [4/16] %v872_v30, 128  ;;  %v744_v26 = vadd.f32 %v7144_v38, %v7206_v16  ;;  %v752_v38 = vadd.f32 %v7153_v44, %v425_v40 }
 0x12c   : > { %v809_v10 = vpop.f32.mrf.mxu0 }
 0x12d   : > { %v874_v57 = vmax.f32 %v728_v8, %v808_v52  ;;  %v810_v14 = vadd.f32 %v809_v10, %v7177_v3  ;;  %933 = vxpose.xlu1.b32.cont [4/16] %v873_v50, 128 }
 0x12e   : > { %v811_v56 = vpop.f32.mrf.mxu0 }
 0x12f   : > { %v875_v39 = vmax.f32 %v730_v37, %v810_v14  ;;  %v812_v17 = vadd.f32 %v811_v56, %v7187_v15  ;;  %902 = vxpose.xlu0.b32.cont [5/16] %v874_v57, 128  ;;  %v515_v37 = vpop.permute.xlu1 %514  ;;  %v6593_v56 = vld [vmem:[%s8813_s3 + $0x154] ss:$8 sps:$4 sm:$0xff]  }
 0x130   : > { %v813_v45 = vpop.f32.mrf.mxu0  ;;  %2344 = vmatprep.subr.bf16.mxu1 %v6593_v56  ;;  %v6599_v56 = vld [vmem:[%s8813_s3 + $0x1f4] ss:$8 sps:$4 sm:$0xff]  }
 0x131   : > { %v876_v3 = vmax.f32 %v732_v60, %v812_v17  ;;  %v814_v23 = vadd.f32 %v813_v45, %v7187_v15  ;;  %934 = vxpose.xlu1.b32.cont [5/16] %v875_v39, 128  ;;  %v430_v15 = vpop.permute.xlu0 %429  ;;  %2345 = vmatpush1.bf16.msra.mxu1 %v6591_v41 }
 0x132   : > { %v817_v9 = vpop.f32.mrf.mxu0  ;;  %v758_v44 = vadd.f32 %v7157_v48, %v430_v15  ;;  %2872 = vmatprep.subr.bf16.mxu0 %v6599_v56 }
 0x133   : > { %v877_v18 = vmax.f32 %v734_v63, %v814_v23  ;;  %v818_v19 = vadd.f32 %v817_v9, %v7196_v54  ;;  %903 = vxpose.xlu0.b32.cont [6/16] %v876_v3, 128  ;;  %v520_v59 = vpop.permute.xlu1 %519  ;;  %v760_v63 = vadd.f32 %v7159_v49, %v430_v15 }
 0x134   : > { %v819_v20 = vpop.f32.mrf.mxu0 }
 0x135   : > { %v878_v27 = vmax.f32 %v738_v13, %v818_v19  ;;  %v820_v11 = vadd.f32 %v819_v20, %v7196_v54  ;;  %935 = vxpose.xlu1.b32.cont [6/16] %v877_v18, 128  ;;  %v435_v8 = vpop.permute.xlu0 %434 }
 0x136   : > { %v821_v42 = vpop.f32.mrf.mxu0  ;;  %v762_v40 = vadd.f32 %v7161_v51, %v435_v8  ;;  %v764_v48 = vadd.f32 %v7163_v53, %v435_v8 }
 0x137   : > { %v879_v24 = vmax.f32 %v740_v22, %v820_v11  ;;  %v822_v29 = vadd.f32 %v821_v42, %v495_v2  ;;  %904 = vxpose.xlu0.b32.cont [7/16] %v878_v27, 128  ;;  %v525_v22 = vpop.permute.xlu1 %524 }
 0x138   : > { %v823_v4 = vpop.f32.mrf.mxu0 }
 0x139   : > { %v880_v30 = vmax.f32 %v742_v47, %v822_v29  ;;  %v824_v31 = vadd.f32 %v823_v4, %v495_v2  ;;  %936 = vxpose.xlu1.b32.cont [7/16] %v879_v24, 128  ;;  %v440_v60 = vpop.permute.xlu0 %439 }
 0x13a   : > { %v827_v33 = vpop.f32.mrf.mxu0  ;;  %v768_v49 = vadd.f32 %v7165_v55, %v440_v60  ;;  %v770_v51 = vadd.f32 %v7167_v58, %v440_v60  ;;  %v6594_v55 = vld [vmem:[%s8813_s3 + $0x140] ss:$8 sps:$4 sm:$0xff]   ;;  %v6596_v58 = vld [vmem:[%s8813_s3 + $0x144] ss:$8 sps:$4 sm:$0xff]   ;;  %v6602_v60 = vld [vmem:[%s8813_s3 + $0x134] ss:$8 sps:$4 sm:$0xff]  }
 0x13b   : > { %v881_v54 = vmax.f32 %v744_v26, %v824_v31  ;;  %v828_v34 = vadd.f32 %v827_v33, %v500_v36  ;;  %905 = vxpose.xlu0.b32.cont [8/16] %v880_v30, 128  ;;  %v530_v30 = vpop.permute.xlu1 %529  ;;  %2346 = vmatprep.subr.bf16.mxu1 %v6596_v58 }
 0x13c   : > { %v829_v50 = vpop.f32.mrf.mxu0  ;;  %2347 = vmatpush1.bf16.msra.mxu1 %v6594_v55 }
 0x13d   : > { %v882_v52 = vmax.f32 %v748_v28, %v828_v34  ;;  %v830_v10 = vadd.f32 %v829_v50, %v500_v36  ;;  %937 = vxpose.xlu1.b32.cont [8/16] %v881_v54, 128  ;;  %v445_v13 = vpop.permute.xlu0 %444  ;;  %2348 = vmatprep.subr.bf16.mxu1 %v6602_v60 }
 0x13e   : > { %v831_v57 = vpop.f32.mrf.mxu0  ;;  %v772_v53 = vadd.f32 %v7169_v61, %v445_v13  ;;  %v774_v33 = vadd.f32 %v7171_v62, %v445_v13  ;;  %v6626_v13 = vld [vmem:[%s8813_s3 + $0x1a4] ss:$8 sps:$4 sm:$0xff]  }
 0x13f   : > { %v883_v16 = vmax.f32 %v750_v35, %v830_v10  ;;  %v832_v2 = vadd.f32 %v831_v57, %v505_v7  ;;  %906 = vxpose.xlu0.b32.cont [9/16] %v882_v52, 128 }
 0x140   : > { %v833_v14 = vpop.f32.mrf.mxu0 }
 0x141   : > { %v884_v32 = vmax.f32 %v752_v38, %v832_v2  ;;  %v834_v36 = vadd.f32 %v833_v14, %v505_v7  ;;  %938 = vxpose.xlu1.b32.cont [9/16] %v883_v16, 128  ;;  %v450_v29 = vpop.permute.xlu0 %449  ;;  %v535_v38 = vpop.permute.xlu1 %534 }
 0x142   : > { %v837_v39 = vpop.f32.mrf.mxu0  ;;  %v778_v61 = vadd.f32 %v7175_v1, %v450_v29  ;;  %v780_v10 = vadd.f32 %v7179_v5, %v450_v29  ;;  %v6597_v1 = vld [vmem:[%s8813_s3 + $0x1f0] ss:$8 sps:$4 sm:$0xff]  }
 0x143   : > { %v885_v17 = vmax.f32 %v754_v43, %v834_v36  ;;  %v838_v45 = vadd.f32 %v837_v39, %v510_v25  ;;  %907 = vxpose.xlu0.b32.cont [10/16] %v884_v32, 128  ;;  %2873 = vmatpush1.bf16.msra.mxu0 %v6597_v1  ;;  %v6605_v39 = vld [vmem:[%s8813_s3 + $0x1e4] ss:$8 sps:$4 sm:$0xff]  }
 0x144   : > { %v839_v21 = vpop.f32.mrf.mxu0  ;;  %2874 = vmatprep.subr.bf16.mxu0 %v6605_v39 }
 0x145   : > { %v886_v3 = vmax.f32 %v758_v44, %v838_v45  ;;  %v840_v23 = vadd.f32 %v839_v21, %v510_v25  ;;  %939 = vxpose.xlu1.b32.cont [10/16] %v885_v17, 128  ;;  %v455_v35 = vpop.permute.xlu0 %454  ;;  %v6606_v44 = vld [vmem:[%s8813_s3 + $0x120] ss:$8 sps:$4 sm:$0xff]   ;;  %v6608_v17 = vld [vmem:[%s8813_s3 + $0x124] ss:$8 sps:$4 sm:$0xff]   ;;  %v6609_v45 = vld [vmem:[%s8813_s3 + $0x1d0] ss:$8 sps:$4 sm:$0xff]  }
 0x146   : > { %v841_v46 = vpop.f32.mrf.mxu0  ;;  %v782_v16 = vadd.f32 %v7181_v6, %v455_v35  ;;  %v784_v5 = vadd.f32 %v7185_v12, %v455_v35  ;;  %v6600_v6 = vld [vmem:[%s8813_s3 + $0x130] ss:$8 sps:$4 sm:$0xff]   ;;  %v6603_v12 = vld [vmem:[%s8813_s3 + $0x1e0] ss:$8 sps:$4 sm:$0xff]  }
 0x147   : > { %v887_v7 = vmax.f32 %v760_v63, %v840_v23  ;;  %v842_v9 = vadd.f32 %v841_v46, %v515_v37  ;;  %908 = vxpose.xlu0.b32.cont [11/16] %v886_v3, 128  ;;  %2349 = vmatpush1.bf16.msra.mxu1 %v6600_v6  ;;  %v6612_v21 = vld [vmem:[%s8813_s3 + $0x110] ss:$8 sps:$4 sm:$0xff]   ;;  %v6614_v63 = vld [vmem:[%s8813_s3 + $0x114] ss:$8 sps:$4 sm:$0xff]   ;;  %v6615_v3 = vld [vmem:[%s8813_s3 + $0x1c0] ss:$8 sps:$4 sm:$0xff]  }
 0x148   : > { %v843_v18 = vpop.f32.mrf.mxu0  ;;  %2875 = vmatpush1.bf16.msra.mxu0 %v6603_v12  ;;  %2350 = vmatprep.subr.bf16.mxu1 %v6608_v17  ;;  %v6617_v23 = vld [vmem:[%s8813_s3 + $0x1c4] ss:$8 sps:$4 sm:$0xff]   ;;  %v6623_v46 = vld [vmem:[%s8813_s3 + $0x1b4] ss:$8 sps:$4 sm:$0xff]  }
 0x149   : > { %v888_v19 = vmax.f32 %v762_v40, %v842_v9  ;;  %v844_v20 = vadd.f32 %v843_v18, %v515_v37  ;;  %940 = vxpose.xlu1.b32.cont [11/16] %v887_v7, 128  ;;  %v6621_v40 = vld [vmem:[%s8813_s3 + $0x1b0] ss:$8 sps:$4 sm:$0xff]   ;;  %v6618_v7 = vld [vmem:[%s8813_s3 + $0x100] ss:$8 sps:$4 sm:$0xff]   ;;  %v6620_v9 = vld [vmem:[%s8813_s3 + $0x104] ss:$8 sps:$4 sm:$0xff]  }
 0x14a   : > { %v847_v27 = vpop.f32.mrf.mxu0  ;;  %v6624_v18 = vld [vmem:[%s8813_s3 + $0x1a0] ss:$8 sps:$4 sm:$0xff]  }
 0x14b   : > { %v889_v11 = vmax.f32 %v764_v48, %v844_v20  ;;  %v848_v15 = vadd.f32 %v847_v27, %v520_v59  ;;  %909 = vxpose.xlu0.b32.cont [12/16] %v888_v19, 128  ;;  %2351 = vmatpush1.bf16.msra.mxu1 %v6606_v44  ;;  %v6629_v48 = vld [vmem:[%s8813_s3 + $0x194] ss:$8 sps:$4 sm:$0xff]   ;;  %v6627_v19 = vld [vmem:[%s8813_s3 + $0x190] ss:$8 sps:$4 sm:$0xff]   ;;  %v6632_v20 = vld [vmem:[%s8813_s3 + $0x184] ss:$8 sps:$4 sm:$0xff]  }
 0x14c   : > { %v849_v42 = vpop.f32.mrf.mxu0  ;;  %2352 = vmatprep.subr.bf16.mxu1 %v6614_v63 }
 0x14d   : > { %v890_v47 = vmax.f32 %v768_v49, %v848_v15  ;;  %v850_v24 = vadd.f32 %v849_v42, %v520_v59  ;;  %941 = vxpose.xlu1.b32.cont [12/16] %v889_v11, 128  ;;  %v6611_v59 = vld [vmem:[%s8813_s3 + $0x1d4] ss:$8 sps:$4 sm:$0xff]  }
 0x14e   : > { %v851_v25 = vpop.f32.mrf.mxu0  ;;  %2876 = vmatprep.subr.bf16.mxu0 %v6611_v59  ;;  %v6635_v49 = vld [vmem:[%s8813_s3 + $0x274] ss:$8 sps:$4 sm:$0xff]  }
 0x14f   : > { %v891_v4 = vmax.f32 %v770_v51, %v850_v24  ;;  %v852_v26 = vadd.f32 %v851_v25, %v525_v22  ;;  %910 = vxpose.xlu0.b32.cont [13/16] %v890_v47, 128  ;;  %2877 = vmatpush1.bf16.msra.mxu0 %v6609_v45 }
 0x150   : > { %v853_v31 = vpop.f32.mrf.mxu0  ;;  %2353 = vmatpush1.bf16.msra.mxu1 %v6612_v21  ;;  %2878 = vmatprep.subr.bf16.mxu0 %v6617_v23 }
 0x151   : > { %v892_v28 = vmax.f32 %v772_v53, %v852_v26  ;;  %v854_v54 = vadd.f32 %v853_v31, %v525_v22  ;;  %942 = vxpose.xlu1.b32.cont [13/16] %v891_v4, 128  ;;  %2354 = vmatprep.subr.bf16.mxu1 %v6620_v9  ;;  %v6630_v22 = vld [vmem:[%s8813_s3 + $0x180] ss:$8 sps:$4 sm:$0xff]  }
 0x152   : > { %v857_v34 = vpop.f32.mrf.mxu0 }
 0x153   : > { %v893_v8 = vmax.f32 %v774_v33, %v854_v54  ;;  %v858_v50 = vadd.f32 %v857_v34, %v530_v30  ;;  %911 = vxpose.xlu0.b32.cont [14/16] %v892_v28, 128  ;;  %2879 = vmatpush1.bf16.msra.mxu0 %v6615_v3 }
 0x154   : > { %v859_v52 = vpop.f32.mrf.mxu0  ;;  %2880 = vmatprep.subr.bf16.mxu0 %v6623_v46  ;;  %2355 = vmatpush1.bf16.msra.mxu1 %v6618_v7  ;;  %v6647_v7 = vld [vmem:[%s8813_s3 + $0x2f4] ss:$8 sps:$4 sm:$0xff]  }
 0x155   : > { %v894_v37 = vmax.f32 %v778_v61, %v858_v50  ;;  %v860_v57 = vadd.f32 %v859_v52, %v530_v30  ;;  %943 = vxpose.xlu1.b32.cont [14/16] %v893_v8, 128  ;;  %3401 = vmatprep.subr.bf16.mxu1 %v6635_v49  ;;  %v1316_v49 = vpop.f32.mrf.mxu1 }
 0x156   : > { %v861_v62 = vpop.f32.mrf.mxu0 }
 0x157   : > { %v895_v2 = vmax.f32 %v780_v10, %v860_v57  ;;  %v862_v14 = vadd.f32 %v861_v62, %v535_v38  ;;  %912 = vxpose.xlu0.b32.cont [15/16] %v894_v37, 128  ;;  %2881 = vmatpush1.bf16.msra.mxu0 %v6621_v40 }
 0x158   : > { %v863_v41 = vpop.f32.mrf.mxu0  ;;  %2882 = vmatprep.subr.bf16.mxu0 %v6626_v13 }
 0x159   : > { %v896_v43 = vmax.f32 %v782_v16, %v862_v14  ;;  %v864_v32 = vadd.f32 %v863_v41, %v535_v38  ;;  %944 = vxpose.xlu1.b32.cont [15/16] %v895_v2, 128 }
 0x15b   : > { %v897_v36 = vmax.f32 %v784_v5, %v864_v32  ;;  %913 = vxpose.xlu0.b32.end [16/16] %v896_v43, 128  ;;  %2883 = vmatpush1.bf16.msra.mxu0 %v6624_v18 }
 0x15c   : > { %2884 = vmatprep.subr.bf16.mxu0 %v6629_v48 }
 0x15d   : > { %945 = vxpose.xlu1.b32.end [16/16] %v897_v36, 128 }
 0x15f   : > { %2885 = vmatpush1.bf16.msra.mxu0 %v6627_v19 }
 0x160   : > { %2886 = vmatprep.subr.bf16.mxu0 %v6632_v20  ;;  %v997_v20 = vlaneseq }
 0x163   : > { %2887 = vmatpush1.bf16.msra.mxu0 %v6630_v22  ;;  %v1845_v22 = vpop.f32.mrf.mxu0 }
 0x164   : > { %3930 = vmatprep.subr.bf16.mxu0 %v6647_v7 }
 0x19b   : > { %v914_v27 = vpop.trf.xlu0 }
 0x19c   : > { %963 = vst [vmem:[#allocation2 + $0x19] sm:$0xff] %v914_v27 }
 0x19d   : > { %v7342_v11 = vpop.trf.xlu1 }
 0x19e   : > { %979 = vst [vmem:[#allocation2 + $0xd9] sm:$0xff] %v7342_v11 }
 0x19f   : > { %v915_v15 = vpop.trf.xlu0 }
 0x1a0   : > { %964 = vst [vmem:[#allocation2 + $0x21] sm:$0xff] %v915_v15  ;;  %v1636_v42 = vpack.c.bf16 %v915_v15, %v914_v27  ;;  %v998_v27 = vshrl.u32 %v997_v20, 7  ;;  %v995_v15 = vld [vmem:[%s8814_s4] sm:$0x3] }
 0x1a1   : > { %v7345_v51 = vpop.trf.xlu1  ;;  %v6651_v20 = vld [vmem:[%s8813_s3 + $0x2e0] ss:$8 sps:$4 sm:$0xff]  }
 0x1a2   : > { %1854 = vmatmul.mubr.bf16.gmra.mxu0 %v1636_v42  ;;  %980 = vst [vmem:[#allocation2 + $0xe1] sm:$0xff] %v7345_v51  ;;  %v999_v42 = vsub.s32 0, %v998_v27 }
 0x1a3   : > { %v916_v47 = vpop.trf.xlu0  ;;  %1863 = vmatprep.mubr.bf16.mxu0 %v8816_v0  ;;  %v1076_v25 = vld [vmem:[#allocation2 + $0x18] sm:$0xff] }
 0x1a4   : > { %965 = vst [vmem:[#allocation2 + $0x31] sm:$0xff] %v916_v47 }
 0x1a5   : > { %v7349_v24 = vpop.trf.xlu1 }
 0x1a6   : > { %981 = vst [vmem:[#allocation2 + $0xf1] sm:$0xff] %v7349_v24 }
 0x1a7   : > { %v917_v29 = vpop.trf.xlu0  ;;  %v1077_v53 = vld [vmem:[#allocation2 + $0x20] sm:$0xff] }
 0x1a8   : > { %966 = vst [vmem:[#allocation2 + $0x39] sm:$0xff] %v917_v29  ;;  %v7352_v4 = vpack.c.bf16 %v1077_v53, %v1076_v25  ;;  %v1637_v26 = vpack.c.bf16 %v917_v29, %v916_v47  ;;  %v1003_v47 = vsub.s32 1, %v998_v27  ;;  %v1318_v29 = vpop.f32.mrf.mxu1 }
 0x1a9   : > { %v7354_v30 = vpop.trf.xlu1 }
 0x1aa   : > { %1325 = vmatmul.mubr.bf16.gmra.mxu1 %v7352_v4  ;;  %1864 = vmatmul.mubr.bf16.gmra.mxu0 %v1637_v26  ;;  %982 = vst [vmem:[#allocation2 + $0xf9] sm:$0xff] %v7354_v30  ;;  %v1847_v26 = vpop.f32.mrf.mxu0 }
 0x1ab   : > { %v918_v31 = vpop.trf.xlu0  ;;  %1334 = vmatprep.mubr.bf16.mxu1 %v8816_v0  ;;  %1873 = vmatprep.mubr.bf16.mxu0 %v8816_v0  ;;  %v1078_v33 = vld [vmem:[#allocation2 + $0x30] sm:$0xff] }
 0x1ac   : > { %967 = vst [vmem:[#allocation2 + $0x49] sm:$0xff] %v918_v31 }
 0x1ad   : > { %v7360_v55 = vpop.trf.xlu1 }
 0x1ae   : > { %983 = vst [vmem:[#allocation2 + $0x109] sm:$0xff] %v7360_v55 }
 0x1af   : > { %v919_v58 = vpop.trf.xlu0  ;;  %v1079_v28 = vld [vmem:[#allocation2 + $0x38] sm:$0xff] }
 0x1b0   : > { %968 = vst [vmem:[#allocation2 + $0x51] sm:$0xff] %v919_v58  ;;  %v7363_v54 = vpack.c.bf16 %v1079_v28, %v1078_v33  ;;  %v1638_v34 = vpack.c.bf16 %v919_v58, %v918_v31  ;;  %v1644_v58 = vpack.c.bf16 %v7345_v51, %v7342_v11  ;;  %v7430_v33 = vrot.slane %v995_v15, %v999_v42  ;;  %v6665_v42 = vld [vmem:[%s8813_s3 + $0x2c4] ss:$8 sps:$4 sm:$0xff]  }
 0x1b1   : > { %v7365_v61 = vpop.trf.xlu1  ;;  %v7432_v28 = vrot.slane %v995_v15, %v1003_v47  ;;  %v6657_v15 = vld [vmem:[%s8813_s3 + $0x2d0] ss:$8 sps:$4 sm:$0xff]   ;;  %v6636_v47 = vld [vmem:[%s8813_s3 + $0x260] ss:$8 sps:$4 sm:$0xff]  }
 0x1b2   : > { %1335 = vmatmul.mubr.bf16.gmra.mxu1 %v7363_v54  ;;  %1874 = vmatmul.mubr.bf16.gmra.mxu0 %v1638_v34  ;;  %984 = vst [vmem:[#allocation2 + $0x111] sm:$0xff] %v7365_v61  ;;  %v1320_v34 = vpop.f32.mrf.mxu1 }
 0x1b3   : > { %v920_v8 = vpop.trf.xlu0  ;;  %1344 = vmatprep.mubr.bf16.mxu1 %v8816_v0  ;;  %1883 = vmatprep.mubr.bf16.mxu0 %v8816_v0  ;;  %v1080_v52 = vld [vmem:[#allocation2 + $0x48] sm:$0xff] }
 0x1b4   : > { %969 = vst [vmem:[#allocation2 + $0x61] sm:$0xff] %v920_v8 }
 0x1b5   : > { %v7371_v50 = vpop.trf.xlu1 }
 0x1b6   : > { %985 = vst [vmem:[#allocation2 + $0x121] sm:$0xff] %v7371_v50 }
 0x1b7   : > { %v921_v35 = vpop.trf.xlu0  ;;  %v1081_v10 = vld [vmem:[#allocation2 + $0x50] sm:$0xff] }
 0x1b8   : > { %970 = vst [vmem:[#allocation2 + $0x69] sm:$0xff] %v921_v35  ;;  %v7374_v37 = vpack.c.bf16 %v1081_v10, %v1080_v52  ;;  %v1639_v57 = vpack.c.bf16 %v921_v35, %v920_v8  ;;  %v1475_v8 = vadd.f32 %v1316_v49, %v7430_v33  ;;  %v1476_v35 = vadd.f32 %v1318_v29, %v7432_v28  ;;  %v1849_v10 = vpop.f32.mrf.mxu0  ;;  %v6638_v49 = vld [vmem:[%s8813_s3 + $0x264] ss:$8 sps:$4 sm:$0xff]   ;;  %v6641_v29 = vld [vmem:[%s8813_s3 + $0x254] ss:$8 sps:$4 sm:$0xff]  }
 0x1b9   : > { %v7376_v38 = vpop.trf.xlu1  ;;  %v1477_v52 = vadd.f32 %v1320_v34, %v7430_v33  ;;  %v6671_v34 = vld [vmem:[%s8813_s3 + $0x2b4] ss:$8 sps:$4 sm:$0xff]  }
 0x1ba   : > { %1345 = vmatmul.mubr.bf16.gmra.mxu1 %v7374_v37  ;;  %1884 = vmatmul.mubr.bf16.gmra.mxu0 %v1639_v57  ;;  %986 = vst [vmem:[#allocation2 + $0x129] sm:$0xff] %v7376_v38  ;;  %v7440_v11 = vadd.f32 %v1845_v22, %v1475_v8  ;;  %v7442_v51 = vadd.f32 %v1847_v26, %v1476_v35  ;;  %v6659_v22 = vld [vmem:[%s8813_s3 + $0x2d4] ss:$8 sps:$4 sm:$0xff]   ;;  %v6644_v8 = vld [vmem:[%s8813_s3 + $0x244] ss:$8 sps:$4 sm:$0xff]  }
 0x1bb   : > { %v922_v62 = vpop.trf.xlu0  ;;  %1354 = vmatprep.mubr.bf16.mxu1 %v8816_v0  ;;  %1893 = vmatprep.mubr.bf16.mxu0 %v8816_v0  ;;  %v1082_v14 = vld [vmem:[#allocation2 + $0x60] sm:$0xff]  ;;  %v7444_v57 = vadd.f32 %v1849_v10, %v1477_v52  ;;  %v6669_v35 = vld [vmem:[%s8813_s3 + $0x2b0] ss:$8 sps:$4 sm:$0xff]  }
 0x1bc   : > { %971 = vst [vmem:[#allocation2 + $0x79] sm:$0xff] %v922_v62  ;;  %v6674_v52 = vld [vmem:[%s8813_s3 + $0x2a4] ss:$8 sps:$4 sm:$0xff]   ;;  %v2136_v10 = vld [vmem:[#allocation2 + $0x32] sm:$0xff] }
 0x1bd   : > { %v7382_v16 = vpop.trf.xlu1 }
 0x1be   : > { %987 = vst [vmem:[#allocation2 + $0x139] sm:$0xff] %v7382_v16 }
 0x1bf   : > { %v923_v2 = vpop.trf.xlu0  ;;  %v1083_v41 = vld [vmem:[#allocation2 + $0x68] sm:$0xff] }
 0x1c0   : > { %972 = vst [vmem:[#allocation2 + $0x81] sm:$0xff] %v923_v2  ;;  %v7385_v1 = vpack.c.bf16 %v1083_v41, %v1082_v14  ;;  %v1640_v56 = vpack.c.bf16 %v923_v2, %v922_v62  ;;  %v1092_v62 = vld [vmem:[#allocation2 + $0xd8] sm:$0xff]  ;;  %v1093_v2 = vld [vmem:[#allocation2 + $0xe0] sm:$0xff]  ;;  %v1645_v41 = vpack.c.bf16 %v7354_v30, %v7349_v24  ;;  %v1096_v24 = vld [vmem:[#allocation2 + $0x108] sm:$0xff] }
 0x1c1   : > { %v7387_v5 = vpop.trf.xlu1  ;;  %v7446_v14 = vpack.c.bf16 %v1093_v2, %v1092_v62  ;;  %v1097_v30 = vld [vmem:[#allocation2 + $0x110] sm:$0xff]  ;;  %v6642_v62 = vld [vmem:[%s8813_s3 + $0x240] ss:$8 sps:$4 sm:$0xff]  }
 0x1c2   : > { %1355 = vmatmul.mubr.bf16.gmra.mxu1 %v7385_v1  ;;  %1894 = vmatmul.mubr.bf16.gmra.mxu0 %v1640_v56  ;;  %988 = vst [vmem:[#allocation2 + $0x141] sm:$0xff] %v7387_v5  ;;  %v1094_v56 = vld [vmem:[#allocation2 + $0xf0] sm:$0xff]  ;;  %v2137_v2 = vld [vmem:[#allocation2 + $0x3a] sm:$0xff] }
 0x1c3   : > { %v924_v43 = vpop.trf.xlu0  ;;  %1364 = vmatprep.mubr.bf16.mxu1 %v8816_v0  ;;  %1903 = vmatprep.mubr.bf16.mxu0 %v8816_v0  ;;  %v1084_v6 = vld [vmem:[#allocation2 + $0x78] sm:$0xff] }
 0x1c4   : > { %973 = vst [vmem:[#allocation2 + $0x91] sm:$0xff] %v924_v43 }
 0x1c5   : > { %v7393_v32 = vpop.trf.xlu1 }
 0x1c6   : > { %989 = vst [vmem:[#allocation2 + $0x151] sm:$0xff] %v7393_v32 }
 0x1c7   : > { %v925_v36 = vpop.trf.xlu0  ;;  %v1085_v60 = vld [vmem:[#allocation2 + $0x80] sm:$0xff] }
 0x1c8   : > { %974 = vst [vmem:[#allocation2 + $0x99] sm:$0xff] %v925_v36  ;;  %v7396_v12 = vpack.c.bf16 %v1085_v60, %v1084_v6  ;;  %v1641_v39 = vpack.c.bf16 %v925_v36, %v924_v43  ;;  %v1095_v43 = vld [vmem:[#allocation2 + $0xf8] sm:$0xff]  ;;  %v1646_v6 = vpack.c.bf16 %v7365_v61, %v7360_v55  ;;  %v7460_v60 = vpack.c.bf16 %v1097_v30, %v1096_v24  ;;  %v1098_v55 = vld [vmem:[#allocation2 + $0x120] sm:$0xff]  ;;  %v1099_v61 = vld [vmem:[#allocation2 + $0x128] sm:$0xff] }
 0x1c9   : > { %v7398_v44 = vpop.trf.xlu1  ;;  %v7453_v36 = vpack.c.bf16 %v1095_v43, %v1094_v56  ;;  %v7560_v56 = vpack.c.bf16 %v2137_v2, %v2136_v10  ;;  %v6648_v43 = vld [vmem:[%s8813_s3 + $0x230] ss:$8 sps:$4 sm:$0xff]   ;;  %v6656_v24 = vld [vmem:[%s8813_s3 + $0x224] ss:$8 sps:$4 sm:$0xff]  }
 0x1ca   : > { %1365 = vmatmul.mubr.bf16.gmra.mxu1 %v7396_v12  ;;  %1904 = vmatmul.mubr.bf16.gmra.mxu0 %v1641_v39  ;;  %990 = vst [vmem:[#allocation2 + $0x159] sm:$0xff] %v7398_v44  ;;  %v1647_v39 = vpack.c.bf16 %v7376_v38, %v7371_v50  ;;  %v1100_v38 = vld [vmem:[#allocation2 + $0x138] sm:$0xff] }
 0x1cb   : > { %v926_v17 = vpop.trf.xlu0  ;;  %1374 = vmatprep.mubr.bf16.mxu1 %v8816_v0  ;;  %1913 = vmatprep.mubr.bf16.mxu0 %v8816_v0  ;;  %v1086_v21 = vld [vmem:[#allocation2 + $0x90] sm:$0xff]  ;;  %v2153_v2 = vld [vmem:[#allocation2 + $0xfa] sm:$0xff] }
 0x1cc   : > { %975 = vst [vmem:[#allocation2 + $0xa9] sm:$0xff] %v926_v17  ;;  %v6675_v30 = vld [vmem:[%s8813_s3 + $0x290] ss:$8 sps:$4 sm:$0xff]  }
 0x1cd   : > { %v7404_v45 = vpop.trf.xlu1 }
 0x1ce   : > { %991 = vst [vmem:[#allocation2 + $0x169] sm:$0xff] %v7404_v45 }
 0x1cf   : > { %v927_v59 = vpop.trf.xlu0  ;;  %v1087_v63 = vld [vmem:[#allocation2 + $0x98] sm:$0xff] }
 0x1d0   : > { %976 = vst [vmem:[#allocation2 + $0xb1] sm:$0xff] %v927_v59  ;;  %v7407_v3 = vpack.c.bf16 %v1087_v63, %v1086_v21  ;;  %v1642_v23 = vpack.c.bf16 %v927_v59, %v926_v17  ;;  %v7467_v17 = vpack.c.bf16 %v1099_v61, %v1098_v55  ;;  %v1648_v59 = vpack.c.bf16 %v7387_v5, %v7382_v16  ;;  %v1101_v21 = vld [vmem:[#allocation2 + $0x140] sm:$0xff]  ;;  %v1102_v16 = vld [vmem:[#allocation2 + $0x150] sm:$0xff] }
 0x1d1   : > { %v7409_v46 = vpop.trf.xlu1  ;;  %v1103_v5 = vld [vmem:[#allocation2 + $0x158] sm:$0xff]  ;;  %v2138_v55 = vld [vmem:[#allocation2 + $0x4a] sm:$0xff] }
 0x1d2   : > { %1375 = vmatmul.mubr.bf16.gmra.mxu1 %v7407_v3  ;;  %1914 = vmatmul.mubr.bf16.gmra.mxu0 %v1642_v23  ;;  %992 = vst [vmem:[#allocation2 + $0x171] sm:$0xff] %v7409_v46  ;;  %v7474_v23 = vpack.c.bf16 %v1101_v21, %v1100_v38  ;;  %v7481_v7 = vpack.c.bf16 %v1103_v5, %v1102_v16  ;;  %v6654_v61 = vld [vmem:[%s8813_s3 + $0x220] ss:$8 sps:$4 sm:$0xff]   ;;  %v6660_v21 = vld [vmem:[%s8813_s3 + $0x210] ss:$8 sps:$4 sm:$0xff]  }
 0x1d3   : > { %v928_v40 = vpop.trf.xlu0  ;;  %1384 = vmatprep.mubr.bf16.mxu1 %v8816_v0  ;;  %1923 = vmatprep.mubr.bf16.mxu0 %v8816_v0  ;;  %v1088_v13 = vld [vmem:[#allocation2 + $0xa8] sm:$0xff] }
 0x1d4   : > { %977 = vst [vmem:[#allocation2 + $0xc1] sm:$0xff] %v928_v40  ;;  %v2140_v16 = vld [vmem:[#allocation2 + $0x62] sm:$0xff]  ;;  %v2141_v5 = vld [vmem:[#allocation2 + $0x6a] sm:$0xff] }
 0x1d5   : > { %v960_v50 = vpop.trf.xlu1 }
 0x1d6   : > { %993 = vst [vmem:[#allocation2 + $0x181] sm:$0xff] %v960_v50  ;;  %v6678_v50 = vld [vmem:[%s8813_s3 + $0x280] ss:$8 sps:$4 sm:$0xff]  }
 0x1d7   : > { %v929_v9 = vpop.trf.xlu0  ;;  %v1089_v18 = vld [vmem:[#allocation2 + $0xb0] sm:$0xff] }
 0x1d8   : > { %978 = vst [vmem:[#allocation2 + $0xc9] sm:$0xff] %v929_v9  ;;  %v7418_v48 = vpack.c.bf16 %v1089_v18, %v1088_v13  ;;  %v1643_v19 = vpack.c.bf16 %v929_v9, %v928_v40  ;;  %v1649_v40 = vpack.c.bf16 %v7398_v44, %v7393_v32  ;;  %v1650_v9 = vpack.c.bf16 %v7409_v46, %v7404_v45  ;;  %v1104_v32 = vld [vmem:[#allocation2 + $0x168] sm:$0xff]  ;;  %v6645_v18 = vld [vmem:[%s8813_s3 + $0x2f0] ss:$8 sps:$4 sm:$0xff]  }
 0x1d9   : > { %v961_v63 = vpop.trf.xlu1  ;;  %v1105_v44 = vld [vmem:[#allocation2 + $0x170] sm:$0xff]  ;;  %v2132_v45 = vld [vmem:[#allocation2 + $0x2] sm:$0xff] }
 0x1da   : > { %1385 = vmatmul.mubr.bf16.gmra.mxu1 %v7418_v48  ;;  %1924 = vmatmul.mubr.bf16.gmra.mxu0 %v1643_v19  ;;  %994 = vst [vmem:[#allocation2 + $0x189] sm:$0xff] %v961_v63  ;;  %v7488_v13 = vpack.c.bf16 %v1105_v44, %v1104_v32  ;;  %v6653_v19 = vld [vmem:[%s8813_s3 + $0x2e4] ss:$8 sps:$4 sm:$0xff]   ;;  %v7608_v32 = vpack.c.bf16 %v2141_v5, %v2140_v16 }
 0x1db   : > { %1394 = vmatprep.mubr.bf16.mxu1 %v8816_v0  ;;  %1933 = vmatprep.mubr.bf16.mxu0 %v8816_v0  ;;  %v1090_v25 = vld [vmem:[#allocation2 + $0xc0] sm:$0xff]  ;;  %v2133_v46 = vld [vmem:[#allocation2 + $0xa] sm:$0xff] }
 0x1dc   : > { %v2164_v27 = vpack.c.bf16 %v2133_v46, %v2132_v45  ;;  %v6668_v63 = vld [vmem:[%s8813_s3 + $0x204] ss:$8 sps:$4 sm:$0xff]   ;;  %v2145_v45 = vld [vmem:[#allocation2 + $0x9a] sm:$0xff] }
 0x1dd   : > { %v2143_v44 = vld [vmem:[#allocation2 + $0x82] sm:$0xff]  ;;  %v2154_v5 = vld [vmem:[#allocation2 + $0x10a] sm:$0xff] }
 0x1df   : > { %v1091_v53 = vld [vmem:[#allocation2 + $0xc8] sm:$0xff] }
 0x1e0   : > { %v7426_v31 = vpack.c.bf16 %v1091_v53, %v1090_v25  ;;  %v2134_v25 = vld [vmem:[#allocation2 + $0x1a] sm:$0xff] }
 0x1e1   : > { %v6663_v53 = vld [vmem:[%s8813_s3 + $0x2c0] ss:$8 sps:$4 sm:$0xff]  }
 0x1e2   : > { %1395 = vmatmul.mubr.bf16.gmra.mxu1 %v7426_v31  ;;  %1934 = vmatmul.mubr.bf16.gmra.mxu0 %v1644_v58  ;;  %v6639_v58 = vld [vmem:[%s8813_s3 + $0x250] ss:$8 sps:$4 sm:$0xff]  }
 0x1e3   : > { %1404 = vmatprep.mubr.bf16.mxu1 %v8816_v0  ;;  %1943 = vmatprep.mubr.bf16.mxu0 %v8816_v0 }
 0x1ea   : > { %1405 = vmatmul.mubr.bf16.gmra.mxu1 %v7446_v14  ;;  %1944 = vmatmul.mubr.bf16.gmra.mxu0 %v1645_v41  ;;  %v6672_v41 = vld [vmem:[%s8813_s3 + $0x2a0] ss:$8 sps:$4 sm:$0xff]  }
 0x1eb   : > { %1414 = vmatprep.mubr.bf16.mxu1 %v8816_v0  ;;  %1953 = vmatprep.mubr.bf16.mxu0 %v8816_v0 }
 0x1f2   : > { %1415 = vmatmul.mubr.bf16.gmra.mxu1 %v7453_v36  ;;  %1954 = vmatmul.mubr.bf16.gmra.mxu0 %v1646_v6  ;;  %v6677_v6 = vld [vmem:[%s8813_s3 + $0x294] ss:$8 sps:$4 sm:$0xff]  }
 0x1f3   : > { %1424 = vmatprep.mubr.bf16.mxu1 %v8816_v0  ;;  %1963 = vmatprep.mubr.bf16.mxu0 %v8816_v0 }
 0x1fa   : > { %1425 = vmatmul.mubr.bf16.gmra.mxu1 %v7460_v60  ;;  %1964 = vmatmul.mubr.bf16.gmra.mxu0 %v1647_v39  ;;  %v6680_v39 = vld [vmem:[%s8813_s3 + $0x284] ss:$8 sps:$4 sm:$0xff]  }
 0x1fb   : > { %1434 = vmatprep.mubr.bf16.mxu1 %v8816_v0  ;;  %1973 = vmatprep.mubr.bf16.mxu0 %v8816_v0 }
 0x202   : > { %1435 = vmatmul.mubr.bf16.gmra.mxu1 %v7467_v17  ;;  %1974 = vmatmul.mubr.bf16.gmra.mxu0 %v1648_v59  ;;  %v2139_v59 = vld [vmem:[#allocation2 + $0x52] sm:$0xff] }
 0x203   : > { %1444 = vmatprep.mubr.bf16.mxu1 %v8816_v0  ;;  %1983 = vmatprep.mubr.bf16.mxu0 %v8816_v0  ;;  %v7590_v38 = vpack.c.bf16 %v2139_v59, %v2138_v55 }
 0x20a   : > { %1445 = vmatmul.mubr.bf16.gmra.mxu1 %v7474_v23  ;;  %1984 = vmatmul.mubr.bf16.gmra.mxu0 %v1649_v40  ;;  %v6666_v40 = vld [vmem:[%s8813_s3 + $0x200] ss:$8 sps:$4 sm:$0xff]  }
 0x20b   : > { %1454 = vmatprep.mubr.bf16.mxu1 %v8816_v0  ;;  %1993 = vmatprep.mubr.bf16.mxu0 %v8816_v0 }
 0x212   : > { %1455 = vmatmul.mubr.bf16.gmra.mxu1 %v7481_v7  ;;  %1994 = vmatmul.mubr.bf16.gmra.mxu0 %v1650_v9  ;;  %v6683_v9 = vld [vmem:[%s8813_s3 + $0x374] ss:$8 sps:$4 sm:$0xff]  }
 0x213   : > { %1464 = vmatprep.mubr.bf16.mxu1 %v8816_v0  ;;  %2904 = vmatprep.mubr.bf16.mxu0 %v8816_v0 }
 0x21a   : > { %1465 = vmatmul.mubr.bf16.gmra.mxu1 %v7488_v13  ;;  %2905 = vmatmul.mubr.bf16.vlgmr.msra.gmra.mxu0 %v7352_v4  ;;  %v6633_v4 = vld [vmem:[%s8813_s3 + $0x270] ss:$8 sps:$4 sm:$0xff]  }
 0x21b   : > { %2372 = vmatprep.mubr.bf16.mxu1 %v8816_v0  ;;  %2914 = vmatprep.mubr.bf16.mxu0 %v8816_v0 }
 0x21c   : > { %3931 = vmatpush1.bf16.msra.mxu0 %v6645_v18 }
 0x21d   : > { %3932 = vmatprep.subr.bf16.mxu0 %v6653_v19  ;;  %v2144_v19 = vld [vmem:[#allocation2 + $0x92] sm:$0xff] }
 0x21e   : > { %v7620_v46 = vpack.c.bf16 %v2145_v45, %v2144_v19 }
 0x220   : > { %3933 = vmatpush1.bf16.msra.mxu0 %v6651_v20  ;;  %v2147_v20 = vld [vmem:[#allocation2 + $0xb2] sm:$0xff] }
 0x221   : > { %3934 = vmatprep.subr.bf16.mxu0 %v6659_v22 }
 0x222   : > { %2373 = vmatmul.mubr.bf16.vlgmr.msra.gmra.mxu1 %v2164_v27  ;;  %2915 = vmatmul.mubr.bf16.gmra.mxu0 %v7363_v54  ;;  %v2135_v54 = vld [vmem:[#allocation2 + $0x22] sm:$0xff]  ;;  %v2149_v27 = vld [vmem:[#allocation2 + $0xca] sm:$0xff] }
 0x223   : > { %3402 = vmatpush1.bf16.msra.mxu1 %v6633_v4  ;;  %2382 = vmatprep.mubr.bf16.mxu1 %v8816_v0  ;;  %v7530_v26 = vpack.c.bf16 %v2135_v54, %v2134_v25  ;;  %v7635_v4 = vpop.f32.mrf.mxu0  ;;  %v7643_v25 = vpop.f32.mrf.mxu1 }
 0x224   : > { %2924 = vmatprep.mubr.bf16.mxu0 %v8816_v0  ;;  %3403 = vmatprep.subr.bf16.mxu1 %v6638_v49 }
 0x225   : > { %3935 = vmatpush1.bf16.msra.mxu0 %v6657_v15 }
 0x226   : > { %3936 = vmatprep.subr.bf16.mxu0 %v6665_v42  ;;  %v2150_v42 = vld [vmem:[#allocation2 + $0xda] sm:$0xff] }
 0x227   : > { %3404 = vmatpush1.bf16.msra.mxu1 %v6636_v47  ;;  %v2151_v47 = vld [vmem:[#allocation2 + $0xe2] sm:$0xff] }
 0x228   : > { %3405 = vmatprep.subr.bf16.mxu1 %v6641_v29  ;;  %v7645_v54 = vpack.c.bf16 %v2151_v47, %v2150_v42 }
 0x229   : > { %3937 = vmatpush1.bf16.msra.mxu0 %v6663_v53 }
 0x22a   : > { %2383 = vmatmul.mubr.bf16.gmra.mxu1 %v7530_v26  ;;  %2925 = vmatmul.mubr.bf16.gmra.mxu0 %v7374_v37  ;;  %v6650_v37 = vld [vmem:[%s8813_s3 + $0x234] ss:$8 sps:$4 sm:$0xff]  }
 0x22b   : > { %2392 = vmatprep.mubr.bf16.mxu1 %v8816_v0  ;;  %2934 = vmatprep.mubr.bf16.mxu0 %v8816_v0 }
 0x22c   : > { %3406 = vmatpush1.bf16.msra.mxu1 %v6639_v58  ;;  %3938 = vmatprep.subr.bf16.mxu0 %v6671_v34 }
 0x22d   : > { %3407 = vmatprep.subr.bf16.mxu1 %v6644_v8  ;;  %3939 = vmatpush1.bf16.msra.mxu0 %v6669_v35 }
 0x22e   : > { %3940 = vmatprep.subr.bf16.mxu0 %v6674_v52 }
 0x230   : > { %3408 = vmatpush1.bf16.msra.mxu1 %v6642_v62  ;;  %v2152_v62 = vld [vmem:[#allocation2 + $0xf2] sm:$0xff] }
 0x231   : > { %3409 = vmatprep.subr.bf16.mxu1 %v6650_v37  ;;  %3941 = vmatpush1.bf16.msra.mxu0 %v6672_v41 }
 0x232   : > { %2393 = vmatmul.mubr.bf16.gmra.mxu1 %v7560_v56  ;;  %2935 = vmatmul.mubr.bf16.gmra.mxu0 %v7385_v1  ;;  %v6662_v1 = vld [vmem:[%s8813_s3 + $0x214] ss:$8 sps:$4 sm:$0xff]  }
 0x233   : > { %2402 = vmatprep.mubr.bf16.mxu1 %v8816_v0  ;;  %2944 = vmatprep.mubr.bf16.mxu0 %v8816_v0 }
 0x234   : > { %3410 = vmatpush1.bf16.msra.mxu1 %v6648_v43  ;;  %3942 = vmatprep.subr.bf16.mxu0 %v6677_v6 }
 0x235   : > { %3411 = vmatprep.subr.bf16.mxu1 %v6656_v24  ;;  %3943 = vmatpush1.bf16.msra.mxu0 %v6675_v30  ;;  %v7658_v24 = vpack.c.bf16 %v2153_v2, %v2152_v62 }
 0x236   : > { %3944 = vmatprep.subr.bf16.mxu0 %v6680_v39 }
 0x238   : > { %3412 = vmatpush1.bf16.msra.mxu1 %v6654_v61 }
 0x239   : > { %3413 = vmatprep.subr.bf16.mxu1 %v6662_v1  ;;  %3945 = vmatpush1.bf16.msra.mxu0 %v6678_v50 }
 0x23a   : > { %2403 = vmatmul.mubr.bf16.gmra.mxu1 %v7590_v38  ;;  %2945 = vmatmul.mubr.bf16.gmra.mxu0 %v7396_v12  ;;  %v2142_v12 = vld [vmem:[#allocation2 + $0x7a] sm:$0xff] }
 0x23b   : > { %2412 = vmatprep.mubr.bf16.mxu1 %v8816_v0  ;;  %2954 = vmatprep.mubr.bf16.mxu0 %v8816_v0  ;;  %v7614_v18 = vpack.c.bf16 %v2143_v44, %v2142_v12 }
 0x23c   : > { %3414 = vmatpush1.bf16.msra.mxu1 %v6660_v21 }
 0x23d   : > { %3415 = vmatprep.subr.bf16.mxu1 %v6668_v63 }
 0x240   : > { %3416 = vmatpush1.bf16.msra.mxu1 %v6666_v40 }
 0x241   : > { %4462 = vmatprep.subr.bf16.mxu1 %v6683_v9  ;;  %v2155_v9 = vld [vmem:[#allocation2 + $0x112] sm:$0xff] }
 0x242   : > { %2413 = vmatmul.mubr.bf16.gmra.mxu1 %v7608_v32  ;;  %2955 = vmatmul.mubr.bf16.gmra.mxu0 %v7407_v3  ;;  %v2146_v3 = vld [vmem:[#allocation2 + $0xaa] sm:$0xff] }
 0x243   : > { %2422 = vmatprep.mubr.bf16.mxu1 %v8816_v0  ;;  %2964 = vmatprep.mubr.bf16.mxu0 %v8816_v0  ;;  %v7626_v22 = vpack.c.bf16 %v2147_v20, %v2146_v3  ;;  %v7676_v3 = vpack.c.bf16 %v2155_v9, %v2154_v5  ;;  %v2159_v5 = vld [vmem:[#allocation2 + $0x142] sm:$0xff] }
 0x24a   : > { %2423 = vmatmul.mubr.bf16.gmra.mxu1 %v7614_v18  ;;  %2965 = vmatmul.mubr.bf16.gmra.mxu0 %v7418_v48  ;;  %v6695_v48 = vld [vmem:[%s8813_s3 + $0x3f4] ss:$8 sps:$4 sm:$0xff]  }
 0x24b   : > { %2432 = vmatprep.mubr.bf16.mxu1 %v8816_v0  ;;  %2974 = vmatprep.mubr.bf16.mxu0 %v8816_v0 }
 0x24c   : > { %4991 = vmatprep.subr.bf16.mxu0 %v6695_v48 }
 0x252   : > { %2433 = vmatmul.mubr.bf16.gmra.mxu1 %v7620_v46  ;;  %2975 = vmatmul.mubr.bf16.gmra.mxu0 %v7426_v31  ;;  %v2148_v31 = vld [vmem:[#allocation2 + $0xc2] sm:$0xff] }
 0x253   : > { %2442 = vmatprep.mubr.bf16.mxu1 %v8816_v0  ;;  %2984 = vmatprep.mubr.bf16.mxu0 %v8816_v0  ;;  %v7637_v49 = vpack.c.bf16 %v2149_v27, %v2148_v31 }
 0x25a   : > { %2443 = vmatmul.mubr.bf16.gmra.mxu1 %v7626_v22  ;;  %2985 = vmatmul.mubr.bf16.gmra.mxu0 %v7446_v14 }
 0x25b   : > { %2452 = vmatprep.mubr.bf16.mxu1 %v8816_v0  ;;  %2994 = vmatprep.mubr.bf16.mxu0 %v8816_v0 }
 0x262   : > { %2453 = vmatmul.mubr.bf16.gmra.mxu1 %v7637_v49  ;;  %v1855_v15 = vpop.f32.mrf.mxu0  ;;  %2995 = vmatmul.mubr.bf16.gmra.mxu0 %v7453_v36 }
 0x263   : > { %2462 = vmatprep.mubr.bf16.mxu1 %v8816_v0  ;;  %3004 = vmatprep.mubr.bf16.mxu0 %v8816_v0 }
 0x264   : > { %v1857_v14 = vpop.f32.mrf.mxu0 }
 0x266   : > { %v1859_v29 = vpop.f32.mrf.mxu0 }
 0x268   : > { %v1861_v53 = vpop.f32.mrf.mxu0 }
 0x26a   : > { %v1326_v58 = vpop.f32.mrf.mxu1  ;;  %2463 = vmatmul.mubr.bf16.gmra.mxu1 %v7645_v54  ;;  %v1865_v34 = vpop.f32.mrf.mxu0  ;;  %3005 = vmatmul.mubr.bf16.gmra.mxu0 %v7460_v60 }
 0x26b   : > { %v1479_v36 = vadd.f32 %v1326_v58, %v7430_v33  ;;  %2472 = vmatprep.mubr.bf16.mxu1 %v8816_v0  ;;  %3014 = vmatprep.mubr.bf16.mxu0 %v8816_v0 }
 0x26c   : > { %v1328_v8 = vpop.f32.mrf.mxu1  ;;  %v1867_v35 = vpop.f32.mrf.mxu0 }
 0x26d   : > { %v7652_v52 = vadd.f32 %v1855_v15, %v1479_v36  ;;  %v1480_v10 = vadd.f32 %v1328_v8, %v7432_v28  ;;  %v2157_v36 = vld [vmem:[#allocation2 + $0x12a] sm:$0xff] }
 0x26e   : > { %v1330_v37 = vpop.f32.mrf.mxu1  ;;  %v1869_v41 = vpop.f32.mrf.mxu0 }
 0x26f   : > { %v7655_v43 = vadd.f32 %v1857_v14, %v1480_v10  ;;  %v1481_v60 = vadd.f32 %v1330_v37, %v7430_v33 }
 0x270   : > { %v1332_v6 = vpop.f32.mrf.mxu1  ;;  %v1871_v30 = vpop.f32.mrf.mxu0 }
 0x271   : > { %v7660_v39 = vadd.f32 %v1859_v29, %v1481_v60  ;;  %v1482_v55 = vadd.f32 %v1332_v6, %v7432_v28 }
 0x272   : > { %v1336_v61 = vpop.f32.mrf.mxu1  ;;  %2473 = vmatmul.mubr.bf16.gmra.mxu1 %v7658_v24  ;;  %v1875_v59 = vpop.f32.mrf.mxu0  ;;  %3015 = vmatmul.mubr.bf16.gmra.mxu0 %v7467_v17 }
 0x273   : > { %v7665_v1 = vadd.f32 %v1861_v53, %v1482_v55  ;;  %v1483_v50 = vadd.f32 %v1336_v61, %v7430_v33  ;;  %2482 = vmatprep.mubr.bf16.mxu1 %v8816_v0  ;;  %3024 = vmatprep.mubr.bf16.mxu0 %v8816_v0 }
 0x274   : > { %v1338_v21 = vpop.f32.mrf.mxu1  ;;  %v1877_v63 = vpop.f32.mrf.mxu0 }
 0x275   : > { %v7670_v40 = vadd.f32 %v1865_v34, %v1483_v50  ;;  %v1484_v16 = vadd.f32 %v1338_v21, %v7432_v28  ;;  %v2156_v34 = vld [vmem:[#allocation2 + $0x122] sm:$0xff] }
 0x276   : > { %v1340_v12 = vpop.f32.mrf.mxu1  ;;  %v1879_v44 = vpop.f32.mrf.mxu0  ;;  %v7694_v2 = vpack.c.bf16 %v2157_v36, %v2156_v34  ;;  %v6215_v34 = vld [vmem:[#allocation2 + $0x188] sm:$0xff] }
 0x277   : > { %v7673_v19 = vadd.f32 %v1867_v35, %v1484_v16  ;;  %v1485_v17 = vadd.f32 %v1340_v12, %v7430_v33  ;;  %v2158_v16 = vld [vmem:[#allocation2 + $0x13a] sm:$0xff] }
 0x278   : > { %v1342_v45 = vpop.f32.mrf.mxu1  ;;  %v1881_v20 = vpop.f32.mrf.mxu0 }
 0x279   : > { %v7678_v48 = vadd.f32 %v1869_v41, %v1485_v17  ;;  %v1486_v31 = vadd.f32 %v1342_v45, %v7432_v28  ;;  %v7712_v45 = vpack.c.bf16 %v2159_v5, %v2158_v16 }
 0x27a   : > { %v1346_v27 = vpop.f32.mrf.mxu1  ;;  %2483 = vmatmul.mubr.bf16.gmra.mxu1 %v7676_v3  ;;  %v1885_v15 = vpop.f32.mrf.mxu0  ;;  %3025 = vmatmul.mubr.bf16.gmra.mxu0 %v7474_v23 }
 0x27b   : > { %v7683_v14 = vadd.f32 %v1871_v30, %v1486_v31  ;;  %v1487_v42 = vadd.f32 %v1346_v27, %v7430_v33  ;;  %2492 = vmatprep.mubr.bf16.mxu1 %v8816_v0  ;;  %3034 = vmatprep.mubr.bf16.mxu0 %v8816_v0 }
 0x27c   : > { %v1348_v47 = vpop.f32.mrf.mxu1  ;;  %v1887_v29 = vpop.f32.mrf.mxu0 }
 0x27d   : > { %v7688_v53 = vadd.f32 %v1875_v59, %v1487_v42  ;;  %v1488_v58 = vadd.f32 %v1348_v47, %v7432_v28 }
 0x27e   : > { %v1350_v8 = vpop.f32.mrf.mxu1  ;;  %v1889_v35 = vpop.f32.mrf.mxu0 }
 0x27f   : > { %v7691_v10 = vadd.f32 %v1877_v63, %v1488_v58  ;;  %v1489_v23 = vadd.f32 %v1350_v8, %v7430_v33  ;;  %v6214_v58 = vld [vmem:[#allocation2 + $0x180] sm:$0xff] }
 0x280   : > { %v1352_v62 = vpop.f32.mrf.mxu1  ;;  %v1891_v37 = vpop.f32.mrf.mxu0 }
 0x281   : > { %v7696_v41 = vadd.f32 %v1879_v44, %v1489_v23  ;;  %v1490_v60 = vadd.f32 %v1352_v62, %v7432_v28  ;;  %v2160_v62 = vld [vmem:[#allocation2 + $0x152] sm:$0xff] }
 0x282   : > { %v1356_v6 = vpop.f32.mrf.mxu1  ;;  %2493 = vmatmul.mubr.bf16.gmra.mxu1 %v7694_v2  ;;  %v1895_v30 = vpop.f32.mrf.mxu0  ;;  %3035 = vmatmul.mubr.bf16.gmra.mxu0 %v7481_v7 }
 0x283   : > { %v7701_v55 = vadd.f32 %v1881_v20, %v1490_v60  ;;  %v1491_v61 = vadd.f32 %v1356_v6, %v7430_v33  ;;  %2502 = vmatprep.mubr.bf16.mxu1 %v8816_v0  ;;  %3044 = vmatprep.mubr.bf16.mxu0 %v8816_v0  ;;  %v2161_v60 = vld [vmem:[#allocation2 + $0x15a] sm:$0xff] }
 0x284   : > { %v1358_v59 = vpop.f32.mrf.mxu1  ;;  %v1897_v50 = vpop.f32.mrf.mxu0  ;;  %v7730_v16 = vpack.c.bf16 %v2161_v60, %v2160_v62 }
 0x285   : > { %v7706_v21 = vadd.f32 %v1885_v15, %v1491_v61  ;;  %v1492_v63 = vadd.f32 %v1358_v59, %v7432_v28 }
 0x286   : > { %v1360_v9 = vpop.f32.mrf.mxu1  ;;  %v1899_v12 = vpop.f32.mrf.mxu0 }
 0x287   : > { %v7709_v44 = vadd.f32 %v1887_v29, %v1492_v63  ;;  %v1493_v7 = vadd.f32 %v1360_v9, %v7430_v33 }
 0x288   : > { %v1362_v17 = vpop.f32.mrf.mxu1  ;;  %v1901_v20 = vpop.f32.mrf.mxu0 }
 0x289   : > { %v7714_v31 = vadd.f32 %v1889_v35, %v1493_v7  ;;  %v1494_v27 = vadd.f32 %v1362_v17, %v7432_v28 }
 0x28a   : > { %v1366_v15 = vpop.f32.mrf.mxu1  ;;  %2503 = vmatmul.mubr.bf16.gmra.mxu1 %v7712_v45  ;;  %v1905_v42 = vpop.f32.mrf.mxu0  ;;  %3045 = vmatmul.mubr.bf16.gmra.mxu0 %v7488_v13 }
 0x28b   : > { %v7719_v47 = vadd.f32 %v1891_v37, %v1494_v27  ;;  %v1495_v29 = vadd.f32 %v1366_v15, %v7430_v33  ;;  %2512 = vmatprep.mubr.bf16.mxu1 %v8816_v0  ;;  %3054 = vmatprep.mubr.bf16.mxu0 %v8816_v0  ;;  %v2711_v37 = vpack.c.bf16 %v6215_v34, %v6214_v58  ;;  %v2162_v34 = vld [vmem:[#allocation2 + $0x16a] sm:$0xff] }
 0x28c   : > { %v1368_v36 = vpop.f32.mrf.mxu1  ;;  %v1907_v8 = vpop.f32.mrf.mxu0 }
 0x28d   : > { %v7724_v35 = vadd.f32 %v1895_v30, %v1495_v29  ;;  %v1496_v23 = vadd.f32 %v1368_v36, %v7432_v28  ;;  %v2163_v36 = vld [vmem:[#allocation2 + $0x172] sm:$0xff] }
 0x28e   : > { %v1370_v6 = vpop.f32.mrf.mxu1  ;;  %v1909_v13 = vpop.f32.mrf.mxu0 }
 0x28f   : > { %v7727_v61 = vadd.f32 %v1897_v50, %v1496_v23  ;;  %v1497_v59 = vadd.f32 %v1370_v6, %v7430_v33 }
 0x290   : > { %v1372_v63 = vpop.f32.mrf.mxu1  ;;  %v1911_v5 = vpop.f32.mrf.mxu0 }
 0x291   : > { %v7732_v9 = vadd.f32 %v1899_v12, %v1497_v59  ;;  %v1498_v30 = vadd.f32 %v1372_v63, %v7432_v28  ;;  %v6693_v63 = vld [vmem:[%s8813_s3 + $0x3f0] ss:$8 sps:$4 sm:$0xff]  }
 0x292   : > { %v1376_v7 = vpop.f32.mrf.mxu1  ;;  %2513 = vmatmul.mubr.bf16.gmra.mxu1 %v7730_v16  ;;  %v1915_v17 = vpop.f32.mrf.mxu0  ;;  %3055 = vmatmul.mubr.bf16.gmra.mxu0 %v2711_v37  ;;  %v7747_v37 = vpack.c.bf16 %v2163_v36, %v2162_v34  ;;  %v6699_v36 = vld [vmem:[%s8813_s3 + $0x3e0] ss:$8 sps:$4 sm:$0xff]  }
 0x293   : > { %v7736_v27 = vadd.f32 %v1901_v20, %v1498_v30  ;;  %v1499_v50 = vadd.f32 %v1376_v7, %v7430_v33  ;;  %2522 = vmatprep.mubr.bf16.mxu1 %v8816_v0  ;;  %3962 = vmatprep.mubr.bf16.mxu0 %v8816_v0  ;;  %v6701_v7 = vld [vmem:[%s8813_s3 + $0x3e4] ss:$8 sps:$4 sm:$0xff]  }
 0x294   : > { %v1378_v15 = vpop.f32.mrf.mxu1  ;;  %v1917_v29 = vpop.f32.mrf.mxu0 }
 0x295   : > { %v7741_v58 = vadd.f32 %v1905_v42, %v1499_v50  ;;  %v1500_v12 = vadd.f32 %v1378_v15, %v7432_v28 }
 0x296   : > { %v1380_v23 = vpop.f32.mrf.mxu1  ;;  %v1919_v62 = vpop.f32.mrf.mxu0 }
 0x297   : > { %v7744_v60 = vadd.f32 %v1907_v8, %v1500_v12  ;;  %v1501_v20 = vadd.f32 %v1380_v23, %v7430_v33 }
 0x298   : > { %v1382_v6 = vpop.f32.mrf.mxu1  ;;  %v1921_v59 = vpop.f32.mrf.mxu0 }
 0x299   : > { %8819 = vst [vmem:[#allocation4_spill] sm:$0xff] %v7744_v60  ;;  %v7752_v42 = vadd.f32 %v1909_v13, %v1501_v20  ;;  %v1502_v30 = vadd.f32 %v1382_v6, %v7432_v28 }
 0x29a   : > { %v1386_v8 = vpop.f32.mrf.mxu1  ;;  %2523 = vmatmul.mubr.bf16.gmra.mxu1 %v7747_v37  ;;  %v1925_v50 = vpop.f32.mrf.mxu0  ;;  %3963 = vmatmul.mubr.bf16.vlgmr.msra.gmra.mxu0 %v7530_v26  ;;  %v6233_v26 = vld [vmem:[#allocation2 + $0x21] sm:$0xff] }
 0x29b   : > { %8820 = vst [vmem:[#allocation5_spill] sm:$0xff] %v7752_v42  ;;  %v7760_v15 = vadd.f32 %v1911_v5, %v1502_v30  ;;  %v1503_v12 = vadd.f32 %v1386_v8, %v7430_v33  ;;  %3433 = vmatprep.mubr.bf16.mxu1 %v8816_v0  ;;  %3972 = vmatprep.mubr.bf16.mxu0 %v8816_v0  ;;  %v6707_v5 = vld [vmem:[%s8813_s3 + $0x3d4] ss:$8 sps:$4 sm:$0xff]   ;;  %v6681_v0 = vld [vmem:[%s8813_s3 + $0x370] ss:$8 sps:$4 sm:$0xff]  }
 0x29c   : > { %v1388_v13 = vpop.f32.mrf.mxu1  ;;  %v1927_v34 = vpop.f32.mrf.mxu0  ;;  %4992 = vmatpush1.bf16.msra.mxu0 %v6693_v63  ;;  %v6234_v42 = vld [vmem:[#allocation2 + $0x31] sm:$0xff] }
 0x29d   : > { %8821 = vst [vmem:[#allocation6_spill] sm:$0xff] %v7760_v15  ;;  %v7768_v23 = vadd.f32 %v1915_v17, %v1503_v12  ;;  %v1504_v20 = vadd.f32 %v1388_v13, %v7432_v28  ;;  %4993 = vmatprep.subr.bf16.mxu0 %v6701_v7  ;;  %v6232_v17 = vld [vmem:[#allocation2 + $0x19] sm:$0xff]  ;;  %v6686_v7 = vld [vmem:[%s8813_s3 + $0x364] ss:$8 sps:$4 sm:$0xff]  }
 0x29e   : > { %v1390_v6 = vpop.f32.mrf.mxu1  ;;  %v1929_v30 = vpop.f32.mrf.mxu0 }
 0x29f   : > { %8822 = vst [vmem:[#allocation7_spill] sm:$0xff] %v7768_v23  ;;  %v7774_v8 = vadd.f32 %v1917_v29, %v1504_v20  ;;  %v1505_v63 = vadd.f32 %v1390_v6, %v7430_v33  ;;  %v3225_v23 = vpack.c.bf16 %v6233_v26, %v6232_v17  ;;  %v6705_v20 = vld [vmem:[%s8813_s3 + $0x3d0] ss:$8 sps:$4 sm:$0xff]   ;;  %v6713_v26 = vld [vmem:[%s8813_s3 + $0x3c4] ss:$8 sps:$4 sm:$0xff]  }
 0x2a0   : > { %v1392_v12 = vpop.f32.mrf.mxu1  ;;  %v1931_v13 = vpop.f32.mrf.mxu0  ;;  %4994 = vmatpush1.bf16.msra.mxu0 %v6699_v36  ;;  %v8826_v36 = vmov 0  }
 0x2a1   : > { %8823 = vst [vmem:[#allocation8_spill] sm:$0xff] %v7774_v8  ;;  %v7783_v15 = vadd.f32 %v1919_v62, %v1505_v63  ;;  %v1506_v29 = vadd.f32 %v1392_v12, %v7432_v28  ;;  %4995 = vmatprep.subr.bf16.mxu0 %v6707_v5  ;;  %v6684_v5 = vld [vmem:[%s8813_s3 + $0x360] ss:$8 sps:$4 sm:$0xff]  }
 0x2a2   : > { %v1396_v6 = vpop.f32.mrf.mxu1  ;;  %3434 = vmatmul.mubr.bf16.vlgmr.msra.gmra.mxu1 %v3225_v23  ;;  %v1935_v8 = vpop.f32.mrf.mxu0  ;;  %3973 = vmatmul.mubr.bf16.gmra.mxu0 %v7560_v56  ;;  %v6689_v56 = vld [vmem:[%s8813_s3 + $0x354] ss:$8 sps:$4 sm:$0xff]  }
 0x2a3   : > { %8824 = vst [vmem:[#allocation9_spill] sm:$0xff] %v7783_v15  ;;  %v7793_v17 = vadd.f32 %v1921_v59, %v1506_v29  ;;  %v1507_v62 = vadd.f32 %v1396_v6, %v7430_v33  ;;  %4463 = vmatpush1.bf16.msra.mxu1 %v6681_v0  ;;  %3443 = vmatprep.mubr.bf16.mxu1 %v8826_v36  ;;  %v6235_v0 = vld [vmem:[#allocation2 + $0x39] sm:$0xff] }
 0x2a4   : > { %v1398_v63 = vpop.f32.mrf.mxu1  ;;  %v1937_v23 = vpop.f32.mrf.mxu0  ;;  %3982 = vmatprep.mubr.bf16.mxu0 %v8826_v36  ;;  %4464 = vmatprep.subr.bf16.mxu1 %v6686_v7  ;;  %v6711_v29 = vld [vmem:[%s8813_s3 + $0x3c0] ss:$8 sps:$4 sm:$0xff]  }
 0x2a5   : > { %8825 = vst [vmem:[#allocation10_spill] sm:$0xff] %v7793_v17  ;;  %v7804_v59 = vadd.f32 %v1925_v50, %v1507_v62  ;;  %v1508_v12 = vadd.f32 %v1398_v63, %v7432_v28  ;;  %4996 = vmatpush1.bf16.msra.mxu0 %v6705_v20  ;;  %v7813_v50 = vpack.c.bf16 %v6235_v0, %v6234_v42  ;;  %v6687_v20 = vld [vmem:[%s8813_s3 + $0x350] ss:$8 sps:$4 sm:$0xff]   ;;  %v6719_v63 = vld [vmem:[%s8813_s3 + $0x3b4] ss:$8 sps:$4 sm:$0xff]  }
 0x2a6   : > { %v1400_v6 = vpop.f32.mrf.mxu1  ;;  %v1939_v17 = vpop.f32.mrf.mxu0  ;;  %4997 = vmatprep.subr.bf16.mxu0 %v6713_v26  ;;  %v6717_v42 = vld [vmem:[%s8813_s3 + $0x3b0] ss:$8 sps:$4 sm:$0xff]  }
 0x2a7   : > { %8827 = vst [vmem:[#allocation11_spill] sm:$0xff] %v7804_v59  ;;  %v7810_v15 = vadd.f32 %v1927_v34, %v1508_v12  ;;  %v1509_v7 = vadd.f32 %v1400_v6, %v7430_v33  ;;  %4465 = vmatpush1.bf16.msra.mxu1 %v6684_v5  ;;  %v6692_v5 = vld [vmem:[%s8813_s3 + $0x344] ss:$8 sps:$4 sm:$0xff]  }
 0x2a8   : > { %v1402_v60 = vpop.f32.mrf.mxu1  ;;  %v1941_v62 = vpop.f32.mrf.mxu0  ;;  %4466 = vmatprep.subr.bf16.mxu1 %v6689_v56 }
 0x2a9   : > { %8828 = vst [vmem:[#allocation12_spill] sm:$0xff] %v7810_v15  ;;  %v7821_v26 = vadd.f32 %v1929_v30, %v1509_v7  ;;  %v1510_v34 = vadd.f32 %v1402_v60, %v7432_v28  ;;  %4998 = vmatpush1.bf16.msra.mxu0 %v6711_v29  ;;  %v6722_v30 = vld [vmem:[%s8813_s3 + $0x3a4] ss:$8 sps:$4 sm:$0xff]   ;;  %v6690_v7 = vld [vmem:[%s8813_s3 + $0x340] ss:$8 sps:$4 sm:$0xff]  }
 0x2aa   : > { %v1406_v12 = vpop.f32.mrf.mxu1  ;;  %3444 = vmatmul.mubr.bf16.gmra.mxu1 %v7813_v50  ;;  %v1945_v56 = vpop.f32.mrf.mxu0  ;;  %3983 = vmatmul.mubr.bf16.gmra.mxu0 %v7590_v38 }
 0x2ab   : > { %8829 = vst [vmem:[#allocation13_spill] sm:$0xff] %v7821_v26  ;;  %v7835_v60 = vadd.f32 %v1931_v13, %v1510_v34  ;;  %v1511_v0 = vadd.f32 %v1406_v12, %v7430_v33  ;;  %3453 = vmatprep.mubr.bf16.mxu1 %v8826_v36  ;;  %3992 = vmatprep.mubr.bf16.mxu0 %v8826_v36  ;;  %v6237_v13 = vld [vmem:[#allocation2 + $0x51] sm:$0xff] }
 0x2ac   : > { %v1408_v29 = vpop.f32.mrf.mxu1  ;;  %v1947_v6 = vpop.f32.mrf.mxu0  ;;  %4467 = vmatpush1.bf16.msra.mxu1 %v6687_v20  ;;  %4999 = vmatprep.subr.bf16.mxu0 %v6719_v63  ;;  %v6698_v34 = vld [vmem:[%s8813_s3 + $0x334] ss:$8 sps:$4 sm:$0xff]   ;;  %v6720_v20 = vld [vmem:[%s8813_s3 + $0x3a0] ss:$8 sps:$4 sm:$0xff]  }
 0x2ad   : > { %8830 = vst [vmem:[#allocation14_spill] sm:$0xff] %v7835_v60  ;;  %v7843_v38 = vadd.f32 %v1935_v8, %v1511_v0  ;;  %v1512_v26 = vadd.f32 %v1408_v29, %v7432_v28  ;;  %4468 = vmatprep.subr.bf16.mxu1 %v6692_v5  ;;  %5000 = vmatpush1.bf16.msra.mxu0 %v6717_v42  ;;  %v6236_v63 = vld [vmem:[#allocation2 + $0x49] sm:$0xff] }
 0x2ae   : > { %v1410_v12 = vpop.f32.mrf.mxu1  ;;  %v1949_v60 = vpop.f32.mrf.mxu0  ;;  %5001 = vmatprep.subr.bf16.mxu0 %v6722_v30  ;;  %v7855_v29 = vpack.c.bf16 %v6237_v13, %v6236_v63  ;;  %v6696_v42 = vld [vmem:[%s8813_s3 + $0x330] ss:$8 sps:$4 sm:$0xff]   ;;  %v6702_v63 = vld [vmem:[%s8813_s3 + $0x320] ss:$8 sps:$4 sm:$0xff]  }
 0x2af   : > { %8831 = vst [vmem:[#allocation15_spill] sm:$0xff] %v7843_v38  ;;  %v7852_v15 = vadd.f32 %v1937_v23, %v1512_v26  ;;  %v1513_v8 = vadd.f32 %v1410_v12, %v7430_v33  ;;  %v6725_v38 = vld [vmem:[%s8813_s3 + $0x394] ss:$8 sps:$4 sm:$0xff]   ;;  %v6704_v26 = vld [vmem:[%s8813_s3 + $0x324] ss:$8 sps:$4 sm:$0xff]  }
 0x2b0   : > { %v1412_v0 = vpop.f32.mrf.mxu1  ;;  %v1951_v5 = vpop.f32.mrf.mxu0  ;;  %4469 = vmatpush1.bf16.msra.mxu1 %v6690_v7  ;;  %v6723_v30 = vld [vmem:[%s8813_s3 + $0x390] ss:$8 sps:$4 sm:$0xff]  }
 0x2b1   : > { %8832 = vst [vmem:[#allocation16_spill] sm:$0xff] %v7852_v15  ;;  %v7863_v59 = vadd.f32 %v1939_v17, %v1513_v8  ;;  %v1514_v23 = vadd.f32 %v1412_v0, %v7432_v28  ;;  %4470 = vmatprep.subr.bf16.mxu1 %v6698_v34  ;;  %5002 = vmatpush1.bf16.msra.mxu0 %v6720_v20  ;;  %v6728_v17 = vld [vmem:[%s8813_s3 + $0x384] ss:$8 sps:$4 sm:$0xff]  }
 0x2b2   : > { %v1416_v7 = vpop.f32.mrf.mxu1  ;;  %3454 = vmatmul.mubr.bf16.gmra.mxu1 %v7855_v29  ;;  %v1955_v13 = vpop.f32.mrf.mxu0  ;;  %3993 = vmatmul.mubr.bf16.gmra.mxu0 %v7608_v32 }
 0x2b3   : > { %8833 = vst [vmem:[#allocation17_spill] sm:$0xff] %v7863_v59  ;;  %v7877_v34 = vadd.f32 %v1941_v62, %v1514_v23  ;;  %v1515_v12 = vadd.f32 %v1416_v7, %v7430_v33  ;;  %3463 = vmatprep.mubr.bf16.mxu1 %v8826_v36  ;;  %4002 = vmatprep.mubr.bf16.mxu0 %v8826_v36  ;;  %v6239_v62 = vld [vmem:[#allocation2 + $0x69] sm:$0xff]  ;;  %v6710_v23 = vld [vmem:[%s8813_s3 + $0x314] ss:$8 sps:$4 sm:$0xff]  }
 0x2b4   : > { %v1418_v20 = vpop.f32.mrf.mxu1  ;;  %v1957_v8 = vpop.f32.mrf.mxu0  ;;  %4471 = vmatpush1.bf16.msra.mxu1 %v6696_v42  ;;  %5003 = vmatprep.subr.bf16.mxu0 %v6725_v38  ;;  %v6726_v42 = vld [vmem:[%s8813_s3 + $0x380] ss:$8 sps:$4 sm:$0xff]  }
 0x2b5   : > { %8834 = vst [vmem:[#allocation18_spill] sm:$0xff] %v7877_v34  ;;  %v7885_v32 = vadd.f32 %v1945_v56, %v1515_v12  ;;  %v1516_v0 = vadd.f32 %v1418_v20, %v7432_v28  ;;  %4472 = vmatprep.subr.bf16.mxu1 %v6704_v26  ;;  %5004 = vmatpush1.bf16.msra.mxu0 %v6723_v30  ;;  %v6238_v38 = vld [vmem:[#allocation2 + $0x61] sm:$0xff]  ;;  %v6708_v30 = vld [vmem:[%s8813_s3 + $0x310] ss:$8 sps:$4 sm:$0xff]  }
 0x2b6   : > { %v1420_v7 = vpop.f32.mrf.mxu1  ;;  %v1959_v34 = vpop.f32.mrf.mxu0  ;;  %5005 = vmatprep.subr.bf16.mxu0 %v6728_v17  ;;  %v7897_v20 = vpack.c.bf16 %v6239_v62, %v6238_v38  ;;  %v6716_v17 = vld [vmem:[%s8813_s3 + $0x304] ss:$8 sps:$4 sm:$0xff]  }
 0x2b7   : > { %8835 = vst [vmem:[#allocation19_spill] sm:$0xff] %v7885_v32  ;;  %v7894_v59 = vadd.f32 %v1947_v6, %v1516_v0  ;;  %v1517_v56 = vadd.f32 %v1420_v7, %v7430_v33  ;;  %v6731_v32 = vld [vmem:[%s8813_s3 + $0x474] ss:$8 sps:$4 sm:$0xff]  }
 0x2b8   : > { %v1422_v12 = vpop.f32.mrf.mxu1  ;;  %8837 = vst [vmem:[#allocation21_spill] sm:$0xff] %v7897_v20  ;;  %v1961_v26 = vpop.f32.mrf.mxu0  ;;  %4473 = vmatpush1.bf16.msra.mxu1 %v6702_v63 }
 0x2b9   : > { %8836 = vst [vmem:[#allocation20_spill] sm:$0xff] %v7894_v59  ;;  %v7905_v15 = vadd.f32 %v1949_v60, %v1517_v56  ;;  %v1518_v6 = vadd.f32 %v1422_v12, %v7432_v28  ;;  %4474 = vmatprep.subr.bf16.mxu1 %v6710_v23  ;;  %5006 = vmatpush1.bf16.msra.mxu0 %v6726_v42  ;;  %v6714_v42 = vld [vmem:[%s8813_s3 + $0x300] ss:$8 sps:$4 sm:$0xff]  }
 0x2ba   : > { %v1426_v0 = vpop.f32.mrf.mxu1  ;;  %3464 = vmatmul.mubr.bf16.gmra.mxu1 %v7897_v20  ;;  %v1965_v63 = vpop.f32.mrf.mxu0  ;;  %4003 = vmatmul.mubr.bf16.gmra.mxu0 %v7614_v18 }
 0x2bb   : > { %8838 = vst [vmem:[#allocation22_spill] sm:$0xff] %v7905_v15  ;;  %v7913_v62 = vadd.f32 %v1951_v5, %v1518_v6  ;;  %v1519_v7 = vadd.f32 %v1426_v0, %v7430_v33  ;;  %3473 = vmatprep.mubr.bf16.mxu1 %v8826_v36  ;;  %4012 = vmatprep.mubr.bf16.mxu0 %v8826_v36  ;;  %v6241_v5 = vld [vmem:[#allocation2 + $0x81] sm:$0xff] }
 0x2bc   : > { %v1428_v60 = vpop.f32.mrf.mxu1  ;;  %v1967_v23 = vpop.f32.mrf.mxu0  ;;  %4475 = vmatpush1.bf16.msra.mxu1 %v6708_v30  ;;  %5520 = vmatprep.subr.bf16.mxu0 %v6731_v32 }
 0x2bd   : > { %8839 = vst [vmem:[#allocation23_spill] sm:$0xff] %v7913_v62  ;;  %v7921_v56 = vadd.f32 %v1955_v13, %v1519_v7  ;;  %v1520_v18 = vadd.f32 %v1428_v60, %v7432_v28  ;;  %4476 = vmatprep.subr.bf16.mxu1 %v6716_v17  ;;  %v6240_v62 = vld [vmem:[#allocation2 + $0x79] sm:$0xff] }
 0x2be   : > { %v1430_v38 = vpop.f32.mrf.mxu1  ;;  %v1969_v12 = vpop.f32.mrf.mxu0  ;;  %v7927_v30 = vpack.c.bf16 %v6241_v5, %v6240_v62 }
 0x2bf   : > { %v7924_v6 = vadd.f32 %v1957_v8, %v1520_v18  ;;  %v1521_v0 = vadd.f32 %v1430_v38, %v7430_v33 }
 0x2c0   : > { %v1432_v15 = vpop.f32.mrf.mxu1  ;;  %v1971_v59 = vpop.f32.mrf.mxu0  ;;  %4477 = vmatpush1.bf16.msra.mxu1 %v6714_v42 }
 0x2c1   : > { %v7929_v20 = vadd.f32 %v1959_v34, %v1521_v0  ;;  %v1522_v13 = vadd.f32 %v1432_v15, %v7432_v28  ;;  %6476 = vmatprep.subr.bf16.mxu1 %v6731_v32  ;;  %v6243_v32 = vld [vmem:[#allocation2 + $0x99] sm:$0xff] }
 0x2c2   : > { %v1436_v7 = vpop.f32.mrf.mxu1  ;;  %3474 = vmatmul.mubr.bf16.gmra.mxu1 %v7927_v30  ;;  %v1975_v17 = vpop.f32.mrf.mxu0  ;;  %4013 = vmatmul.mubr.bf16.gmra.mxu0 %v7620_v46 }
 0x2c3   : > { %8840 = vst [vmem:[#allocation24_spill] sm:$0xff] %v7929_v20  ;;  %v7934_v8 = vadd.f32 %v1961_v26, %v1522_v13  ;;  %v1523_v60 = vadd.f32 %v1436_v7, %v7430_v33  ;;  %3483 = vmatprep.mubr.bf16.mxu1 %v8826_v36  ;;  %4022 = vmatprep.mubr.bf16.mxu0 %v8826_v36  ;;  %v6242_v26 = vld [vmem:[#allocation2 + $0x91] sm:$0xff] }
 0x2c4   : > { %v1438_v62 = vpop.f32.mrf.mxu1  ;;  %v1977_v34 = vpop.f32.mrf.mxu0  ;;  %v7945_v13 = vpack.c.bf16 %v6243_v32, %v6242_v26 }
 0x2c5   : > { %8841 = vst [vmem:[#allocation25_spill] sm:$0xff] %v7934_v8  ;;  %v7939_v42 = vadd.f32 %v1965_v63, %v1523_v60  ;;  %v1524_v15 = vadd.f32 %v1438_v62, %v7432_v28 }
 0x2c6   : > { %v1440_v18 = vpop.f32.mrf.mxu1  ;;  %v1979_v5 = vpop.f32.mrf.mxu0 }
 0x2c7   : > { %8842 = vst [vmem:[#allocation26_spill] sm:$0xff] %v7939_v42  ;;  %v7942_v38 = vadd.f32 %v1967_v23, %v1524_v15  ;;  %v1525_v46 = vadd.f32 %v1440_v18, %v7430_v33 }
 0x2c8   : > { %v1442_v0 = vpop.f32.mrf.mxu1  ;;  %v1981_v7 = vpop.f32.mrf.mxu0 }
 0x2c9   : > { %8843 = vst [vmem:[#allocation27_spill] sm:$0xff] %v7942_v38  ;;  %v7947_v8 = vadd.f32 %v1969_v12, %v1525_v46  ;;  %v1526_v20 = vadd.f32 %v1442_v0, %v7432_v28  ;;  %v6245_v46 = vld [vmem:[#allocation2 + $0xb1] sm:$0xff] }
 0x2ca   : > { %v1446_v63 = vpop.f32.mrf.mxu1  ;;  %3484 = vmatmul.mubr.bf16.gmra.mxu1 %v7945_v13  ;;  %v1985_v60 = vpop.f32.mrf.mxu0  ;;  %4023 = vmatmul.mubr.bf16.gmra.mxu0 %v7626_v22 }
 0x2cb   : > { %8844 = vst [vmem:[#allocation28_spill] sm:$0xff] %v7947_v8  ;;  %v7952_v62 = vadd.f32 %v1971_v59, %v1526_v20  ;;  %v1527_v23 = vadd.f32 %v1446_v63, %v7430_v33  ;;  %3493 = vmatprep.mubr.bf16.mxu1 %v8826_v36  ;;  %4032 = vmatprep.mubr.bf16.mxu0 %v8826_v36  ;;  %v6244_v59 = vld [vmem:[#allocation2 + $0xa9] sm:$0xff] }
 0x2cc   : > { %v1448_v15 = vpop.f32.mrf.mxu1  ;;  %v1987_v32 = vpop.f32.mrf.mxu0  ;;  %v7963_v63 = vpack.c.bf16 %v6245_v46, %v6244_v59 }
 0x2cd   : > { %8845 = vst [vmem:[#allocation29_spill] sm:$0xff] %v7952_v62  ;;  %v7957_v12 = vadd.f32 %v1975_v17, %v1527_v23  ;;  %v1528_v18 = vadd.f32 %v1448_v15, %v7432_v28 }
 0x2ce   : > { %v1450_v26 = vpop.f32.mrf.mxu1  ;;  %v1989_v0 = vpop.f32.mrf.mxu0 }
 0x2cf   : > { %8846 = vst [vmem:[#allocation30_spill] sm:$0xff] %v7957_v12  ;;  %v7960_v8 = vadd.f32 %v1977_v34, %v1528_v18  ;;  %v1529_v22 = vadd.f32 %v1450_v26, %v7430_v33 }
 0x2d0   : > { %v1452_v20 = vpop.f32.mrf.mxu1  ;;  %v1991_v62 = vpop.f32.mrf.mxu0 }
 0x2d1   : > { %8847 = vst [vmem:[#allocation31_spill] sm:$0xff] %v7960_v8  ;;  %v7965_v38 = vadd.f32 %v1979_v5, %v1529_v22  ;;  %v1530_v42 = vadd.f32 %v1452_v20, %v7432_v28  ;;  %v6247_v22 = vld [vmem:[#allocation2 + $0xc9] sm:$0xff] }
 0x2d2   : > { %v1456_v17 = vpop.f32.mrf.mxu1  ;;  %3494 = vmatmul.mubr.bf16.gmra.mxu1 %v7963_v63  ;;  %v1995_v23 = vpop.f32.mrf.mxu0  ;;  %4033 = vmatmul.mubr.bf16.gmra.mxu0 %v7637_v49 }
 0x2d3   : > { %8848 = vst [vmem:[#allocation32_spill] sm:$0xff] %v7965_v38  ;;  %v7970_v15 = vadd.f32 %v1981_v7, %v1530_v42  ;;  %v1531_v34 = vadd.f32 %v1456_v17, %v7430_v33  ;;  %3503 = vmatprep.mubr.bf16.mxu1 %v8826_v36  ;;  %4042 = vmatprep.mubr.bf16.mxu0 %v8826_v36  ;;  %v6246_v42 = vld [vmem:[#allocation2 + $0xc1] sm:$0xff] }
 0x2d4   : > { %v1458_v18 = vpop.f32.mrf.mxu1  ;;  %v1997_v46 = vpop.f32.mrf.mxu0  ;;  %v7981_v17 = vpack.c.bf16 %v6247_v22, %v6246_v42  ;;  %v6249_v42 = vld [vmem:[#allocation2 + $0xe1] sm:$0xff] }
 0x2d5   : > { %8849 = vst [vmem:[#allocation33_spill] sm:$0xff] %v7970_v15  ;;  %v7975_v5 = vadd.f32 %v1985_v60, %v1531_v34  ;;  %v1532_v26 = vadd.f32 %v1458_v18, %v7432_v28 }
 0x2d6   : > { %v1460_v59 = vpop.f32.mrf.mxu1  ;;  %v1999_v20 = vpop.f32.mrf.mxu0 }
 0x2d7   : > { %8850 = vst [vmem:[#allocation34_spill] sm:$0xff] %v7975_v5  ;;  %v7978_v38 = vadd.f32 %v1987_v32, %v1532_v26  ;;  %v1533_v49 = vadd.f32 %v1460_v59, %v7430_v33 }
 0x2d8   : > { %v1462_v7 = vpop.f32.mrf.mxu1  ;;  %v2001_v15 = vpop.f32.mrf.mxu0 }
 0x2d9   : > { %8851 = vst [vmem:[#allocation35_spill] sm:$0xff] %v7978_v38  ;;  %v7983_v8 = vadd.f32 %v1989_v0, %v1533_v49  ;;  %v1534_v12 = vadd.f32 %v1462_v7, %v7432_v28  ;;  %v6248_v49 = vld [vmem:[#allocation2 + $0xd9] sm:$0xff] }
 0x2da   : > { %v1466_v60 = vpop.f32.mrf.mxu1  ;;  %3504 = vmatmul.mubr.bf16.gmra.mxu1 %v7981_v17  ;;  %v2906_v34 = vpop.f32.mrf.mxu0  ;;  %4043 = vmatmul.mubr.bf16.gmra.mxu0 %v7645_v54 }
 0x2db   : > { %8852 = vst [vmem:[#allocation36_spill] sm:$0xff] %v7983_v8  ;;  %v7988_v18 = vadd.f32 %v1991_v62, %v1534_v12  ;;  %v1535_v32 = vadd.f32 %v1466_v60, %v7430_v33  ;;  %3513 = vmatprep.mubr.bf16.mxu1 %v8826_v36  ;;  %4052 = vmatprep.mubr.bf16.mxu0 %v8826_v36 }
 0x2dc   : > { %v1468_v26 = vpop.f32.mrf.mxu1  ;;  %v2908_v22 = vpop.f32.mrf.mxu0  ;;  %v7999_v12 = vpack.c.bf16 %v6249_v42, %v6248_v49 }
 0x2dd   : > { %8853 = vst [vmem:[#allocation37_spill] sm:$0xff] %v7988_v18  ;;  %v7993_v0 = vadd.f32 %v1995_v23, %v1535_v32  ;;  %v1536_v59 = vadd.f32 %v1468_v26, %v7432_v28 }
 0x2de   : > { %v1470_v7 = vpop.f32.mrf.mxu1  ;;  %v2910_v8 = vpop.f32.mrf.mxu0 }
 0x2df   : > { %v7996_v38 = vadd.f32 %v1997_v46, %v1536_v59  ;;  %v1537_v54 = vadd.f32 %v1470_v7, %v7430_v33  ;;  %v1478_v46 = vadd.f32 %v7643_v25, %v7432_v28  ;;  %v6250_v7 = vld [vmem:[#allocation2 + $0xf1] sm:$0xff] }
 0x2e0   : > { %v1472_v62 = vpop.f32.mrf.mxu1  ;;  %v2912_v60 = vpop.f32.mrf.mxu0 }
 0x2e1   : > { %v8001_v18 = vadd.f32 %v1999_v20, %v1537_v54  ;;  %v1538_v5 = vadd.f32 %v1472_v62, %v7432_v28  ;;  %v6251_v54 = vld [vmem:[#allocation2 + $0xf9] sm:$0xff]  ;;  %v2007_v28 = vadd.f32 %v7635_v4, %v1478_v46 }
 0x2e2   : > { %v2374_v23 = vpop.f32.mrf.mxu1  ;;  %3514 = vmatmul.mubr.bf16.gmra.mxu1 %v7999_v12  ;;  %v2916_v32 = vpop.f32.mrf.mxu0  ;;  %4053 = vmatmul.mubr.bf16.gmra.mxu0 %v7658_v24 }
 0x2e3   : > { %v8008_v26 = vadd.f32 %v2001_v15, %v1538_v5  ;;  %v2533_v33 = vadd.f32 %v2374_v23, %v7440_v11  ;;  %3523 = vmatprep.mubr.bf16.mxu1 %v8826_v36  ;;  %4062 = vmatprep.mubr.bf16.mxu0 %v8826_v36  ;;  %v8020_v5 = vpack.c.bf16 %v6251_v54, %v6250_v7  ;;  %v6253_v7 = vld [vmem:[#allocation2 + $0x111] sm:$0xff] }
 0x2e4   : > { %v2376_v20 = vpop.f32.mrf.mxu1  ;;  %v2918_v59 = vpop.f32.mrf.mxu0 }
 0x2e5   : > { %8854 = vst [vmem:[#allocation38_spill] sm:$0xff] %v8008_v26  ;;  %v8013_v49 = vadd.f32 %v2906_v34, %v2533_v33  ;;  %v2534_v42 = vadd.f32 %v2376_v20, %v7442_v51 }
 0x2e6   : > { %v2378_v24 = vpop.f32.mrf.mxu1  ;;  %v2920_v62 = vpop.f32.mrf.mxu0 }
 0x2e7   : > { %v8017_v25 = vadd.f32 %v2908_v22, %v2534_v42  ;;  %v2535_v11 = vadd.f32 %v2378_v24, %v7444_v57  ;;  %v6252_v42 = vld [vmem:[#allocation2 + $0x109] sm:$0xff] }
 0x2e8   : > { %v2380_v15 = vpop.f32.mrf.mxu1  ;;  %v2922_v23 = vpop.f32.mrf.mxu0 }
 0x2e9   : > { %v8022_v26 = vadd.f32 %v2910_v8, %v2535_v11  ;;  %v2536_v34 = vadd.f32 %v2380_v15, %v2007_v28 }
 0x2ea   : > { %v2384_v33 = vpop.f32.mrf.mxu1  ;;  %3524 = vmatmul.mubr.bf16.gmra.mxu1 %v8020_v5  ;;  %v2926_v51 = vpop.f32.mrf.mxu0  ;;  %4063 = vmatmul.mubr.bf16.gmra.mxu0 %v7676_v3 }
 0x2eb   : > { %v8026_v20 = vadd.f32 %v2912_v60, %v2536_v34  ;;  %v2537_v4 = vadd.f32 %v2384_v33, %v7652_v52  ;;  %3533 = vmatprep.mubr.bf16.mxu1 %v8826_v36  ;;  %4072 = vmatprep.mubr.bf16.mxu0 %v8826_v36  ;;  %v8037_v52 = vpack.c.bf16 %v6253_v7, %v6252_v42 }
 0x2ec   : > { %v2386_v57 = vpop.f32.mrf.mxu1  ;;  %v2928_v22 = vpop.f32.mrf.mxu0 }
 0x2ed   : > { %v8031_v46 = vadd.f32 %v2916_v32, %v2537_v4  ;;  %v2538_v8 = vadd.f32 %v2386_v57, %v7655_v43  ;;  %v6254_v57 = vld [vmem:[#allocation2 + $0x121] sm:$0xff] }
 0x2ee   : > { %v2388_v54 = vpop.f32.mrf.mxu1  ;;  %v2930_v24 = vpop.f32.mrf.mxu0 }
 0x2ef   : > { %v8034_v28 = vadd.f32 %v2918_v59, %v2538_v8  ;;  %v2539_v3 = vadd.f32 %v2388_v54, %v7660_v39  ;;  %v6255_v8 = vld [vmem:[#allocation2 + $0x129] sm:$0xff] }
 0x2f0   : > { %v2390_v60 = vpop.f32.mrf.mxu1  ;;  %v2932_v11 = vpop.f32.mrf.mxu0 }
 0x2f1   : > { %v8039_v15 = vadd.f32 %v2920_v62, %v2539_v3  ;;  %v2540_v34 = vadd.f32 %v2390_v60, %v7665_v1 }
 0x2f2   : > { %v2394_v32 = vpop.f32.mrf.mxu1  ;;  %3534 = vmatmul.mubr.bf16.gmra.mxu1 %v8037_v52  ;;  %v2936_v43 = vpop.f32.mrf.mxu0  ;;  %4073 = vmatmul.mubr.bf16.gmra.mxu0 %v7694_v2 }
 0x2f3   : > { %v8044_v33 = vadd.f32 %v2922_v23, %v2540_v34  ;;  %v2541_v59 = vadd.f32 %v2394_v32, %v7670_v40  ;;  %3543 = vmatprep.mubr.bf16.mxu1 %v8826_v36  ;;  %4082 = vmatprep.mubr.bf16.mxu0 %v8826_v36  ;;  %v8055_v40 = vpack.c.bf16 %v6255_v8, %v6254_v57 }
 0x2f4   : > { %v2396_v39 = vpop.f32.mrf.mxu1  ;;  %v2938_v4 = vpop.f32.mrf.mxu0 }
 0x2f5   : > { %v8049_v62 = vadd.f32 %v2926_v51, %v2541_v59  ;;  %v2542_v1 = vadd.f32 %v2396_v39, %v7673_v19  ;;  %v6256_v39 = vld [vmem:[#allocation2 + $0x139] sm:$0xff] }
 0x2f6   : > { %v2398_v42 = vpop.f32.mrf.mxu1  ;;  %v2940_v7 = vpop.f32.mrf.mxu0 }
 0x2f7   : > { %v8052_v54 = vadd.f32 %v2928_v22, %v2542_v1  ;;  %v2543_v2 = vadd.f32 %v2398_v42, %v7678_v48  ;;  %v6257_v1 = vld [vmem:[#allocation2 + $0x141] sm:$0xff] }
 0x2f8   : > { %v2400_v23 = vpop.f32.mrf.mxu1  ;;  %v2942_v3 = vpop.f32.mrf.mxu0 }
 0x2f9   : > { %v8057_v60 = vadd.f32 %v2930_v24, %v2543_v2  ;;  %v2544_v34 = vadd.f32 %v2400_v23, %v7683_v14 }
 0x2fa   : > { %v2404_v51 = vpop.f32.mrf.mxu1  ;;  %3544 = vmatmul.mubr.bf16.gmra.mxu1 %v8055_v40  ;;  %v2946_v19 = vpop.f32.mrf.mxu0  ;;  %4083 = vmatmul.mubr.bf16.gmra.mxu0 %v7712_v45 }
 0x2fb   : > { %v8062_v32 = vadd.f32 %v2932_v11, %v2544_v34  ;;  %v2545_v22 = vadd.f32 %v2404_v51, %v7688_v53  ;;  %3553 = vmatprep.mubr.bf16.mxu1 %v8826_v36  ;;  %4092 = vmatprep.mubr.bf16.mxu0 %v8826_v36  ;;  %v8073_v53 = vpack.c.bf16 %v6257_v1, %v6256_v39 }
 0x2fc   : > { %v2406_v48 = vpop.f32.mrf.mxu1  ;;  %v2948_v59 = vpop.f32.mrf.mxu0 }
 0x2fd   : > { %v8067_v24 = vadd.f32 %v2936_v43, %v2545_v22  ;;  %v2546_v14 = vadd.f32 %v2406_v48, %v7691_v10  ;;  %v6258_v48 = vld [vmem:[#allocation2 + $0x151] sm:$0xff] }
 0x2fe   : > { %v2408_v57 = vpop.f32.mrf.mxu1  ;;  %v2950_v8 = vpop.f32.mrf.mxu0 }
 0x2ff   : > { %v8070_v42 = vadd.f32 %v2938_v4, %v2546_v14  ;;  %v2547_v45 = vadd.f32 %v2408_v57, %v7696_v41  ;;  %v6259_v14 = vld [vmem:[#allocation2 + $0x159] sm:$0xff] }
 0x300   : > { %v2410_v11 = vpop.f32.mrf.mxu1  ;;  %v2952_v2 = vpop.f32.mrf.mxu0 }
 0x301   : > { %v8075_v23 = vadd.f32 %v2940_v7, %v2547_v45  ;;  %v2548_v34 = vadd.f32 %v2410_v11, %v7701_v55 }
 0x302   : > { %v2414_v43 = vpop.f32.mrf.mxu1  ;;  %3554 = vmatmul.mubr.bf16.gmra.mxu1 %v8073_v53  ;;  %v2956_v10 = vpop.f32.mrf.mxu0  ;;  %4093 = vmatmul.mubr.bf16.gmra.mxu0 %v7730_v16 }
 0x303   : > { %v8080_v51 = vadd.f32 %v2942_v3, %v2548_v34  ;;  %v2549_v4 = vadd.f32 %v2414_v43, %v7706_v21  ;;  %3563 = vmatprep.mubr.bf16.mxu1 %v8826_v36  ;;  %4102 = vmatprep.mubr.bf16.mxu0 %v8826_v36  ;;  %v8091_v21 = vpack.c.bf16 %v6259_v14, %v6258_v48  ;;  %v6310_v48 = vld [vmem:[#allocation2 + $0x182] sm:$0xff]  ;;  %v6311_v14 = vld [vmem:[#allocation2 + $0x18a] sm:$0xff] }
 0x304   : > { %v2416_v41 = vpop.f32.mrf.mxu1  ;;  %v2958_v22 = vpop.f32.mrf.mxu0 }
 0x305   : > { %v8085_v7 = vadd.f32 %v2946_v19, %v2549_v4  ;;  %v2550_v55 = vadd.f32 %v2416_v41, %v7709_v44  ;;  %v6260_v4 = vld [vmem:[#allocation2 + $0x169] sm:$0xff] }
 0x306   : > { %v2418_v39 = vpop.f32.mrf.mxu1  ;;  %v2960_v1 = vpop.f32.mrf.mxu0 }
 0x307   : > { %v8088_v57 = vadd.f32 %v2948_v59, %v2550_v55  ;;  %v2551_v16 = vadd.f32 %v2418_v39, %v7714_v31  ;;  %v6261_v55 = vld [vmem:[#allocation2 + $0x171] sm:$0xff] }
 0x308   : > { %v2420_v3 = vpop.f32.mrf.mxu1  ;;  %v2962_v45 = vpop.f32.mrf.mxu0 }
 0x309   : > { %v8093_v11 = vadd.f32 %v2950_v8, %v2551_v16  ;;  %v2552_v34 = vadd.f32 %v2420_v3, %v7719_v47  ;;  %v8109_v3 = vpack.c.bf16 %v6261_v55, %v6260_v4 }
 0x30a   : > { %v2424_v19 = vpop.f32.mrf.mxu1  ;;  %3564 = vmatmul.mubr.bf16.gmra.mxu1 %v8091_v21  ;;  %v2966_v44 = vpop.f32.mrf.mxu0  ;;  %4103 = vmatmul.mubr.bf16.gmra.mxu0 %v7747_v37 }
 0x30b   : > { %v8098_v43 = vadd.f32 %v2952_v2, %v2552_v34  ;;  %v2553_v59 = vadd.f32 %v2424_v19, %v7724_v35  ;;  %3573 = vmatprep.mubr.bf16.mxu1 %v8826_v36  ;;  %4112 = vmatprep.mubr.bf16.mxu0 %v8826_v36  ;;  %v3769_v19 = vpack.c.bf16 %v6311_v14, %v6310_v48  ;;  %v6263_v48 = vld [vmem:[#allocation2 + $0x189] sm:$0xff] }
 0x30c   : > { %v2426_v31 = vpop.f32.mrf.mxu1  ;;  %v2968_v8 = vpop.f32.mrf.mxu0 }
 0x30d   : > { %8855 = vst [vmem:[#allocation39_spill] sm:$0xff] %v8098_v43  ;;  %v8103_v41 = vadd.f32 %v2956_v10, %v2553_v59  ;;  %v2554_v47 = vadd.f32 %v2426_v31, %v7727_v61 }
 0x30e   : > { %v2428_v39 = vpop.f32.mrf.mxu1  ;;  %v2970_v37 = vpop.f32.mrf.mxu0 }
 0x30f   : > { %v8106_v2 = vadd.f32 %v2958_v22, %v2554_v47  ;;  %v2555_v35 = vadd.f32 %v2428_v39, %v7732_v9 }
 0x310   : > { %v2430_v16 = vpop.f32.mrf.mxu1  ;;  %v2972_v34 = vpop.f32.mrf.mxu0 }
 0x311   : > { %8856 = vst [vmem:[#allocation40_spill] sm:$0xff] %v8106_v2  ;;  %v8111_v43 = vadd.f32 %v2960_v1, %v2555_v35  ;;  %v2556_v10 = vadd.f32 %v2430_v16, %v7736_v27  ;;  %v8860_v1 = vld [vmem:[#allocation4_spill] sm:$0xff]  ;;  %v6262_v27 = vld [vmem:[#allocation2 + $0x181] sm:$0xff] }
 0x312   : > { %v2434_v59 = vpop.f32.mrf.mxu1  ;;  %3574 = vmatmul.mubr.bf16.gmra.mxu1 %v8109_v3  ;;  %v2976_v61 = vpop.f32.mrf.mxu0  ;;  %4113 = vmatmul.mubr.bf16.gmra.mxu0 %v3769_v19 }
 0x313   : > { %8857 = vst [vmem:[#allocation41_spill] sm:$0xff] %v8111_v43  ;;  %v8115_v31 = vadd.f32 %v2962_v45, %v2556_v10  ;;  %v2557_v22 = vadd.f32 %v2434_v59, %v7741_v58  ;;  %3583 = vmatprep.mubr.bf16.mxu1 %v8826_v36  ;;  %5023 = vmatprep.mubr.bf16.mxu0 %v8826_v36  ;;  %v8862_v45 = vld [vmem:[#allocation5_spill] sm:$0xff] }
 0x314   : > { %v2436_v9 = vpop.f32.mrf.mxu1  ;;  %v2978_v4 = vpop.f32.mrf.mxu0  ;;  %v8126_v58 = vpack.c.bf16 %v6263_v48, %v6262_v27  ;;  %v6729_v59 = vld [vmem:[%s8813_s3 + $0x470] ss:$8 sps:$4 sm:$0xff]   ;;  %v8866_v48 = vld [vmem:[#allocation7_spill] sm:$0xff] }
 0x315   : > { %8858 = vst [vmem:[#allocation42_spill] sm:$0xff] %v8115_v31  ;;  %v8120_v47 = vadd.f32 %v2966_v44, %v2557_v22  ;;  %v2558_v55 = vadd.f32 %v2436_v9, %v8860_v1  ;;  %v8864_v22 = vld [vmem:[#allocation6_spill] sm:$0xff] }
 0x316   : > { %v2438_v14 = vpop.f32.mrf.mxu1  ;;  %v2980_v39 = vpop.f32.mrf.mxu0  ;;  %v6734_v1 = vld [vmem:[%s8813_s3 + $0x464] ss:$8 sps:$4 sm:$0xff]  }
 0x317   : > { %8859 = vst [vmem:[#allocation43_spill] sm:$0xff] %v8120_v47  ;;  %v8123_v35 = vadd.f32 %v2968_v8, %v2558_v55  ;;  %v2559_v16 = vadd.f32 %v2438_v14, %v8862_v45  ;;  %v6328_v47 = vld [vmem:[#allocation2 + $0x30] sm:$0xff] }
 0x318   : > { %v2440_v19 = vpop.f32.mrf.mxu1  ;;  %v2982_v10 = vpop.f32.mrf.mxu0 }
 0x319   : > { %8861 = vst [vmem:[#allocation4_spill] sm:$0xff] %v8123_v35  ;;  %v8131_v44 = vadd.f32 %v2970_v37, %v2559_v16  ;;  %v2560_v9 = vadd.f32 %v2440_v19, %v8864_v22  ;;  %v6732_v16 = vld [vmem:[%s8813_s3 + $0x460] ss:$8 sps:$4 sm:$0xff]   ;;  %v8868_v22 = vld [vmem:[#allocation8_spill] sm:$0xff] }
 0x31a   : > { %v2444_v8 = vpop.f32.mrf.mxu1  ;;  %3584 = vmatmul.mubr.bf16.gmra.mxu1 %v8126_v58  ;;  %v2986_v55 = vpop.f32.mrf.mxu0  ;;  %5024 = vmatmul.mubr.bf16.vlgmr.msra.gmra.mxu0 %v7813_v50  ;;  %v6329_v50 = vld [vmem:[#allocation2 + $0x38] sm:$0xff] }
 0x31b   : > { %8863 = vst [vmem:[#allocation5_spill] sm:$0xff] %v8131_v44  ;;  %v8139_v27 = vadd.f32 %v2972_v34, %v2560_v9  ;;  %v2561_v14 = vadd.f32 %v2444_v8, %v8866_v48  ;;  %4494 = vmatprep.mubr.bf16.mxu1 %v8826_v36  ;;  %5033 = vmatprep.mubr.bf16.mxu0 %v8826_v36  ;;  %v6737_v34 = vld [vmem:[%s8813_s3 + $0x454] ss:$8 sps:$4 sm:$0xff]  }
 0x31c   : > { %v2446_v37 = vpop.f32.mrf.mxu1  ;;  %v2988_v45 = vpop.f32.mrf.mxu0  ;;  %5521 = vmatpush1.bf16.msra.mxu0 %v6729_v59  ;;  %v4286_v43 = vpack.c.bf16 %v6329_v50, %v6328_v47  ;;  %v6740_v47 = vld [vmem:[%s8813_s3 + $0x444] ss:$8 sps:$4 sm:$0xff]   ;;  %v8875_v50 = vld [vmem:[#allocation12_spill] sm:$0xff] }
 0x31d   : > { %8865 = vst [vmem:[#allocation6_spill] sm:$0xff] %v8139_v27  ;;  %v8147_v19 = vadd.f32 %v2976_v61, %v2561_v14  ;;  %v2562_v44 = vadd.f32 %v2446_v37, %v8868_v22  ;;  %5522 = vmatprep.subr.bf16.mxu0 %v6734_v1  ;;  %v8869_v27 = vld [vmem:[#allocation9_spill] sm:$0xff]  ;;  %v8871_v14 = vld [vmem:[#allocation10_spill] sm:$0xff] }
 0x31e   : > { %v2448_v9 = vpop.f32.mrf.mxu1  ;;  %v2990_v8 = vpop.f32.mrf.mxu0  ;;  %v6735_v22 = vld [vmem:[%s8813_s3 + $0x450] ss:$8 sps:$4 sm:$0xff]  }
 0x31f   : > { %8867 = vst [vmem:[#allocation7_spill] sm:$0xff] %v8147_v19  ;;  %v8153_v48 = vadd.f32 %v2978_v4, %v2562_v44  ;;  %v2563_v35 = vadd.f32 %v2448_v9, %v8869_v27  ;;  %v6331_v9 = vld [vmem:[#allocation2 + $0x50] sm:$0xff] }
 0x320   : > { %v2450_v31 = vpop.f32.mrf.mxu1  ;;  %v2992_v2 = vpop.f32.mrf.mxu0  ;;  %5523 = vmatpush1.bf16.msra.mxu0 %v6732_v16 }
 0x321   : > { %v8156_v61 = vadd.f32 %v2980_v39, %v2563_v35  ;;  %v2564_v37 = vadd.f32 %v2450_v31, %v8871_v14  ;;  %5524 = vmatprep.subr.bf16.mxu0 %v6737_v34  ;;  %v8873_v39 = vld [vmem:[#allocation11_spill] sm:$0xff] }
 0x322   : > { %v2454_v19 = vpop.f32.mrf.mxu1  ;;  %4495 = vmatmul.mubr.bf16.vlgmr.msra.gmra.mxu1 %v4286_v43  ;;  %v2996_v4 = vpop.f32.mrf.mxu0  ;;  %5034 = vmatmul.mubr.bf16.gmra.mxu0 %v7855_v29 }
 0x323   : > { %8870 = vst [vmem:[#allocation8_spill] sm:$0xff] %v8156_v61  ;;  %v8166_v44 = vadd.f32 %v2982_v10, %v2564_v37  ;;  %v2565_v35 = vadd.f32 %v2454_v19, %v8873_v39  ;;  %6484 = vmatpush1.bf16.msra.mxu1 %v6729_v59  ;;  %4504 = vmatprep.mubr.bf16.mxu1 %v8826_v36  ;;  %v6738_v10 = vld [vmem:[%s8813_s3 + $0x440] ss:$8 sps:$4 sm:$0xff]   ;;  %v8877_v37 = vld [vmem:[#allocation13_spill] sm:$0xff] }
 0x324   : > { %v2456_v31 = vpop.f32.mrf.mxu1  ;;  %v2998_v27 = vpop.f32.mrf.mxu0  ;;  %5043 = vmatprep.mubr.bf16.mxu0 %v8826_v36  ;;  %6477 = vmatprep.subr.bf16.mxu1 %v6734_v1 }
 0x325   : > { %8872 = vst [vmem:[#allocation9_spill] sm:$0xff] %v8166_v44  ;;  %v8171_v43 = vadd.f32 %v2986_v55, %v2565_v35  ;;  %v2566_v29 = vadd.f32 %v2456_v31, %v8875_v50  ;;  %5525 = vmatpush1.bf16.msra.mxu0 %v6735_v22  ;;  %v6330_v44 = vld [vmem:[#allocation2 + $0x48] sm:$0xff]  ;;  %v6743_v31 = vld [vmem:[%s8813_s3 + $0x434] ss:$8 sps:$4 sm:$0xff]  }
 0x326   : > { %v2458_v14 = vpop.f32.mrf.mxu1  ;;  %v3000_v19 = vpop.f32.mrf.mxu0  ;;  %5526 = vmatprep.subr.bf16.mxu0 %v6740_v47  ;;  %v4287_v55 = vpack.c.bf16 %v6331_v9, %v6330_v44 }
 0x327   : > { %8874 = vst [vmem:[#allocation10_spill] sm:$0xff] %v8171_v43  ;;  %v8177_v59 = vadd.f32 %v2988_v45, %v2566_v29  ;;  %v2567_v39 = vadd.f32 %v2458_v14, %v8877_v37  ;;  %6485 = vmatpush1.bf16.msra.mxu1 %v6732_v16  ;;  %v8879_v43 = vld [vmem:[#allocation14_spill] sm:$0xff]  ;;  %v6741_v45 = vld [vmem:[%s8813_s3 + $0x430] ss:$8 sps:$4 sm:$0xff]  }
 0x328   : > { %v2460_v1 = vpop.f32.mrf.mxu1  ;;  %v3002_v35 = vpop.f32.mrf.mxu0  ;;  %6478 = vmatprep.subr.bf16.mxu1 %v6737_v34  ;;  %v8880_v14 = vld [vmem:[#allocation21_spill] sm:$0xff]  ;;  %v6746_v34 = vld [vmem:[%s8813_s3 + $0x424] ss:$8 sps:$4 sm:$0xff]  }
 0x329   : > { %8876 = vst [vmem:[#allocation11_spill] sm:$0xff] %v8177_v59  ;;  %v8183_v50 = vadd.f32 %v2990_v8, %v2567_v39  ;;  %v2568_v61 = vadd.f32 %v2460_v1, %v8879_v43  ;;  %5527 = vmatpush1.bf16.msra.mxu0 %v6738_v10  ;;  %v8882_v8 = vld [vmem:[#allocation15_spill] sm:$0xff]  ;;  %v8884_v1 = vld [vmem:[#allocation16_spill] sm:$0xff] }
 0x32a   : > { %v2464_v29 = vpop.f32.mrf.mxu1  ;;  %4505 = vmatmul.mubr.bf16.gmra.mxu1 %v4287_v55  ;;  %v3006_v16 = vpop.f32.mrf.mxu0  ;;  %5044 = vmatmul.mubr.bf16.gmra.mxu0 %v8880_v14  ;;  %v6333_v14 = vld [vmem:[#allocation2 + $0x68] sm:$0xff] }
 0x32b   : > { %8878 = vst [vmem:[#allocation12_spill] sm:$0xff] %v8183_v50  ;;  %v8193_v44 = vadd.f32 %v2992_v2, %v2568_v61  ;;  %v2569_v9 = vadd.f32 %v2464_v29, %v8882_v8  ;;  %4514 = vmatprep.mubr.bf16.mxu1 %v8826_v36  ;;  %5053 = vmatprep.mubr.bf16.mxu0 %v8826_v36  ;;  %v6744_v2 = vld [vmem:[%s8813_s3 + $0x420] ss:$8 sps:$4 sm:$0xff]  }
 0x32c   : > { %v2466_v43 = vpop.f32.mrf.mxu1  ;;  %v3008_v37 = vpop.f32.mrf.mxu0  ;;  %6486 = vmatpush1.bf16.msra.mxu1 %v6735_v22  ;;  %5528 = vmatprep.subr.bf16.mxu0 %v6743_v31  ;;  %v6332_v22 = vld [vmem:[#allocation2 + $0x60] sm:$0xff] }
 0x32d   : > { %8881 = vst [vmem:[#allocation13_spill] sm:$0xff] %v8193_v44  ;;  %v8198_v39 = vadd.f32 %v2996_v4, %v2569_v9  ;;  %v2570_v55 = vadd.f32 %v2466_v43, %v8884_v1  ;;  %6479 = vmatprep.subr.bf16.mxu1 %v6740_v47  ;;  %5529 = vmatpush1.bf16.msra.mxu0 %v6741_v45  ;;  %v8886_v44 = vld [vmem:[#allocation17_spill] sm:$0xff]  ;;  %v8888_v1 = vld [vmem:[#allocation18_spill] sm:$0xff] }
 0x32e   : > { %v2468_v61 = vpop.f32.mrf.mxu1  ;;  %v3010_v29 = vpop.f32.mrf.mxu0  ;;  %5530 = vmatprep.subr.bf16.mxu0 %v6746_v34  ;;  %v4288_v4 = vpack.c.bf16 %v6333_v14, %v6332_v22  ;;  %v6749_v47 = vld [vmem:[%s8813_s3 + $0x414] ss:$8 sps:$4 sm:$0xff]  }
 0x32f   : > { %8883 = vst [vmem:[#allocation14_spill] sm:$0xff] %v8198_v39  ;;  %v8204_v8 = vadd.f32 %v2998_v27, %v2570_v55  ;;  %v2571_v50 = vadd.f32 %v2468_v61, %v8886_v44  ;;  %v6747_v27 = vld [vmem:[%s8813_s3 + $0x410] ss:$8 sps:$4 sm:$0xff]  }
 0x330   : > { %v2470_v59 = vpop.f32.mrf.mxu1  ;;  %v3012_v9 = vpop.f32.mrf.mxu0  ;;  %6487 = vmatpush1.bf16.msra.mxu1 %v6738_v10  ;;  %v6752_v10 = vld [vmem:[%s8813_s3 + $0x404] ss:$8 sps:$4 sm:$0xff]   ;;  %v8892_v22 = vld [vmem:[#allocation20_spill] sm:$0xff] }
 0x331   : > { %8885 = vst [vmem:[#allocation21_spill] sm:$0xff] %v8204_v8  ;;  %v8210_v43 = vadd.f32 %v3000_v19, %v2571_v50  ;;  %v2572_v39 = vadd.f32 %v2470_v59, %v8888_v1  ;;  %6480 = vmatprep.subr.bf16.mxu1 %v6743_v31  ;;  %5531 = vmatpush1.bf16.msra.mxu0 %v6744_v2  ;;  %v8890_v19 = vld [vmem:[#allocation19_spill] sm:$0xff] }
 0x332   : > { %v2474_v44 = vpop.f32.mrf.mxu1  ;;  %4515 = vmatmul.mubr.bf16.gmra.mxu1 %v4288_v4  ;;  %v3016_v55 = vpop.f32.mrf.mxu0  ;;  %5054 = vmatmul.mubr.bf16.gmra.mxu0 %v7927_v30  ;;  %v6335_v4 = vld [vmem:[#allocation2 + $0x80] sm:$0xff] }
 0x333   : > { %8887 = vst [vmem:[#allocation15_spill] sm:$0xff] %v8210_v43  ;;  %v8220_v14 = vadd.f32 %v3002_v35, %v2572_v39  ;;  %v2573_v50 = vadd.f32 %v2474_v44, %v8890_v19  ;;  %4524 = vmatprep.mubr.bf16.mxu1 %v8826_v36  ;;  %5063 = vmatprep.mubr.bf16.mxu0 %v8826_v36  ;;  %v6750_v35 = vld [vmem:[%s8813_s3 + $0x400] ss:$8 sps:$4 sm:$0xff]  }
 0x334   : > { %v2476_v59 = vpop.f32.mrf.mxu1  ;;  %v3018_v31 = vpop.f32.mrf.mxu0  ;;  %6488 = vmatpush1.bf16.msra.mxu1 %v6741_v45  ;;  %5532 = vmatprep.subr.bf16.mxu0 %v6749_v47  ;;  %v8893_v19 = vld [vmem:[#allocation22_spill] sm:$0xff]  ;;  %v6334_v45 = vld [vmem:[#allocation2 + $0x78] sm:$0xff] }
 0x335   : > { %8889 = vst [vmem:[#allocation16_spill] sm:$0xff] %v8220_v14  ;;  %v8225_v61 = vadd.f32 %v3006_v16, %v2573_v50  ;;  %v2574_v30 = vadd.f32 %v2476_v59, %v8892_v22  ;;  %6481 = vmatprep.subr.bf16.mxu1 %v6746_v34  ;;  %5533 = vmatpush1.bf16.msra.mxu0 %v6747_v27  ;;  %v8894_v34 = vld [vmem:[#allocation23_spill] sm:$0xff] }
 0x336   : > { %v2478_v39 = vpop.f32.mrf.mxu1  ;;  %v3020_v1 = vpop.f32.mrf.mxu0  ;;  %5534 = vmatprep.subr.bf16.mxu0 %v6752_v10  ;;  %v4289_v16 = vpack.c.bf16 %v6335_v4, %v6334_v45 }
 0x337   : > { %8891 = vst [vmem:[#allocation17_spill] sm:$0xff] %v8225_v61  ;;  %v8231_v44 = vadd.f32 %v3008_v37, %v2574_v30  ;;  %v2575_v14 = vadd.f32 %v2478_v39, %v8893_v19 }
 0x338   : > { %v2480_v43 = vpop.f32.mrf.mxu1  ;;  %v3022_v50 = vpop.f32.mrf.mxu0  ;;  %6489 = vmatpush1.bf16.msra.mxu1 %v6744_v2 }
 0x339   : > { %v8234_v59 = vadd.f32 %v3010_v29, %v2575_v14  ;;  %v2576_v22 = vadd.f32 %v2480_v43, %v8894_v34  ;;  %6482 = vmatprep.subr.bf16.mxu1 %v6749_v47  ;;  %5535 = vmatpush1.bf16.msra.mxu0 %v6750_v35  ;;  %v6337_v43 = vld [vmem:[#allocation2 + $0x98] sm:$0xff] }
 0x33a   : > { %v2484_v61 = vpop.f32.mrf.mxu1  ;;  %4525 = vmatmul.mubr.bf16.gmra.mxu1 %v4289_v16  ;;  %v3026_v8 = vpop.f32.mrf.mxu0  ;;  %5064 = vmatmul.mubr.bf16.gmra.mxu0 %v7945_v13 }
 0x33b   : > { %v8238_v37 = vadd.f32 %v3012_v9, %v2576_v22  ;;  %v2577_v30 = vadd.f32 %v2484_v61, %v7921_v56  ;;  %4534 = vmatprep.mubr.bf16.mxu1 %v8826_v36  ;;  %5073 = vmatprep.mubr.bf16.mxu0 %v8826_v36  ;;  %v8895_v9 = vld [vmem:[#allocation24_spill] sm:$0xff] }
 0x33c   : > { %v2486_v2 = vpop.f32.mrf.mxu1  ;;  %v3028_v29 = vpop.f32.mrf.mxu0  ;;  %6490 = vmatpush1.bf16.msra.mxu1 %v6747_v27  ;;  %v6336_v56 = vld [vmem:[#allocation2 + $0x90] sm:$0xff]  ;;  %v8897_v27 = vld [vmem:[#allocation25_spill] sm:$0xff] }
 0x33d   : > { %v8243_v14 = vadd.f32 %v3016_v55, %v2577_v30  ;;  %v2578_v47 = vadd.f32 %v2486_v2, %v7924_v6  ;;  %6483 = vmatprep.subr.bf16.mxu1 %v6752_v10  ;;  %v4290_v45 = vpack.c.bf16 %v6337_v43, %v6336_v56 }
 0x33e   : > { %v2488_v4 = vpop.f32.mrf.mxu1  ;;  %v3030_v39 = vpop.f32.mrf.mxu0 }
 0x33f   : > { %v8246_v13 = vadd.f32 %v3018_v31, %v2578_v47  ;;  %v2579_v19 = vadd.f32 %v2488_v4, %v8895_v9  ;;  %v8899_v31 = vld [vmem:[#allocation26_spill] sm:$0xff]  ;;  %v6339_v4 = vld [vmem:[#allocation2 + $0xb0] sm:$0xff] }
 0x340   : > { %v2490_v61 = vpop.f32.mrf.mxu1  ;;  %v3032_v16 = vpop.f32.mrf.mxu0  ;;  %6491 = vmatpush1.bf16.msra.mxu1 %v6750_v35 }
 0x341   : > { %v8249_v34 = vadd.f32 %v3020_v1, %v2579_v19  ;;  %v2580_v55 = vadd.f32 %v2490_v61, %v8897_v27  ;;  %v8900_v1 = vld [vmem:[#allocation27_spill] sm:$0xff] }
 0x342   : > { %v2494_v22 = vpop.f32.mrf.mxu1  ;;  %4535 = vmatmul.mubr.bf16.gmra.mxu1 %v4290_v45  ;;  %v3036_v6 = vpop.f32.mrf.mxu0  ;;  %5074 = vmatmul.mubr.bf16.gmra.mxu0 %v7963_v63  ;;  %v8902_v63 = vld [vmem:[#allocation28_spill] sm:$0xff]  ;;  %v6338_v61 = vld [vmem:[#allocation2 + $0xa8] sm:$0xff] }
 0x343   : > { %8896 = vst [vmem:[#allocation18_spill] sm:$0xff] %v8249_v34  ;;  %v8253_v10 = vadd.f32 %v3022_v50, %v2580_v55  ;;  %v2581_v30 = vadd.f32 %v2494_v22, %v8899_v31  ;;  %4544 = vmatprep.mubr.bf16.mxu1 %v8826_v36  ;;  %5083 = vmatprep.mubr.bf16.mxu0 %v8826_v36  ;;  %v8904_v31 = vld [vmem:[#allocation29_spill] sm:$0xff] }
 0x344   : > { %v2496_v2 = vpop.f32.mrf.mxu1  ;;  %v3038_v47 = vpop.f32.mrf.mxu0  ;;  %v4291_v27 = vpack.c.bf16 %v6339_v4, %v6338_v61 }
 0x345   : > { %8898 = vst [vmem:[#allocation19_spill] sm:$0xff] %v8253_v10  ;;  %v8258_v35 = vadd.f32 %v3026_v8, %v2581_v30  ;;  %v2582_v43 = vadd.f32 %v2496_v2, %v8900_v1  ;;  %v8906_v2 = vld [vmem:[#allocation30_spill] sm:$0xff] }
 0x346   : > { %v2498_v9 = vpop.f32.mrf.mxu1  ;;  %v3040_v19 = vpop.f32.mrf.mxu0 }
 0x347   : > { %v8261_v56 = vadd.f32 %v3028_v29, %v2582_v43  ;;  %v2583_v50 = vadd.f32 %v2498_v9, %v8902_v63  ;;  %v6341_v63 = vld [vmem:[#allocation2 + $0xc8] sm:$0xff] }
 0x348   : > { %v2500_v45 = vpop.f32.mrf.mxu1  ;;  %v3042_v55 = vpop.f32.mrf.mxu0 }
 0x349   : > { %8901 = vst [vmem:[#allocation20_spill] sm:$0xff] %v8261_v56  ;;  %v8264_v22 = vadd.f32 %v3030_v39, %v2583_v50  ;;  %v2584_v10 = vadd.f32 %v2500_v45, %v8904_v31  ;;  %v8907_v39 = vld [vmem:[#allocation31_spill] sm:$0xff] }
 0x34a   : > { %v2504_v34 = vpop.f32.mrf.mxu1  ;;  %4545 = vmatmul.mubr.bf16.gmra.mxu1 %v4291_v27  ;;  %v3046_v8 = vpop.f32.mrf.mxu0  ;;  %5084 = vmatmul.mubr.bf16.gmra.mxu0 %v7981_v17  ;;  %v8909_v17 = vld [vmem:[#allocation32_spill] sm:$0xff] }
 0x34b   : > { %8903 = vst [vmem:[#allocation22_spill] sm:$0xff] %v8264_v22  ;;  %v8268_v30 = vadd.f32 %v3032_v16, %v2584_v10  ;;  %v2585_v29 = vadd.f32 %v2504_v34, %v8906_v2  ;;  %4554 = vmatprep.mubr.bf16.mxu1 %v8826_v36  ;;  %5093 = vmatprep.mubr.bf16.mxu0 %v8826_v36  ;;  %v6340_v10 = vld [vmem:[#allocation2 + $0xc0] sm:$0xff] }
 0x34c   : > { %v2506_v1 = vpop.f32.mrf.mxu1  ;;  %v3048_v43 = vpop.f32.mrf.mxu0  ;;  %v4292_v34 = vpack.c.bf16 %v6341_v63, %v6340_v10 }
 0x34d   : > { %8905 = vst [vmem:[#allocation23_spill] sm:$0xff] %v8268_v30  ;;  %v8273_v4 = vadd.f32 %v3036_v6, %v2585_v29  ;;  %v2586_v9 = vadd.f32 %v2506_v1, %v8907_v39  ;;  %v8911_v30 = vld [vmem:[#allocation33_spill] sm:$0xff]  ;;  %v8913_v1 = vld [vmem:[#allocation34_spill] sm:$0xff] }
 0x34e   : > { %v2508_v50 = vpop.f32.mrf.mxu1  ;;  %v3050_v61 = vpop.f32.mrf.mxu0 }
 0x34f   : > { %v8276_v45 = vadd.f32 %v3038_v47, %v2586_v9  ;;  %v2587_v16 = vadd.f32 %v2508_v50, %v8909_v17  ;;  %v6343_v17 = vld [vmem:[#allocation2 + $0xe0] sm:$0xff] }
 0x350   : > { %v2510_v27 = vpop.f32.mrf.mxu1  ;;  %v3052_v31 = vpop.f32.mrf.mxu0 }
 0x351   : > { %8908 = vst [vmem:[#allocation24_spill] sm:$0xff] %v8276_v45  ;;  %v8279_v2 = vadd.f32 %v3040_v19, %v2587_v16  ;;  %v2588_v22 = vadd.f32 %v2510_v27, %v8911_v30  ;;  %v8914_v19 = vld [vmem:[#allocation35_spill] sm:$0xff]  ;;  %v6342_v30 = vld [vmem:[#allocation2 + $0xd8] sm:$0xff] }
 0x352   : > { %v2514_v56 = vpop.f32.mrf.mxu1  ;;  %4555 = vmatmul.mubr.bf16.gmra.mxu1 %v4292_v34  ;;  %v3056_v6 = vpop.f32.mrf.mxu0  ;;  %5094 = vmatmul.mubr.bf16.gmra.mxu0 %v7999_v12  ;;  %v8915_v12 = vld [vmem:[#allocation36_spill] sm:$0xff] }
 0x353   : > { %8910 = vst [vmem:[#allocation25_spill] sm:$0xff] %v8279_v2  ;;  %v8283_v29 = vadd.f32 %v3042_v55, %v2588_v22  ;;  %v2589_v47 = vadd.f32 %v2514_v56, %v8913_v1  ;;  %4564 = vmatprep.mubr.bf16.mxu1 %v8826_v36  ;;  %5103 = vmatprep.mubr.bf16.mxu0 %v8826_v36 }
 0x354   : > { %v2516_v39 = vpop.f32.mrf.mxu1  ;;  %v3058_v9 = vpop.f32.mrf.mxu0  ;;  %v4293_v56 = vpack.c.bf16 %v6343_v17, %v6342_v30  ;;  %v6345_v30 = vld [vmem:[#allocation2 + $0xf8] sm:$0xff] }
 0x355   : > { %8912 = vst [vmem:[#allocation26_spill] sm:$0xff] %v8283_v29  ;;  %v8288_v63 = vadd.f32 %v3046_v8, %v2589_v47  ;;  %v2590_v50 = vadd.f32 %v2516_v39, %v8914_v19  ;;  %v8916_v29 = vld [vmem:[#allocation37_spill] sm:$0xff] }
 0x356   : > { %v2518_v16 = vpop.f32.mrf.mxu1  ;;  %v3060_v10 = vpop.f32.mrf.mxu0 }
 0x357   : > { %v8291_v27 = vadd.f32 %v3048_v43, %v2590_v50  ;;  %v2591_v55 = vadd.f32 %v2518_v16, %v8915_v12 }
 0x358   : > { %v2520_v22 = vpop.f32.mrf.mxu1  ;;  %v3062_v34 = vpop.f32.mrf.mxu0 }
 0x359   : > { %v8294_v1 = vadd.f32 %v3050_v61, %v2591_v55  ;;  %v2592_v2 = vadd.f32 %v2520_v22, %v8916_v29  ;;  %v6344_v29 = vld [vmem:[#allocation2 + $0xf0] sm:$0xff]  ;;  %v8917_v55 = vld [vmem:[#allocation38_spill] sm:$0xff] }
 0x35a   : > { %v2524_v45 = vpop.f32.mrf.mxu1  ;;  %4565 = vmatmul.mubr.bf16.gmra.mxu1 %v4293_v56  ;;  %v3964_v8 = vpop.f32.mrf.mxu0  ;;  %5104 = vmatmul.mubr.bf16.gmra.mxu0 %v8020_v5 }
 0x35b   : > { %v8298_v47 = vadd.f32 %v3052_v31, %v2592_v2  ;;  %v2593_v39 = vadd.f32 %v2524_v45, %v7993_v0  ;;  %4574 = vmatprep.mubr.bf16.mxu1 %v8826_v36  ;;  %5113 = vmatprep.mubr.bf16.mxu0 %v8826_v36  ;;  %v4294_v0 = vpack.c.bf16 %v6345_v30, %v6344_v29  ;;  %v6347_v29 = vld [vmem:[#allocation2 + $0x110] sm:$0xff] }
 0x35c   : > { %v2526_v43 = vpop.f32.mrf.mxu1  ;;  %v3966_v19 = vpop.f32.mrf.mxu0 }
 0x35d   : > { %v8303_v50 = vadd.f32 %v3056_v6, %v2593_v39  ;;  %v2594_v61 = vadd.f32 %v2526_v43, %v7996_v38 }
 0x35e   : > { %v2528_v17 = vpop.f32.mrf.mxu1  ;;  %v3968_v16 = vpop.f32.mrf.mxu0 }
 0x35f   : > { %v8306_v12 = vadd.f32 %v3058_v9, %v2594_v61  ;;  %v2595_v5 = vadd.f32 %v2528_v17, %v8001_v18  ;;  %v6346_v61 = vld [vmem:[#allocation2 + $0x108] sm:$0xff] }
 0x360   : > { %v2530_v31 = vpop.f32.mrf.mxu1  ;;  %v3970_v45 = vpop.f32.mrf.mxu0 }
 0x361   : > { %v8309_v2 = vadd.f32 %v3060_v10, %v2595_v5  ;;  %v2596_v22 = vadd.f32 %v2530_v31, %v8917_v55 }
 0x362   : > { %v3435_v56 = vpop.f32.mrf.mxu1  ;;  %4575 = vmatmul.mubr.bf16.gmra.mxu1 %v4294_v0  ;;  %v3974_v6 = vpop.f32.mrf.mxu0  ;;  %5114 = vmatmul.mubr.bf16.gmra.mxu0 %v8037_v52 }
 0x363   : > { %v8313_v38 = vadd.f32 %v3062_v34, %v2596_v22  ;;  %v3594_v39 = vadd.f32 %v3435_v56, %v8013_v49  ;;  %4584 = vmatprep.mubr.bf16.mxu1 %v8826_v36  ;;  %5123 = vmatprep.mubr.bf16.mxu0 %v8826_v36  ;;  %v4295_v49 = vpack.c.bf16 %v6347_v29, %v6346_v61 }
 0x364   : > { %v3437_v18 = vpop.f32.mrf.mxu1  ;;  %v3976_v9 = vpop.f32.mrf.mxu0 }
 0x365   : > { %v8318_v43 = vadd.f32 %v3964_v8, %v3594_v39  ;;  %v3595_v10 = vadd.f32 %v3437_v18, %v8017_v25  ;;  %v6349_v18 = vld [vmem:[#allocation2 + $0x128] sm:$0xff] }
 0x366   : > { %v3439_v30 = vpop.f32.mrf.mxu1  ;;  %v3978_v17 = vpop.f32.mrf.mxu0 }
 0x367   : > { %v8321_v5 = vadd.f32 %v3966_v19, %v3595_v10  ;;  %v3596_v52 = vadd.f32 %v3439_v30, %v8022_v26 }
 0x368   : > { %v3441_v34 = vpop.f32.mrf.mxu1  ;;  %v3980_v31 = vpop.f32.mrf.mxu0 }
 0x369   : > { %v8324_v0 = vadd.f32 %v3968_v16, %v3596_v52  ;;  %v3597_v55 = vadd.f32 %v3441_v34, %v8026_v20  ;;  %v6348_v20 = vld [vmem:[#allocation2 + $0x120] sm:$0xff] }
 0x36a   : > { %v3445_v22 = vpop.f32.mrf.mxu1  ;;  %4585 = vmatmul.mubr.bf16.gmra.mxu1 %v4295_v49  ;;  %v3984_v8 = vpop.f32.mrf.mxu0  ;;  %5124 = vmatmul.mubr.bf16.gmra.mxu0 %v8055_v40 }
 0x36b   : > { %v8328_v25 = vadd.f32 %v3970_v45, %v3597_v55  ;;  %v3598_v56 = vadd.f32 %v3445_v22, %v8031_v46  ;;  %4594 = vmatprep.mubr.bf16.mxu1 %v8826_v36  ;;  %5133 = vmatprep.mubr.bf16.mxu0 %v8826_v36  ;;  %v4296_v46 = vpack.c.bf16 %v6349_v18, %v6348_v20 }
 0x36c   : > { %v3447_v26 = vpop.f32.mrf.mxu1  ;;  %v3986_v19 = vpop.f32.mrf.mxu0 }
 0x36d   : > { %v8333_v39 = vadd.f32 %v3974_v6, %v3598_v56  ;;  %v3599_v16 = vadd.f32 %v3447_v26, %v8034_v28  ;;  %v6351_v56 = vld [vmem:[#allocation2 + $0x140] sm:$0xff] }
 0x36e   : > { %v3449_v10 = vpop.f32.mrf.mxu1  ;;  %v3988_v61 = vpop.f32.mrf.mxu0 }
 0x36f   : > { %v8336_v29 = vadd.f32 %v3976_v9, %v3599_v16  ;;  %v3600_v40 = vadd.f32 %v3449_v10, %v8039_v15 }
 0x370   : > { %v3451_v45 = vpop.f32.mrf.mxu1  ;;  %v3990_v30 = vpop.f32.mrf.mxu0 }
 0x371   : > { %v8339_v52 = vadd.f32 %v3978_v17, %v3600_v40  ;;  %v3601_v34 = vadd.f32 %v3451_v45, %v8044_v33  ;;  %v6350_v33 = vld [vmem:[#allocation2 + $0x138] sm:$0xff] }
 0x372   : > { %v3455_v49 = vpop.f32.mrf.mxu1  ;;  %4595 = vmatmul.mubr.bf16.gmra.mxu1 %v4296_v46  ;;  %v3994_v6 = vpop.f32.mrf.mxu0  ;;  %5134 = vmatmul.mubr.bf16.gmra.mxu0 %v8073_v53 }
 0x373   : > { %v8343_v28 = vadd.f32 %v3980_v31, %v3601_v34  ;;  %v3602_v55 = vadd.f32 %v3455_v49, %v8049_v62  ;;  %4604 = vmatprep.mubr.bf16.mxu1 %v8826_v36  ;;  %5143 = vmatprep.mubr.bf16.mxu0 %v8826_v36  ;;  %v4297_v62 = vpack.c.bf16 %v6351_v56, %v6350_v33  ;;  %v6353_v49 = vld [vmem:[#allocation2 + $0x158] sm:$0xff] }
 0x374   : > { %v3457_v15 = vpop.f32.mrf.mxu1  ;;  %v3996_v9 = vpop.f32.mrf.mxu0 }
 0x375   : > { %v8348_v22 = vadd.f32 %v3984_v8, %v3602_v55  ;;  %v3603_v17 = vadd.f32 %v3457_v15, %v8052_v54 }
 0x376   : > { %v3459_v26 = vpop.f32.mrf.mxu1  ;;  %v3998_v16 = vpop.f32.mrf.mxu0 }
 0x377   : > { %v8351_v20 = vadd.f32 %v3986_v19, %v3603_v17  ;;  %v3604_v53 = vadd.f32 %v3459_v26, %v8057_v60 }
 0x378   : > { %v3461_v31 = vpop.f32.mrf.mxu1  ;;  %v4000_v18 = vpop.f32.mrf.mxu0 }
 0x379   : > { %v8354_v10 = vadd.f32 %v3988_v61, %v3604_v53  ;;  %v3605_v40 = vadd.f32 %v3461_v31, %v8062_v32  ;;  %v6352_v32 = vld [vmem:[#allocation2 + $0x150] sm:$0xff] }
 0x37a   : > { %v3465_v45 = vpop.f32.mrf.mxu1  ;;  %4605 = vmatmul.mubr.bf16.gmra.mxu1 %v4297_v62  ;;  %v4004_v8 = vpop.f32.mrf.mxu0  ;;  %5144 = vmatmul.mubr.bf16.gmra.mxu0 %v8091_v21 }
 0x37b   : > { %v8358_v54 = vadd.f32 %v3990_v30, %v3605_v40  ;;  %v3606_v46 = vadd.f32 %v3465_v45, %v8067_v24  ;;  %4614 = vmatprep.mubr.bf16.mxu1 %v8826_v36  ;;  %5153 = vmatprep.mubr.bf16.mxu0 %v8826_v36  ;;  %v4298_v24 = vpack.c.bf16 %v6353_v49, %v6352_v32  ;;  %v6355_v40 = vld [vmem:[#allocation2 + $0x170] sm:$0xff]  ;;  %v8918_v49 = vld [vmem:[#allocation39_spill] sm:$0xff] }
 0x37c   : > { %v3467_v60 = vpop.f32.mrf.mxu1  ;;  %v4006_v19 = vpop.f32.mrf.mxu0 }
 0x37d   : > { %v8363_v34 = vadd.f32 %v3994_v6, %v3606_v46  ;;  %v3607_v61 = vadd.f32 %v3467_v60, %v8070_v42 }
 0x37e   : > { %v3469_v55 = vpop.f32.mrf.mxu1  ;;  %v4008_v15 = vpop.f32.mrf.mxu0 }
 0x37f   : > { %v8366_v17 = vadd.f32 %v3996_v9, %v3607_v61  ;;  %v3608_v21 = vadd.f32 %v3469_v55, %v8075_v23 }
 0x380   : > { %v3471_v30 = vpop.f32.mrf.mxu1  ;;  %v4010_v33 = vpop.f32.mrf.mxu0 }
 0x381   : > { %v8369_v56 = vadd.f32 %v3998_v16, %v3608_v21  ;;  %v3609_v26 = vadd.f32 %v3471_v30, %v8080_v51  ;;  %v6354_v51 = vld [vmem:[#allocation2 + $0x168] sm:$0xff] }
 0x382   : > { %v3475_v53 = vpop.f32.mrf.mxu1  ;;  %4615 = vmatmul.mubr.bf16.gmra.mxu1 %v4298_v24  ;;  %v4014_v6 = vpop.f32.mrf.mxu0  ;;  %5154 = vmatmul.mubr.bf16.gmra.mxu0 %v8109_v3 }
 0x383   : > { %v8373_v42 = vadd.f32 %v4000_v18, %v3609_v26  ;;  %v3610_v31 = vadd.f32 %v3475_v53, %v8085_v7  ;;  %4624 = vmatprep.mubr.bf16.mxu1 %v8826_v36  ;;  %5163 = vmatprep.mubr.bf16.mxu0 %v8826_v36  ;;  %v4299_v7 = vpack.c.bf16 %v6355_v40, %v6354_v51  ;;  %v8920_v53 = vld [vmem:[#allocation40_spill] sm:$0xff] }
 0x384   : > { %v3477_v23 = vpop.f32.mrf.mxu1  ;;  %v4016_v9 = vpop.f32.mrf.mxu0 }
 0x385   : > { %v8378_v62 = vadd.f32 %v4004_v8, %v3610_v31  ;;  %v3611_v16 = vadd.f32 %v3477_v23, %v8088_v57  ;;  %v6356_v23 = vld [vmem:[#allocation2 + $0x180] sm:$0xff] }
 0x386   : > { %v3479_v45 = vpop.f32.mrf.mxu1  ;;  %v4018_v46 = vpop.f32.mrf.mxu0 }
 0x387   : > { %v8381_v60 = vadd.f32 %v4006_v19, %v3611_v16  ;;  %v3612_v3 = vadd.f32 %v3479_v45, %v8093_v11  ;;  %v6406_v11 = vld [vmem:[#allocation2 + $0x199] sm:$0xff]  ;;  %v6407_v19 = vld [vmem:[#allocation2 + $0x1a1] sm:$0xff] }
 0x388   : > { %v3481_v18 = vpop.f32.mrf.mxu1  ;;  %v4020_v61 = vpop.f32.mrf.mxu0  ;;  %v6357_v16 = vld [vmem:[#allocation2 + $0x188] sm:$0xff] }
 0x389   : > { %v8384_v32 = vadd.f32 %v4008_v15, %v3612_v3  ;;  %v3613_v55 = vadd.f32 %v3481_v18, %v8918_v49  ;;  %v4300_v18 = vpack.c.bf16 %v6357_v16, %v6356_v23  ;;  %v6424_v23 = vld [vmem:[#allocation2 + $0x32] sm:$0xff]  ;;  %v6425_v16 = vld [vmem:[#allocation2 + $0x3a] sm:$0xff] }
 0x38a   : > { %v3485_v21 = vpop.f32.mrf.mxu1  ;;  %4625 = vmatmul.mubr.bf16.gmra.mxu1 %v4299_v7  ;;  %v4024_v8 = vpop.f32.mrf.mxu0  ;;  %5164 = vmatmul.mubr.bf16.gmra.mxu0 %v8126_v58 }
 0x38b   : > { %v8388_v57 = vadd.f32 %v4010_v33, %v3613_v55  ;;  %v3614_v30 = vadd.f32 %v3485_v21, %v8103_v41  ;;  %4634 = vmatprep.mubr.bf16.mxu1 %v8826_v36  ;;  %5173 = vmatprep.mubr.bf16.mxu0 %v8826_v36  ;;  %v4830_v33 = vpack.c.bf16 %v6407_v19, %v6406_v11  ;;  %v8921_v41 = vld [vmem:[#allocation41_spill] sm:$0xff]  ;;  %v8922_v55 = vld [vmem:[#allocation42_spill] sm:$0xff] }
 0x38c   : > { %v3487_v24 = vpop.f32.mrf.mxu1  ;;  %v4026_v15 = vpop.f32.mrf.mxu0 }
 0x38d   : > { %v8393_v26 = vadd.f32 %v4014_v6, %v3614_v30  ;;  %v3615_v31 = vadd.f32 %v3487_v24, %v8920_v53  ;;  %v8924_v53 = vld [vmem:[#allocation43_spill] sm:$0xff] }
 0x38e   : > { %v3489_v51 = vpop.f32.mrf.mxu1  ;;  %v4028_v58 = vpop.f32.mrf.mxu0 }
 0x38f   : > { %8919 = vst [vmem:[#allocation27_spill] sm:$0xff] %v8393_v26  ;;  %v8396_v40 = vadd.f32 %v4016_v9, %v3615_v31  ;;  %v3616_v45 = vadd.f32 %v3489_v51, %v8921_v41  ;;  %v6753_v41 = vld [vmem:[#allocation2] sm:$0xff] }
 0x390   : > { %v3491_v3 = vpop.f32.mrf.mxu1  ;;  %v4030_v7 = vpop.f32.mrf.mxu0 }
 0x391   : > { %v8399_v49 = vadd.f32 %v4018_v46, %v3616_v45  ;;  %v3617_v21 = vadd.f32 %v3491_v3, %v8922_v55  ;;  %v8926_v46 = vld [vmem:[#allocation4_spill] sm:$0xff]  ;;  %v4301_v45 = vpack.c.bf16 %v6753_v41, %v6753_v41  ;;  %v8927_v3 = vld [vmem:[#allocation5_spill] sm:$0xff] }
 0x392   : > { %v3495_v6 = vpop.f32.mrf.mxu1  ;;  %4635 = vmatmul.mubr.bf16.gmra.mxu1 %v4300_v18  ;;  %v4034_v30 = vpop.f32.mrf.mxu0  ;;  %5174 = vmatmul.mubr.bf16.gmra.mxu0 %v4830_v33 }
 0x393   : > { %v8402_v24 = vadd.f32 %v4020_v61, %v3617_v21  ;;  %v3618_v26 = vadd.f32 %v3495_v6, %v8924_v53  ;;  %4644 = vmatprep.mubr.bf16.mxu1 %v8826_v36  ;;  %5552 = vmatprep.mubr.bf16.mxu0 %v8826_v36  ;;  %v5344_v6 = vpack.c.bf16 %v6425_v16, %v6424_v23  ;;  %v6427_v16 = vld [vmem:[#allocation2 + $0x52] sm:$0xff] }
 0x394   : > { %v3497_v9 = vpop.f32.mrf.mxu1  ;;  %v4036_v11 = vpop.f32.mrf.mxu0 }
 0x395   : > { %8923 = vst [vmem:[#allocation28_spill] sm:$0xff] %v8402_v24  ;;  %v8407_v19 = vadd.f32 %v4024_v8, %v3618_v26  ;;  %v3619_v31 = vadd.f32 %v3497_v9, %v8926_v46  ;;  %v8929_v24 = vld [vmem:[#allocation6_spill] sm:$0xff] }
 0x396   : > { %v3499_v51 = vpop.f32.mrf.mxu1  ;;  %v4038_v33 = vpop.f32.mrf.mxu0 }
 0x397   : > { %8925 = vst [vmem:[#allocation29_spill] sm:$0xff] %v8407_v19  ;;  %v8410_v61 = vadd.f32 %v4026_v15, %v3619_v31  ;;  %v3620_v18 = vadd.f32 %v3499_v51, %v8927_v3  ;;  %v8931_v19 = vld [vmem:[#allocation7_spill] sm:$0xff] }
 0x398   : > { %v3501_v55 = vpop.f32.mrf.mxu1  ;;  %v4040_v21 = vpop.f32.mrf.mxu0 }
 0x399   : > { %v8413_v53 = vadd.f32 %v4028_v58, %v3620_v18  ;;  %v3621_v8 = vadd.f32 %v3501_v55, %v8929_v24  ;;  %v6426_v58 = vld [vmem:[#allocation2 + $0x4a] sm:$0xff] }
 0x39a   : > { %v3505_v26 = vpop.f32.mrf.mxu1  ;;  %4645 = vmatmul.mubr.bf16.gmra.mxu1 %v4301_v45  ;;  %v4044_v9 = vpop.f32.mrf.mxu0  ;;  %5553 = vmatmul.mubr.bf16.vlgmr.msra.gmra.mxu0 %v5344_v6  ;;  %v8934_v45 = vld [vmem:[#allocation8_spill] sm:$0xff]  ;;  %v5345_v6 = vpack.c.bf16 %v6427_v16, %v6426_v58  ;;  %v6428_v16 = vld [vmem:[#allocation2 + $0x62] sm:$0xff] }
 0x39b   : > { %8928 = vst [vmem:[#allocation30_spill] sm:$0xff] %v8413_v53  ;;  %v8416_v46 = vadd.f32 %v4030_v7, %v3621_v8  ;;  %v3622_v41 = vadd.f32 %v3505_v26, %v8931_v19  ;;  %5562 = vmatprep.mubr.bf16.mxu1 %v8826_v36  ;;  %v8936_v26 = vld [vmem:[#allocation9_spill] sm:$0xff] }
 0x39c   : > { %v3507_v15 = vpop.f32.mrf.mxu1  ;;  %v4046_v31 = vpop.f32.mrf.mxu0 }
 0x39d   : > { %8930 = vst [vmem:[#allocation31_spill] sm:$0xff] %v8416_v46  ;;  %v8420_v51 = vadd.f32 %v4034_v30, %v3622_v41  ;;  %v3623_v23 = vadd.f32 %v3507_v15, %v8153_v48  ;;  %v8938_v48 = vld [vmem:[#allocation10_spill] sm:$0xff] }
 0x39e   : > { %v3509_v3 = vpop.f32.mrf.mxu1  ;;  %v4048_v24 = vpop.f32.mrf.mxu0 }
 0x39f   : > { %8932 = vst [vmem:[#allocation32_spill] sm:$0xff] %v8420_v51  ;;  %v8423_v18 = vadd.f32 %v4036_v11, %v3623_v23  ;;  %v3624_v55 = vadd.f32 %v3509_v3, %v8934_v45  ;;  %v8940_v3 = vld [vmem:[#allocation11_spill] sm:$0xff] }
 0x3a0   : > { %v3511_v7 = vpop.f32.mrf.mxu1  ;;  %v4050_v8 = vpop.f32.mrf.mxu0 }
 0x3a1   : > { %8933 = vst [vmem:[#allocation33_spill] sm:$0xff] %v8423_v18  ;;  %v8426_v19 = vadd.f32 %v4038_v33, %v3624_v55  ;;  %v3625_v46 = vadd.f32 %v3511_v7, %v8936_v26  ;;  %v6429_v33 = vld [vmem:[#allocation2 + $0x6a] sm:$0xff] }
 0x3a2   : > { %v3515_v53 = vpop.f32.mrf.mxu1  ;;  %5563 = vmatmul.mubr.bf16.vlgmr.msra.gmra.mxu1 %v5345_v6  ;;  %v4054_v30 = vpop.f32.mrf.mxu0  ;;  %v8942_v6 = vld [vmem:[#allocation12_spill] sm:$0xff] }
 0x3a3   : > { %8935 = vst [vmem:[#allocation34_spill] sm:$0xff] %v8426_v19  ;;  %v8429_v41 = vadd.f32 %v4040_v21, %v3625_v46  ;;  %v3626_v15 = vadd.f32 %v3515_v53, %v8938_v48  ;;  %5572 = vmatprep.mubr.bf16.mxu1 %v8826_v36  ;;  %v5346_v46 = vpack.c.bf16 %v6429_v33, %v6428_v16  ;;  %v8944_v48 = vld [vmem:[#allocation13_spill] sm:$0xff] }
 0x3a4   : > { %v3517_v11 = vpop.f32.mrf.mxu1  ;;  %v4056_v23 = vpop.f32.mrf.mxu0  ;;  %v6430_v33 = vld [vmem:[#allocation2 + $0x7a] sm:$0xff] }
 0x3a5   : > { %8937 = vst [vmem:[#allocation35_spill] sm:$0xff] %v8429_v41  ;;  %v8433_v18 = vadd.f32 %v4044_v9, %v3626_v15  ;;  %v3627_v58 = vadd.f32 %v3517_v11, %v8940_v3  ;;  %v8946_v11 = vld [vmem:[#allocation14_spill] sm:$0xff] }
 0x3a6   : > { %v3519_v45 = vpop.f32.mrf.mxu1  ;;  %v4058_v55 = vpop.f32.mrf.mxu0 }
 0x3a7   : > { %8939 = vst [vmem:[#allocation36_spill] sm:$0xff] %v8433_v18  ;;  %v8436_v7 = vadd.f32 %v4046_v31, %v3627_v58  ;;  %v3628_v26 = vadd.f32 %v3519_v45, %v8942_v6  ;;  %v8947_v45 = vld [vmem:[#allocation21_spill] sm:$0xff] }
 0x3a8   : > { %v3521_v21 = vpop.f32.mrf.mxu1  ;;  %v4060_v41 = vpop.f32.mrf.mxu0 }
 0x3a9   : > { %8941 = vst [vmem:[#allocation37_spill] sm:$0xff] %v8436_v7  ;;  %v8439_v53 = vadd.f32 %v4048_v24, %v3628_v26  ;;  %v3629_v19 = vadd.f32 %v3521_v21, %v8944_v48  ;;  %v6431_v24 = vld [vmem:[#allocation2 + $0x82] sm:$0xff] }
 0x3aa   : > { %v3525_v51 = vpop.f32.mrf.mxu1  ;;  %5573 = vmatmul.mubr.bf16.gmra.mxu1 %v5346_v46  ;;  %v4064_v9 = vpop.f32.mrf.mxu0  ;;  %v8949_v46 = vld [vmem:[#allocation15_spill] sm:$0xff] }
 0x3ab   : > { %8943 = vst [vmem:[#allocation38_spill] sm:$0xff] %v8439_v53  ;;  %v8442_v15 = vadd.f32 %v4050_v8, %v3629_v19  ;;  %v3630_v3 = vadd.f32 %v3525_v51, %v8946_v11  ;;  %5582 = vmatprep.mubr.bf16.mxu1 %v8826_v36  ;;  %v5347_v19 = vpack.c.bf16 %v6431_v24, %v6430_v33  ;;  %v8950_v11 = vld [vmem:[#allocation16_spill] sm:$0xff] }
 0x3ac   : > { %v3527_v31 = vpop.f32.mrf.mxu1  ;;  %v4066_v58 = vpop.f32.mrf.mxu0  ;;  %v6432_v24 = vld [vmem:[#allocation2 + $0x92] sm:$0xff] }
 0x3ad   : > { %8945 = vst [vmem:[#allocation39_spill] sm:$0xff] %v8442_v15  ;;  %v8446_v7 = vadd.f32 %v4054_v30, %v3630_v3  ;;  %v3631_v16 = vadd.f32 %v3527_v31, %v8947_v45  ;;  %v8951_v31 = vld [vmem:[#allocation17_spill] sm:$0xff] }
 0x3ae   : > { %v3529_v6 = vpop.f32.mrf.mxu1  ;;  %v4068_v26 = vpop.f32.mrf.mxu0 }
 0x3af   : > { %v8449_v21 = vadd.f32 %v4056_v23, %v3631_v16  ;;  %v3632_v48 = vadd.f32 %v3529_v6, %v8949_v46 }
 0x3b0   : > { %v3531_v8 = vpop.f32.mrf.mxu1  ;;  %v4070_v15 = vpop.f32.mrf.mxu0 }
 0x3b1   : > { %8948 = vst [vmem:[#allocation40_spill] sm:$0xff] %v8449_v21  ;;  %v8452_v51 = vadd.f32 %v4058_v55, %v3632_v48  ;;  %v3633_v53 = vadd.f32 %v3531_v8, %v8950_v11  ;;  %v6433_v55 = vld [vmem:[#allocation2 + $0x9a] sm:$0xff] }
 0x3b2   : > { %v3535_v18 = vpop.f32.mrf.mxu1  ;;  %5583 = vmatmul.mubr.bf16.gmra.mxu1 %v5347_v19  ;;  %v4074_v30 = vpop.f32.mrf.mxu0 }
 0x3b3   : > { %v8455_v3 = vadd.f32 %v4060_v41, %v3633_v53  ;;  %v3634_v45 = vadd.f32 %v3535_v18, %v8951_v31  ;;  %5592 = vmatprep.mubr.bf16.mxu1 %v8826_v36  ;;  %v5348_v53 = vpack.c.bf16 %v6433_v55, %v6432_v24  ;;  %v6434_v24 = vld [vmem:[#allocation2 + $0xaa] sm:$0xff] }
 0x3b4   : > { %v3537_v23 = vpop.f32.mrf.mxu1  ;;  %v4076_v16 = vpop.f32.mrf.mxu0 }
 0x3b5   : > { %v8459_v21 = vadd.f32 %v4064_v9, %v3634_v45  ;;  %v3635_v33 = vadd.f32 %v3537_v23, %v8231_v44 }
 0x3b6   : > { %v3539_v6 = vpop.f32.mrf.mxu1  ;;  %v4078_v46 = vpop.f32.mrf.mxu0 }
 0x3b7   : > { %v8462_v48 = vadd.f32 %v4066_v58, %v3635_v33  ;;  %v3636_v8 = vadd.f32 %v3539_v6, %v8234_v59 }
 0x3b8   : > { %v3541_v41 = vpop.f32.mrf.mxu1  ;;  %v4080_v19 = vpop.f32.mrf.mxu0 }
 0x3b9   : > { %v8465_v18 = vadd.f32 %v4068_v26, %v3636_v8  ;;  %v3637_v11 = vadd.f32 %v3541_v41, %v8238_v37  ;;  %v6435_v26 = vld [vmem:[#allocation2 + $0xb2] sm:$0xff]  ;;  %v8955_v8 = vld [vmem:[#allocation18_spill] sm:$0xff] }
 0x3ba   : > { %v3545_v31 = vpop.f32.mrf.mxu1  ;;  %5593 = vmatmul.mubr.bf16.gmra.mxu1 %v5348_v53  ;;  %v4084_v9 = vpop.f32.mrf.mxu0  ;;  %v5349_v53 = vpack.c.bf16 %v6435_v26, %v6434_v24  ;;  %v6436_v26 = vld [vmem:[#allocation2 + $0xc2] sm:$0xff] }
 0x3bb   : > { %8952 = vst [vmem:[#allocation41_spill] sm:$0xff] %v8465_v18  ;;  %v8468_v45 = vadd.f32 %v4070_v15, %v3637_v11  ;;  %v3638_v44 = vadd.f32 %v3545_v31, %v8243_v14  ;;  %5602 = vmatprep.mubr.bf16.mxu1 %v8826_v36  ;;  %v8957_v31 = vld [vmem:[#allocation19_spill] sm:$0xff] }
 0x3bc   : > { %v3547_v58 = vpop.f32.mrf.mxu1  ;;  %v4086_v23 = vpop.f32.mrf.mxu0 }
 0x3bd   : > { %8953 = vst [vmem:[#allocation42_spill] sm:$0xff] %v8468_v45  ;;  %v8472_v33 = vadd.f32 %v4074_v30, %v3638_v44  ;;  %v3639_v59 = vadd.f32 %v3547_v58, %v8246_v13 }
 0x3be   : > { %v3549_v55 = vpop.f32.mrf.mxu1  ;;  %v4088_v6 = vpop.f32.mrf.mxu0 }
 0x3bf   : > { %v8475_v37 = vadd.f32 %v4076_v16, %v3639_v59  ;;  %v3640_v41 = vadd.f32 %v3549_v55, %v8955_v8  ;;  %v8959_v55 = vld [vmem:[#allocation20_spill] sm:$0xff] }
 0x3c0   : > { %v3551_v15 = vpop.f32.mrf.mxu1  ;;  %v4090_v11 = vpop.f32.mrf.mxu0 }
 0x3c1   : > { %8954 = vst [vmem:[#allocation43_spill] sm:$0xff] %v8475_v37  ;;  %v8478_v14 = vadd.f32 %v4078_v46, %v3640_v41  ;;  %v3641_v45 = vadd.f32 %v3551_v15, %v8957_v31  ;;  %v6437_v46 = vld [vmem:[#allocation2 + $0xca] sm:$0xff] }
 0x3c2   : > { %v3555_v18 = vpop.f32.mrf.mxu1  ;;  %5603 = vmatmul.mubr.bf16.gmra.mxu1 %v5349_v53  ;;  %v4094_v30 = vpop.f32.mrf.mxu0  ;;  %v8961_v53 = vld [vmem:[#allocation22_spill] sm:$0xff] }
 0x3c3   : > { %8956 = vst [vmem:[#allocation4_spill] sm:$0xff] %v8478_v14  ;;  %v8481_v44 = vadd.f32 %v4080_v19, %v3641_v45  ;;  %v3642_v13 = vadd.f32 %v3555_v18, %v8258_v35  ;;  %5612 = vmatprep.mubr.bf16.mxu1 %v8826_v36  ;;  %v5350_v45 = vpack.c.bf16 %v6437_v46, %v6436_v26  ;;  %v8963_v18 = vld [vmem:[#allocation23_spill] sm:$0xff]  ;;  %v6438_v46 = vld [vmem:[#allocation2 + $0xda] sm:$0xff] }
 0x3c4   : > { %v3557_v16 = vpop.f32.mrf.mxu1  ;;  %v4096_v58 = vpop.f32.mrf.mxu0 }
 0x3c5   : > { %8958 = vst [vmem:[#allocation5_spill] sm:$0xff] %v8481_v44  ;;  %v8485_v59 = vadd.f32 %v4084_v9, %v3642_v13  ;;  %v3643_v24 = vadd.f32 %v3557_v16, %v8959_v55 }
 0x3c6   : > { %v3559_v8 = vpop.f32.mrf.mxu1  ;;  %v4098_v41 = vpop.f32.mrf.mxu0 }
 0x3c7   : > { %v8488_v15 = vadd.f32 %v4086_v23, %v3643_v24  ;;  %v3644_v31 = vadd.f32 %v3559_v8, %v8961_v53  ;;  %v8965_v8 = vld [vmem:[#allocation24_spill] sm:$0xff] }
 0x3c8   : > { %v3561_v19 = vpop.f32.mrf.mxu1  ;;  %v4100_v44 = vpop.f32.mrf.mxu0 }
 0x3c9   : > { %8960 = vst [vmem:[#allocation6_spill] sm:$0xff] %v8488_v15  ;;  %v8491_v35 = vadd.f32 %v4088_v6, %v3644_v31  ;;  %v3645_v14 = vadd.f32 %v3561_v19, %v8963_v18  ;;  %v6439_v6 = vld [vmem:[#allocation2 + $0xe2] sm:$0xff] }
 0x3ca   : > { %v3565_v37 = vpop.f32.mrf.mxu1  ;;  %5613 = vmatmul.mubr.bf16.gmra.mxu1 %v5350_v45  ;;  %v4104_v9 = vpop.f32.mrf.mxu0  ;;  %v8966_v45 = vld [vmem:[#allocation25_spill] sm:$0xff] }
 0x3cb   : > { %8962 = vst [vmem:[#allocation7_spill] sm:$0xff] %v8491_v35  ;;  %v8494_v13 = vadd.f32 %v4090_v11, %v3645_v14  ;;  %v3646_v16 = vadd.f32 %v3565_v37, %v8273_v4  ;;  %5622 = vmatprep.mubr.bf16.mxu1 %v8826_v36  ;;  %v5351_v14 = vpack.c.bf16 %v6439_v6, %v6438_v46  ;;  %v8967_v37 = vld [vmem:[#allocation26_spill] sm:$0xff]  ;;  %v6440_v6 = vld [vmem:[#allocation2 + $0xf2] sm:$0xff] }
 0x3cc   : > { %v3567_v23 = vpop.f32.mrf.mxu1  ;;  %v4106_v55 = vpop.f32.mrf.mxu0 }
 0x3cd   : > { %8964 = vst [vmem:[#allocation8_spill] sm:$0xff] %v8494_v13  ;;  %v8498_v24 = vadd.f32 %v4094_v30, %v3646_v16  ;;  %v3647_v26 = vadd.f32 %v3567_v23, %v8965_v8 }
 0x3ce   : > { %v3569_v53 = vpop.f32.mrf.mxu1  ;;  %v4108_v31 = vpop.f32.mrf.mxu0 }
 0x3cf   : > { %v8501_v19 = vadd.f32 %v4096_v58, %v3647_v26  ;;  %v3648_v18 = vadd.f32 %v3569_v53, %v8966_v45 }
 0x3d0   : > { %v3571_v11 = vpop.f32.mrf.mxu1  ;;  %v4110_v13 = vpop.f32.mrf.mxu0 }
 0x3d1   : > { %v8504_v4 = vadd.f32 %v4098_v41, %v3648_v18  ;;  %v3649_v35 = vadd.f32 %v3571_v11, %v8967_v37  ;;  %v6441_v41 = vld [vmem:[#allocation2 + $0xfa] sm:$0xff] }
 0x3d2   : > { %v3575_v15 = vpop.f32.mrf.mxu1  ;;  %5623 = vmatmul.mubr.bf16.gmra.mxu1 %v5351_v14  ;;  %v4114_v30 = vpop.f32.mrf.mxu0 }
 0x3d3   : > { %v8507_v16 = vadd.f32 %v4100_v44, %v3649_v35  ;;  %v3650_v23 = vadd.f32 %v3575_v15, %v8288_v63  ;;  %5632 = vmatprep.mubr.bf16.mxu1 %v8826_v36  ;;  %v5352_v35 = vpack.c.bf16 %v6441_v41, %v6440_v6  ;;  %v6442_v6 = vld [vmem:[#allocation2 + $0x10a] sm:$0xff] }
 0x3d4   : > { %v3577_v58 = vpop.f32.mrf.mxu1  ;;  %v4116_v8 = vpop.f32.mrf.mxu0 }
 0x3d5   : > { %v8511_v26 = vadd.f32 %v4104_v9, %v3650_v23  ;;  %v3651_v46 = vadd.f32 %v3577_v58, %v8291_v27 }
 0x3d6   : > { %v3579_v53 = vpop.f32.mrf.mxu1  ;;  %v4118_v45 = vpop.f32.mrf.mxu0 }
 0x3d7   : > { %v8514_v18 = vadd.f32 %v4106_v55, %v3651_v46  ;;  %v3652_v11 = vadd.f32 %v3579_v53, %v8294_v1 }
 0x3d8   : > { %v3581_v44 = vpop.f32.mrf.mxu1  ;;  %v4120_v14 = vpop.f32.mrf.mxu0 }
 0x3d9   : > { %v8517_v63 = vadd.f32 %v4108_v31, %v3652_v11  ;;  %v3653_v15 = vadd.f32 %v3581_v44, %v8298_v47  ;;  %v6443_v31 = vld [vmem:[#allocation2 + $0x112] sm:$0xff] }
 0x3da   : > { %v3585_v37 = vpop.f32.mrf.mxu1  ;;  %5633 = vmatmul.mubr.bf16.gmra.mxu1 %v5352_v35  ;;  %v5025_v9 = vpop.f32.mrf.mxu0  ;;  %v5353_v44 = vpack.c.bf16 %v6443_v31, %v6442_v6  ;;  %v6444_v6 = vld [vmem:[#allocation2 + $0x122] sm:$0xff] }
 0x3db   : > { %v8520_v23 = vadd.f32 %v4110_v13, %v3653_v15  ;;  %v3654_v27 = vadd.f32 %v3585_v37, %v8303_v50  ;;  %5642 = vmatprep.mubr.bf16.mxu1 %v8826_v36 }
 0x3dc   : > { %v3587_v55 = vpop.f32.mrf.mxu1  ;;  %v5027_v58 = vpop.f32.mrf.mxu0 }
 0x3dd   : > { %v8524_v46 = vadd.f32 %v4114_v30, %v3654_v27  ;;  %v3655_v1 = vadd.f32 %v3587_v55, %v8306_v12 }
 0x3de   : > { %v3589_v41 = vpop.f32.mrf.mxu1  ;;  %v5029_v53 = vpop.f32.mrf.mxu0 }
 0x3df   : > { %v8527_v47 = vadd.f32 %v4116_v8, %v3655_v1  ;;  %v3656_v11 = vadd.f32 %v3589_v41, %v8309_v2 }
 0x3e0   : > { %v3591_v13 = vpop.f32.mrf.mxu1  ;;  %v5031_v35 = vpop.f32.mrf.mxu0 }
 0x3e1   : > { %v8530_v50 = vadd.f32 %v4118_v45, %v3656_v11  ;;  %v3657_v15 = vadd.f32 %v3591_v13, %v8313_v38  ;;  %v6445_v45 = vld [vmem:[#allocation2 + $0x12a] sm:$0xff] }
 0x3e2   : > { %v4496_v37 = vpop.f32.mrf.mxu1  ;;  %5643 = vmatmul.mubr.bf16.gmra.mxu1 %v5353_v44  ;;  %v5035_v30 = vpop.f32.mrf.mxu0  ;;  %v5354_v13 = vpack.c.bf16 %v6445_v45, %v6444_v6  ;;  %v6446_v6 = vld [vmem:[#allocation2 + $0x13a] sm:$0xff] }
 0x3e3   : > { %v8533_v27 = vadd.f32 %v4120_v14, %v3657_v15  ;;  %v4655_v12 = vadd.f32 %v4496_v37, %v8318_v43  ;;  %5652 = vmatprep.mubr.bf16.mxu1 %v8826_v36 }
 0x3e4   : > { %v4498_v8 = vpop.f32.mrf.mxu1  ;;  %v5037_v55 = vpop.f32.mrf.mxu0 }
 0x3e5   : > { %v8537_v1 = vadd.f32 %v5025_v9, %v4655_v12  ;;  %v4656_v2 = vadd.f32 %v4498_v8, %v8321_v5 }
 0x3e6   : > { %v4500_v31 = vpop.f32.mrf.mxu1  ;;  %v5039_v41 = vpop.f32.mrf.mxu0 }
 0x3e7   : > { %v8540_v38 = vadd.f32 %v5027_v58, %v4656_v2  ;;  %v4657_v11 = vadd.f32 %v4500_v31, %v8324_v0 }
 0x3e8   : > { %v4502_v14 = vpop.f32.mrf.mxu1  ;;  %v5041_v44 = vpop.f32.mrf.mxu0 }
 0x3e9   : > { %v8543_v43 = vadd.f32 %v5029_v53, %v4657_v11  ;;  %v4658_v15 = vadd.f32 %v4502_v14, %v8328_v25  ;;  %v6447_v53 = vld [vmem:[#allocation2 + $0x142] sm:$0xff] }
 0x3ea   : > { %v4506_v37 = vpop.f32.mrf.mxu1  ;;  %5653 = vmatmul.mubr.bf16.gmra.mxu1 %v5354_v13  ;;  %v5045_v9 = vpop.f32.mrf.mxu0  ;;  %v5355_v14 = vpack.c.bf16 %v6447_v53, %v6446_v6  ;;  %v6448_v6 = vld [vmem:[#allocation2 + $0x152] sm:$0xff] }
 0x3eb   : > { %v8546_v12 = vadd.f32 %v5031_v35, %v4658_v15  ;;  %v4659_v5 = vadd.f32 %v4506_v37, %v8333_v39  ;;  %5662 = vmatprep.mubr.bf16.mxu1 %v8826_v36 }
 0x3ec   : > { %v4508_v58 = vpop.f32.mrf.mxu1  ;;  %v5047_v8 = vpop.f32.mrf.mxu0 }
 0x3ed   : > { %v8550_v2 = vadd.f32 %v5035_v30, %v4659_v5  ;;  %v4660_v0 = vadd.f32 %v4508_v58, %v8336_v29 }
 0x3ee   : > { %v4510_v45 = vpop.f32.mrf.mxu1  ;;  %v5049_v31 = vpop.f32.mrf.mxu0 }
 0x3ef   : > { %v8553_v25 = vadd.f32 %v5037_v55, %v4660_v0  ;;  %v4661_v11 = vadd.f32 %v4510_v45, %v8339_v52 }
 0x3f0   : > { %v4512_v35 = vpop.f32.mrf.mxu1  ;;  %v5051_v13 = vpop.f32.mrf.mxu0 }
 0x3f1   : > { %v8556_v39 = vadd.f32 %v5039_v41, %v4661_v11  ;;  %v4662_v15 = vadd.f32 %v4512_v35, %v8343_v28  ;;  %v6449_v41 = vld [vmem:[#allocation2 + $0x15a] sm:$0xff] }
 0x3f2   : > { %v4516_v37 = vpop.f32.mrf.mxu1  ;;  %5663 = vmatmul.mubr.bf16.gmra.mxu1 %v5355_v14  ;;  %v5055_v30 = vpop.f32.mrf.mxu0  ;;  %v5356_v35 = vpack.c.bf16 %v6449_v41, %v6448_v6  ;;  %v6450_v6 = vld [vmem:[#allocation2 + $0x16a] sm:$0xff] }
 0x3f3   : > { %v8559_v5 = vadd.f32 %v5041_v44, %v4662_v15  ;;  %v4663_v29 = vadd.f32 %v4516_v37, %v8348_v22  ;;  %5672 = vmatprep.mubr.bf16.mxu1 %v8826_v36 }
 0x3f4   : > { %v4518_v55 = vpop.f32.mrf.mxu1  ;;  %v5057_v58 = vpop.f32.mrf.mxu0 }
 0x3f5   : > { %v8563_v0 = vadd.f32 %v5045_v9, %v4663_v29  ;;  %v4664_v52 = vadd.f32 %v4518_v55, %v8351_v20 }
 0x3f6   : > { %v4520_v53 = vpop.f32.mrf.mxu1  ;;  %v5059_v45 = vpop.f32.mrf.mxu0 }
 0x3f7   : > { %v8566_v28 = vadd.f32 %v5047_v8, %v4664_v52  ;;  %v4665_v11 = vadd.f32 %v4520_v53, %v8354_v10 }
 0x3f8   : > { %v4522_v44 = vpop.f32.mrf.mxu1  ;;  %v5061_v14 = vpop.f32.mrf.mxu0 }
 0x3f9   : > { %v8569_v22 = vadd.f32 %v5049_v31, %v4665_v11  ;;  %v4666_v15 = vadd.f32 %v4522_v44, %v8358_v54  ;;  %v6451_v31 = vld [vmem:[#allocation2 + $0x172] sm:$0xff] }
 0x3fa   : > { %v4526_v37 = vpop.f32.mrf.mxu1  ;;  %5673 = vmatmul.mubr.bf16.gmra.mxu1 %v5356_v35  ;;  %v5065_v9 = vpop.f32.mrf.mxu0  ;;  %v5357_v44 = vpack.c.bf16 %v6451_v31, %v6450_v6  ;;  %v6452_v6 = vld [vmem:[#allocation2 + $0x182] sm:$0xff] }
 0x3fb   : > { %v8572_v29 = vadd.f32 %v5051_v13, %v4666_v15  ;;  %v4667_v20 = vadd.f32 %v4526_v37, %v8363_v34  ;;  %5682 = vmatprep.mubr.bf16.mxu1 %v8826_v36 }
 0x3fc   : > { %v4528_v8 = vpop.f32.mrf.mxu1  ;;  %v5067_v55 = vpop.f32.mrf.mxu0 }
 0x3fd   : > { %v8576_v52 = vadd.f32 %v5055_v30, %v4667_v20  ;;  %v4668_v10 = vadd.f32 %v4528_v8, %v8366_v17 }
 0x3fe   : > { %v4530_v41 = vpop.f32.mrf.mxu1  ;;  %v5069_v53 = vpop.f32.mrf.mxu0 }
 0x3ff   : > { %v8579_v54 = vadd.f32 %v5057_v58, %v4668_v10  ;;  %v4669_v11 = vadd.f32 %v4530_v41, %v8369_v56 }
 0x400   : > { %v4532_v13 = vpop.f32.mrf.mxu1  ;;  %v5071_v35 = vpop.f32.mrf.mxu0 }
 0x401   : > { %v8582_v34 = vadd.f32 %v5059_v45, %v4669_v11  ;;  %v4670_v15 = vadd.f32 %v4532_v13, %v8373_v42  ;;  %v6453_v45 = vld [vmem:[#allocation2 + $0x18a] sm:$0xff] }
 0x402   : > { %v4536_v37 = vpop.f32.mrf.mxu1  ;;  %5683 = vmatmul.mubr.bf16.gmra.mxu1 %v5357_v44  ;;  %v5075_v30 = vpop.f32.mrf.mxu0  ;;  %v5358_v13 = vpack.c.bf16 %v6453_v45, %v6452_v6 }
 0x403   : > { %v8585_v20 = vadd.f32 %v5061_v14, %v4670_v15  ;;  %v4671_v17 = vadd.f32 %v4536_v37, %v8378_v62  ;;  %5692 = vmatprep.mubr.bf16.mxu1 %v8826_v36 }
 0x404   : > { %v4538_v58 = vpop.f32.mrf.mxu1  ;;  %v5077_v8 = vpop.f32.mrf.mxu0 }
 0x405   : > { %v8589_v10 = vadd.f32 %v5065_v9, %v4671_v17  ;;  %v4672_v56 = vadd.f32 %v4538_v58, %v8381_v60  ;;  %v8970_v60 = vld [vmem:[#allocation27_spill] sm:$0xff] }
 0x406   : > { %v4540_v31 = vpop.f32.mrf.mxu1  ;;  %v5079_v41 = vpop.f32.mrf.mxu0 }
 0x407   : > { %v8592_v42 = vadd.f32 %v5067_v55, %v4672_v56  ;;  %v4673_v11 = vadd.f32 %v4540_v31, %v8384_v32  ;;  %v6454_v55 = vld [vmem:[#allocation2 + $0x19a] sm:$0xff]  ;;  %v6455_v56 = vld [vmem:[#allocation2 + $0x1a2] sm:$0xff] }
 0x408   : > { %v4542_v14 = vpop.f32.mrf.mxu1  ;;  %v5081_v44 = vpop.f32.mrf.mxu0  ;;  %v5359_v45 = vpack.c.bf16 %v6455_v56, %v6454_v55 }
 0x409   : > { %8968 = vst [vmem:[#allocation9_spill] sm:$0xff] %v8592_v42  ;;  %v8595_v62 = vadd.f32 %v5069_v53, %v4673_v11  ;;  %v4674_v15 = vadd.f32 %v4542_v14, %v8388_v57 }
 0x40a   : > { %v4546_v37 = vpop.f32.mrf.mxu1  ;;  %5693 = vmatmul.mubr.bf16.gmra.mxu1 %v5358_v13  ;;  %v5085_v9 = vpop.f32.mrf.mxu0 }
 0x40b   : > { %v8598_v17 = vadd.f32 %v5071_v35, %v4674_v15  ;;  %v4675_v58 = vadd.f32 %v4546_v37, %v8970_v60  ;;  %5702 = vmatprep.mubr.bf16.mxu1 %v8826_v36  ;;  %v8971_v36 = vld [vmem:[#allocation28_spill] sm:$0xff] }
 0x40c   : > { %v4548_v42 = vpop.f32.mrf.mxu1  ;;  %v5087_v32 = vpop.f32.mrf.mxu0 }
 0x40d   : > { %8969 = vst [vmem:[#allocation10_spill] sm:$0xff] %v8598_v17  ;;  %v8602_v31 = vadd.f32 %v5075_v30, %v4675_v58  ;;  %v4676_v53 = vadd.f32 %v4548_v42, %v8396_v40  ;;  %v8973_v58 = vld [vmem:[#allocation29_spill] sm:$0xff] }
 0x40e   : > { %v4550_v6 = vpop.f32.mrf.mxu1  ;;  %v5089_v57 = vpop.f32.mrf.mxu0 }
 0x40f   : > { %v8605_v11 = vadd.f32 %v5077_v8, %v4676_v53  ;;  %v4677_v35 = vadd.f32 %v4550_v6, %v8399_v49 }
 0x410   : > { %v4552_v14 = vpop.f32.mrf.mxu1  ;;  %v5091_v13 = vpop.f32.mrf.mxu0 }
 0x411   : > { %v8608_v15 = vadd.f32 %v5079_v41, %v4677_v35  ;;  %v4678_v37 = vadd.f32 %v4552_v14, %v8971_v36  ;;  %v8976_v41 = vld [vmem:[#allocation30_spill] sm:$0xff] }
 0x412   : > { %v4556_v60 = vpop.f32.mrf.mxu1  ;;  %5703 = vmatmul.mubr.bf16.gmra.mxu1 %v5359_v45  ;;  %v5095_v17 = vpop.f32.mrf.mxu0 }
 0x413   : > { %v8611_v30 = vadd.f32 %v5081_v44, %v4678_v37  ;;  %v4679_v40 = vadd.f32 %v4556_v60, %v8973_v58  ;;  %v8978_v44 = vld [vmem:[#allocation31_spill] sm:$0xff] }
 0x414   : > { %v4558_v42 = vpop.f32.mrf.mxu1  ;;  %v5097_v55 = vpop.f32.mrf.mxu0 }
 0x415   : > { %8972 = vst [vmem:[#allocation11_spill] sm:$0xff] %v8611_v30  ;;  %v8614_v56 = vadd.f32 %v5085_v9, %v4679_v40  ;;  %v4680_v8 = vadd.f32 %v4558_v42, %v8410_v61  ;;  %v8980_v9 = vld [vmem:[#allocation32_spill] sm:$0xff] }
 0x416   : > { %v4560_v49 = vpop.f32.mrf.mxu1  ;;  %v5099_v53 = vpop.f32.mrf.mxu0 }
 0x417   : > { %8974 = vst [vmem:[#allocation12_spill] sm:$0xff] %v8614_v56  ;;  %v8617_v6 = vadd.f32 %v5087_v32, %v4680_v8  ;;  %v4681_v35 = vadd.f32 %v4560_v49, %v8976_v41  ;;  %v8982_v32 = vld [vmem:[#allocation33_spill] sm:$0xff] }
 0x418   : > { %v4562_v14 = vpop.f32.mrf.mxu1  ;;  %v5101_v36 = vpop.f32.mrf.mxu0 }
 0x419   : > { %8975 = vst [vmem:[#allocation13_spill] sm:$0xff] %v8617_v6  ;;  %v8620_v45 = vadd.f32 %v5089_v57, %v4681_v35  ;;  %v4682_v37 = vadd.f32 %v4562_v14, %v8978_v44  ;;  %v8984_v57 = vld [vmem:[#allocation34_spill] sm:$0xff] }
 0x41a   : > { %v4566_v30 = vpop.f32.mrf.mxu1  ;;  %v5105_v60 = vpop.f32.mrf.mxu0 }
 0x41b   : > { %8977 = vst [vmem:[#allocation14_spill] sm:$0xff] %v8620_v45  ;;  %v8623_v58 = vadd.f32 %v5091_v13, %v4682_v37  ;;  %v4683_v40 = vadd.f32 %v4566_v30, %v8980_v9  ;;  %v8986_v13 = vld [vmem:[#allocation35_spill] sm:$0xff] }
 0x41c   : > { %v4568_v56 = vpop.f32.mrf.mxu1  ;;  %v5107_v61 = vpop.f32.mrf.mxu0 }
 0x41d   : > { %8979 = vst [vmem:[#allocation21_spill] sm:$0xff] %v8623_v58  ;;  %v8626_v42 = vadd.f32 %v5095_v17, %v4683_v40  ;;  %v4684_v8 = vadd.f32 %v4568_v56, %v8982_v32  ;;  %v8988_v17 = vld [vmem:[#allocation36_spill] sm:$0xff] }
 0x41e   : > { %v4570_v6 = vpop.f32.mrf.mxu1  ;;  %v5109_v49 = vpop.f32.mrf.mxu0 }
 0x41f   : > { %8981 = vst [vmem:[#allocation15_spill] sm:$0xff] %v8626_v42  ;;  %v8629_v41 = vadd.f32 %v5097_v55, %v4684_v8  ;;  %v4685_v35 = vadd.f32 %v4570_v6, %v8984_v57  ;;  %v8989_v55 = vld [vmem:[#allocation37_spill] sm:$0xff] }
 0x420   : > { %v4572_v45 = vpop.f32.mrf.mxu1  ;;  %v5111_v14 = vpop.f32.mrf.mxu0 }
 0x421   : > { %8983 = vst [vmem:[#allocation16_spill] sm:$0xff] %v8629_v41  ;;  %v8632_v44 = vadd.f32 %v5099_v53, %v4685_v35  ;;  %v4686_v37 = vadd.f32 %v4572_v45, %v8986_v13  ;;  %v8991_v53 = vld [vmem:[#allocation38_spill] sm:$0xff] }
 0x422   : > { %v4576_v58 = vpop.f32.mrf.mxu1  ;;  %v5115_v30 = vpop.f32.mrf.mxu0 }
 0x423   : > { %8985 = vst [vmem:[#allocation17_spill] sm:$0xff] %v8632_v44  ;;  %v8635_v9 = vadd.f32 %v5101_v36, %v4686_v37  ;;  %v4687_v40 = vadd.f32 %v4576_v58, %v8988_v17  ;;  %v8992_v36 = vld [vmem:[#allocation39_spill] sm:$0xff] }
 0x424   : > { %v4578_v42 = vpop.f32.mrf.mxu1  ;;  %v5117_v56 = vpop.f32.mrf.mxu0 }
 0x425   : > { %8987 = vst [vmem:[#allocation18_spill] sm:$0xff] %v8635_v9  ;;  %v8638_v32 = vadd.f32 %v5105_v60, %v4687_v40  ;;  %v4688_v8 = vadd.f32 %v4578_v42, %v8989_v55 }
 0x426   : > { %v4580_v41 = vpop.f32.mrf.mxu1  ;;  %v5119_v6 = vpop.f32.mrf.mxu0 }
 0x427   : > { %v8641_v57 = vadd.f32 %v5107_v61, %v4688_v8  ;;  %v4689_v35 = vadd.f32 %v4580_v41, %v8991_v53  ;;  %v8993_v61 = vld [vmem:[#allocation40_spill] sm:$0xff] }
 0x428   : > { %v4582_v44 = vpop.f32.mrf.mxu1  ;;  %v5121_v45 = vpop.f32.mrf.mxu0 }
 0x429   : > { %8990 = vst [vmem:[#allocation19_spill] sm:$0xff] %v8641_v57  ;;  %v8644_v13 = vadd.f32 %v5109_v49, %v4689_v35  ;;  %v4690_v37 = vadd.f32 %v4582_v44, %v8992_v36 }
 0x42a   : > { %v4586_v9 = vpop.f32.mrf.mxu1  ;;  %v5125_v58 = vpop.f32.mrf.mxu0 }
 0x42b   : > { %v8647_v17 = vadd.f32 %v5111_v14, %v4690_v37  ;;  %v4691_v60 = vadd.f32 %v4586_v9, %v8446_v7 }
 0x42c   : > { %v4588_v40 = vpop.f32.mrf.mxu1  ;;  %v5127_v42 = vpop.f32.mrf.mxu0 }
 0x42d   : > { %v8650_v55 = vadd.f32 %v5115_v30, %v4691_v60  ;;  %v4692_v8 = vadd.f32 %v4588_v40, %v8993_v61 }
 0x42e   : > { %v4590_v57 = vpop.f32.mrf.mxu1  ;;  %v5129_v41 = vpop.f32.mrf.mxu0 }
 0x42f   : > { %v8653_v53 = vadd.f32 %v5117_v56, %v4692_v8  ;;  %v4693_v49 = vadd.f32 %v4590_v57, %v8452_v51 }
 0x430   : > { %v4592_v35 = vpop.f32.mrf.mxu1  ;;  %v5131_v44 = vpop.f32.mrf.mxu0 }
 0x431   : > { %v8656_v36 = vadd.f32 %v5119_v6, %v4693_v49  ;;  %v4694_v14 = vadd.f32 %v4592_v35, %v8455_v3  ;;  %v8997_v6 = vld [vmem:[#allocation41_spill] sm:$0xff] }
 0x432   : > { %v4596_v37 = vpop.f32.mrf.mxu1  ;;  %v5135_v7 = vpop.f32.mrf.mxu0 }
 0x433   : > { %8994 = vst [vmem:[#allocation20_spill] sm:$0xff] %v8656_v36  ;;  %v8659_v9 = vadd.f32 %v5121_v45, %v4694_v14  ;;  %v4695_v30 = vadd.f32 %v4596_v37, %v8459_v21  ;;  %v8999_v45 = vld [vmem:[#allocation42_spill] sm:$0xff] }
 0x434   : > { %v4598_v60 = vpop.f32.mrf.mxu1  ;;  %v5137_v40 = vpop.f32.mrf.mxu0 }
 0x435   : > { %8995 = vst [vmem:[#allocation22_spill] sm:$0xff] %v8659_v9  ;;  %v8662_v61 = vadd.f32 %v5125_v58, %v4695_v30  ;;  %v4696_v56 = vadd.f32 %v4598_v60, %v8462_v48 }
 0x436   : > { %v4600_v8 = vpop.f32.mrf.mxu1  ;;  %v5139_v51 = vpop.f32.mrf.mxu0 }
 0x437   : > { %v8665_v57 = vadd.f32 %v5127_v42, %v4696_v56  ;;  %v4697_v49 = vadd.f32 %v4600_v8, %v8997_v6  ;;  %v9001_v42 = vld [vmem:[#allocation43_spill] sm:$0xff] }
 0x438   : > { %v4602_v36 = vpop.f32.mrf.mxu1  ;;  %v5141_v3 = vpop.f32.mrf.mxu0 }
 0x439   : > { %8996 = vst [vmem:[#allocation23_spill] sm:$0xff] %v8665_v57  ;;  %v8668_v35 = vadd.f32 %v5129_v41, %v4697_v49  ;;  %v4698_v14 = vadd.f32 %v4602_v36, %v8999_v45  ;;  %v9003_v41 = vld [vmem:[#allocation4_spill] sm:$0xff] }
 0x43a   : > { %v4606_v9 = vpop.f32.mrf.mxu1  ;;  %v5145_v21 = vpop.f32.mrf.mxu0 }
 0x43b   : > { %8998 = vst [vmem:[#allocation24_spill] sm:$0xff] %v8668_v35  ;;  %v8671_v37 = vadd.f32 %v5131_v44, %v4698_v14  ;;  %v4699_v58 = vadd.f32 %v4606_v9, %v8472_v33  ;;  %v9005_v44 = vld [vmem:[#allocation5_spill] sm:$0xff] }
 0x43c   : > { %v4608_v30 = vpop.f32.mrf.mxu1  ;;  %v5147_v48 = vpop.f32.mrf.mxu0 }
 0x43d   : > { %9000 = vst [vmem:[#allocation25_spill] sm:$0xff] %v8671_v37  ;;  %v8674_v60 = vadd.f32 %v5135_v7, %v4699_v58  ;;  %v4700_v56 = vadd.f32 %v4608_v30, %v9001_v42 }
 0x43e   : > { %v4610_v57 = vpop.f32.mrf.mxu1  ;;  %v5149_v8 = vpop.f32.mrf.mxu0 }
 0x43f   : > { %v8677_v6 = vadd.f32 %v5137_v40, %v4700_v56  ;;  %v4701_v49 = vadd.f32 %v4610_v57, %v9003_v41  ;;  %v9007_v40 = vld [vmem:[#allocation6_spill] sm:$0xff] }
 0x440   : > { %v4612_v35 = vpop.f32.mrf.mxu1  ;;  %v5151_v36 = vpop.f32.mrf.mxu0 }
 0x441   : > { %9002 = vst [vmem:[#allocation26_spill] sm:$0xff] %v8677_v6  ;;  %v8680_v45 = vadd.f32 %v5139_v51, %v4701_v49  ;;  %v4702_v14 = vadd.f32 %v4612_v35, %v9005_v44  ;;  %v9008_v51 = vld [vmem:[#allocation7_spill] sm:$0xff] }
 0x442   : > { %v4616_v37 = vpop.f32.mrf.mxu1  ;;  %v5155_v33 = vpop.f32.mrf.mxu0 }
 0x443   : > { %9004 = vst [vmem:[#allocation27_spill] sm:$0xff] %v8680_v45  ;;  %v8683_v9 = vadd.f32 %v5141_v3, %v4702_v14  ;;  %v4703_v7 = vadd.f32 %v4616_v37, %v8485_v59  ;;  %v9009_v3 = vld [vmem:[#allocation8_spill] sm:$0xff] }
 0x444   : > { %v4618_v58 = vpop.f32.mrf.mxu1  ;;  %v5157_v30 = vpop.f32.mrf.mxu0 }
 0x445   : > { %9006 = vst [vmem:[#allocation28_spill] sm:$0xff] %v8683_v9  ;;  %v8686_v42 = vadd.f32 %v5145_v21, %v4703_v7  ;;  %v4704_v56 = vadd.f32 %v4618_v58, %v9007_v40 }
 0x446   : > { %v4620_v6 = vpop.f32.mrf.mxu1  ;;  %v5159_v57 = vpop.f32.mrf.mxu0 }
 0x447   : > { %v8689_v41 = vadd.f32 %v5147_v48, %v4704_v56  ;;  %v4705_v49 = vadd.f32 %v4620_v6, %v9008_v51 }
 0x448   : > { %v4622_v45 = vpop.f32.mrf.mxu1  ;;  %v5161_v35 = vpop.f32.mrf.mxu0 }
 0x449   : > { %v8692_v44 = vadd.f32 %v5149_v8, %v4705_v49  ;;  %v4706_v14 = vadd.f32 %v4622_v45, %v9009_v3 }
 0x44a   : > { %v4626_v9 = vpop.f32.mrf.mxu1  ;;  %v5165_v59 = vpop.f32.mrf.mxu0 }
 0x44b   : > { %v8695_v37 = vadd.f32 %v5151_v36, %v4706_v14  ;;  %v4707_v21 = vadd.f32 %v4626_v9, %v8498_v24 }
 0x44c   : > { %v4628_v7 = vpop.f32.mrf.mxu1  ;;  %v5167_v58 = vpop.f32.mrf.mxu0 }
 0x44d   : > { %v8698_v40 = vadd.f32 %v5155_v33, %v4707_v21  ;;  %v4708_v48 = vadd.f32 %v4628_v7, %v8501_v19 }
 0x44e   : > { %v4630_v56 = vpop.f32.mrf.mxu1  ;;  %v5169_v6 = vpop.f32.mrf.mxu0 }
 0x44f   : > { %v8701_v51 = vadd.f32 %v5157_v30, %v4708_v48  ;;  %v4709_v8 = vadd.f32 %v4630_v56, %v8504_v4 }
 0x450   : > { %v4632_v49 = vpop.f32.mrf.mxu1  ;;  %v5171_v45 = vpop.f32.mrf.mxu0 }
 0x451   : > { %v8704_v3 = vadd.f32 %v5159_v57, %v4709_v8  ;;  %v4710_v36 = vadd.f32 %v4632_v49, %v8507_v16 }
 0x452   : > { %v4636_v14 = vpop.f32.mrf.mxu1  ;;  %v5175_v24 = vpop.f32.mrf.mxu0 }
 0x453   : > { %v8707_v9 = vadd.f32 %v5161_v35, %v4710_v36  ;;  %v4711_v33 = vadd.f32 %v4636_v14, %v8511_v26 }
 0x454   : > { %v4638_v21 = vpop.f32.mrf.mxu1  ;;  %v5177_v19 = vpop.f32.mrf.mxu0 }
 0x455   : > { %v8710_v7 = vadd.f32 %v5165_v59, %v4711_v33  ;;  %v4712_v30 = vadd.f32 %v4638_v21, %v8514_v18 }
 0x456   : > { %v4640_v48 = vpop.f32.mrf.mxu1  ;;  %v5179_v4 = vpop.f32.mrf.mxu0 }
 0x457   : > { %v8713_v56 = vadd.f32 %v5167_v58, %v4712_v30  ;;  %v4713_v57 = vadd.f32 %v4640_v48, %v8517_v63 }
 0x458   : > { %v4642_v8 = vpop.f32.mrf.mxu1  ;;  %v5181_v16 = vpop.f32.mrf.mxu0 }
 0x459   : > { %v8716_v49 = vadd.f32 %v5169_v6, %v4713_v57  ;;  %v4714_v35 = vadd.f32 %v4642_v8, %v8520_v23 }
 0x45a   : > { %v4646_v36 = vpop.f32.mrf.mxu1  ;;  %v5554_v26 = vpop.f32.mrf.mxu0 }
 0x45b   : > { %v8719_v14 = vadd.f32 %v5171_v45, %v4714_v35  ;;  %v4715_v59 = vadd.f32 %v4646_v36, %v8524_v46  ;;  %v5713_v63 = vadd.f32 %v5554_v26, %v8537_v1 }
 0x45c   : > { %v4648_v33 = vpop.f32.mrf.mxu1  ;;  %v5556_v18 = vpop.f32.mrf.mxu0 }
 0x45d   : > { %v8722_v21 = vadd.f32 %v5175_v24, %v4715_v59  ;;  %v4716_v58 = vadd.f32 %v4648_v33, %v8527_v47  ;;  %v5714_v30 = vadd.f32 %v5556_v18, %v8540_v38 }
 0x45e   : > { %v4650_v6 = vpop.f32.mrf.mxu1  ;;  %v5558_v48 = vpop.f32.mrf.mxu0 }
 0x45f   : > { %v8727_v57 = vadd.f32 %v5177_v19, %v4716_v58  ;;  %v4717_v23 = vadd.f32 %v4650_v6, %v8530_v50  ;;  %v5905_v45 = vmax.f32 %v5713_v63, %v5714_v30  ;;  %v5715_v36 = vadd.f32 %v5558_v48, %v8543_v43 }
 0x460   : > { %v4652_v8 = vpop.f32.mrf.mxu1  ;;  %v5560_v35 = vpop.f32.mrf.mxu0 }
 0x461   : > { %v8730_v46 = vadd.f32 %v5179_v4, %v4717_v23  ;;  %v4718_v24 = vadd.f32 %v4652_v8, %v8533_v27  ;;  %v5716_v47 = vadd.f32 %v5560_v35, %v8546_v12  ;;  %5937 = vxpose.xlu0.b32.start [1/16] (narrow) %v5905_v45, 8 }
 0x462   : > { %v5564_v1 = vpop.f32.mrf.mxu1 }
 0x463   : > { %v8735_v38 = vadd.f32 %v5181_v16, %v4718_v24  ;;  %v5906_v26 = vmax.f32 %v5715_v36, %v5716_v47  ;;  %v5717_v59 = vadd.f32 %v5564_v1, %v8550_v2 }
 0x464   : > { %v5566_v19 = vpop.f32.mrf.mxu1 }
 0x465   : > { %v5718_v50 = vadd.f32 %v5566_v19, %v8553_v25  ;;  %5938 = vxpose.xlu0.b32.cont [2/16] (narrow) %v5906_v26, 8  ;;  %v9010_v19 = vld [vmem:[#allocation9_spill] sm:$0xff] }
 0x466   : > { %v5568_v33 = vpop.f32.mrf.mxu1 }
 0x467   : > { %v5907_v4 = vmax.f32 %v5717_v59, %v5718_v50  ;;  %v5719_v27 = vadd.f32 %v5568_v33, %v8556_v39 }
 0x468   : > { %v5570_v18 = vpop.f32.mrf.mxu1 }
 0x469   : > { %v5720_v43 = vadd.f32 %v5570_v18, %v8559_v5  ;;  %5939 = vxpose.xlu0.b32.cont [3/16] (narrow) %v5907_v4, 8  ;;  %v9011_v4 = vld [vmem:[#allocation10_spill] sm:$0xff] }
 0x46a   : > { %v5574_v12 = vpop.f32.mrf.mxu1 }
 0x46b   : > { %v5908_v58 = vmax.f32 %v5719_v27, %v5720_v43  ;;  %v5721_v16 = vadd.f32 %v5574_v12, %v8563_v0 }
 0x46c   : > { %v5576_v63 = vpop.f32.mrf.mxu1 }
 0x46d   : > { %v5722_v30 = vadd.f32 %v5576_v63, %v8566_v28  ;;  %5940 = vxpose.xlu0.b32.cont [4/16] (narrow) %v5908_v58, 8 }
 0x46e   : > { %v5578_v2 = vpop.f32.mrf.mxu1 }
 0x46f   : > { %v5909_v6 = vmax.f32 %v5721_v16, %v5722_v30  ;;  %v5723_v48 = vadd.f32 %v5578_v2, %v8569_v22  ;;  %v9012_v30 = vld [vmem:[#allocation11_spill] sm:$0xff] }
 0x470   : > { %v5580_v25 = vpop.f32.mrf.mxu1 }
 0x471   : > { %v5724_v23 = vadd.f32 %v5580_v25, %v8572_v29  ;;  %5941 = vxpose.xlu0.b32.cont [5/16] (narrow) %v5909_v6, 8 }
 0x472   : > { %v5584_v39 = vpop.f32.mrf.mxu1 }
 0x473   : > { %v5910_v45 = vmax.f32 %v5723_v48, %v5724_v23  ;;  %v5725_v8 = vadd.f32 %v5584_v39, %v8576_v52  ;;  %v9013_v48 = vld [vmem:[#allocation12_spill] sm:$0xff]  ;;  %v9014_v39 = vld [vmem:[#allocation13_spill] sm:$0xff] }
 0x474   : > { %v5586_v5 = vpop.f32.mrf.mxu1 }
 0x475   : > { %v5726_v35 = vadd.f32 %v5586_v5, %v8579_v54  ;;  %5942 = vxpose.xlu0.b32.cont [6/16] (narrow) %v5910_v45, 8 }
 0x476   : > { %v5588_v0 = vpop.f32.mrf.mxu1 }
 0x477   : > { %v5911_v24 = vmax.f32 %v5725_v8, %v5726_v35  ;;  %v5727_v36 = vadd.f32 %v5588_v0, %v8582_v34  ;;  %v9015_v8 = vld [vmem:[#allocation14_spill] sm:$0xff]  ;;  %v9016_v0 = vld [vmem:[#allocation21_spill] sm:$0xff] }
 0x478   : > { %v5590_v28 = vpop.f32.mrf.mxu1 }
 0x479   : > { %v5728_v47 = vadd.f32 %v5590_v28, %v8585_v20  ;;  %5943 = vxpose.xlu0.b32.cont [7/16] (narrow) %v5911_v24, 8 }
 0x47a   : > { %v5594_v22 = vpop.f32.mrf.mxu1 }
 0x47b   : > { %v5912_v1 = vmax.f32 %v5727_v36, %v5728_v47  ;;  %v5729_v26 = vadd.f32 %v5594_v22, %v8589_v10  ;;  %v9017_v47 = vld [vmem:[#allocation15_spill] sm:$0xff] }
 0x47c   : > { %v5596_v29 = vpop.f32.mrf.mxu1 }
 0x47d   : > { %v5730_v59 = vadd.f32 %v5596_v29, %v9010_v19  ;;  %5944 = vxpose.xlu0.b32.cont [8/16] (narrow) %v5912_v1, 8  ;;  %v9018_v1 = vld [vmem:[#allocation16_spill] sm:$0xff] }
 0x47e   : > { %v5598_v52 = vpop.f32.mrf.mxu1 }
 0x47f   : > { %v5913_v50 = vmax.f32 %v5729_v26, %v5730_v59  ;;  %v5731_v33 = vadd.f32 %v5598_v52, %v8595_v62  ;;  %v9019_v52 = vld [vmem:[#allocation17_spill] sm:$0xff] }
 0x480   : > { %v5600_v54 = vpop.f32.mrf.mxu1 }
 0x481   : > { %v5732_v18 = vadd.f32 %v5600_v54, %v9011_v4  ;;  %5945 = vxpose.xlu0.b32.cont [9/16] (narrow) %v5913_v50, 8  ;;  %v9020_v54 = vld [vmem:[#allocation18_spill] sm:$0xff] }
 0x482   : > { %v5604_v34 = vpop.f32.mrf.mxu1 }
 0x483   : > { %v5914_v27 = vmax.f32 %v5731_v33, %v5732_v18  ;;  %v5733_v43 = vadd.f32 %v5604_v34, %v8602_v31 }
 0x484   : > { %v5606_v20 = vpop.f32.mrf.mxu1 }
 0x485   : > { %v5734_v12 = vadd.f32 %v5606_v20, %v8605_v11  ;;  %5946 = vxpose.xlu0.b32.cont [10/16] (narrow) %v5914_v27, 8  ;;  %v9021_v20 = vld [vmem:[#allocation19_spill] sm:$0xff] }
 0x486   : > { %v5608_v10 = vpop.f32.mrf.mxu1 }
 0x487   : > { %v5915_v58 = vmax.f32 %v5733_v43, %v5734_v12  ;;  %v5735_v16 = vadd.f32 %v5608_v10, %v8608_v15 }
 0x488   : > { %v5610_v63 = vpop.f32.mrf.mxu1 }
 0x489   : > { %v5736_v2 = vadd.f32 %v5610_v63, %v9012_v30  ;;  %5947 = vxpose.xlu0.b32.cont [11/16] (narrow) %v5915_v58, 8 }
 0x48a   : > { %v5614_v62 = vpop.f32.mrf.mxu1 }
 0x48b   : > { %v5916_v6 = vmax.f32 %v5735_v16, %v5736_v2  ;;  %v5737_v23 = vadd.f32 %v5614_v62, %v9013_v48 }
 0x48c   : > { %v5616_v25 = vpop.f32.mrf.mxu1 }
 0x48d   : > { %v5738_v45 = vadd.f32 %v5616_v25, %v9014_v39  ;;  %5948 = vxpose.xlu0.b32.cont [12/16] (narrow) %v5916_v6, 8  ;;  %v9022_v39 = vld [vmem:[#allocation20_spill] sm:$0xff] }
 0x48e   : > { %v5618_v31 = vpop.f32.mrf.mxu1 }
 0x48f   : > { %v5917_v5 = vmax.f32 %v5737_v23, %v5738_v45  ;;  %v5739_v35 = vadd.f32 %v5618_v31, %v9015_v8  ;;  %v9023_v31 = vld [vmem:[#allocation22_spill] sm:$0xff] }
 0x490   : > { %v5620_v11 = vpop.f32.mrf.mxu1 }
 0x491   : > { %v5740_v24 = vadd.f32 %v5620_v11, %v9016_v0  ;;  %5949 = vxpose.xlu0.b32.cont [13/16] (narrow) %v5917_v5, 8 }
 0x492   : > { %v5624_v15 = vpop.f32.mrf.mxu1 }
 0x493   : > { %v5918_v28 = vmax.f32 %v5739_v35, %v5740_v24  ;;  %v5741_v22 = vadd.f32 %v5624_v15, %v9017_v47  ;;  %v9024_v35 = vld [vmem:[#allocation23_spill] sm:$0xff]  ;;  %v9025_v15 = vld [vmem:[#allocation24_spill] sm:$0xff] }
 0x494   : > { %v5626_v36 = vpop.f32.mrf.mxu1 }
 0x495   : > { %v5742_v29 = vadd.f32 %v5626_v36, %v9018_v1  ;;  %5950 = vxpose.xlu0.b32.cont [14/16] (narrow) %v5918_v28, 8  ;;  %v9026_v36 = vld [vmem:[#allocation25_spill] sm:$0xff] }
 0x496   : > { %v5628_v26 = vpop.f32.mrf.mxu1 }
 0x497   : > { %v5919_v19 = vmax.f32 %v5741_v22, %v5742_v29  ;;  %v5743_v50 = vadd.f32 %v5628_v26, %v9019_v52 }
 0x498   : > { %v5630_v59 = vpop.f32.mrf.mxu1 }
 0x499   : > { %v5744_v33 = vadd.f32 %v5630_v59, %v9020_v54  ;;  %5951 = vxpose.xlu0.b32.cont [15/16] (narrow) %v5919_v19, 8  ;;  %v9027_v19 = vld [vmem:[#allocation26_spill] sm:$0xff]  ;;  %v9028_v54 = vld [vmem:[#allocation27_spill] sm:$0xff] }
 0x49a   : > { %v5634_v4 = vpop.f32.mrf.mxu1 }
 0x49b   : > { %v5920_v18 = vmax.f32 %v5743_v50, %v5744_v33  ;;  %v5745_v27 = vadd.f32 %v5634_v4, %v8638_v32  ;;  %v9029_v4 = vld [vmem:[#allocation28_spill] sm:$0xff] }
 0x49c   : > { %v5636_v34 = vpop.f32.mrf.mxu1 }
 0x49d   : > { %v5746_v43 = vadd.f32 %v5636_v34, %v9021_v20  ;;  %5952 = vxpose.xlu0.b32.end [16/16] (narrow) %v5920_v18, 8 }
 0x49e   : > { %v5638_v12 = vpop.f32.mrf.mxu1 }
 0x49f   : > { %v5921_v10 = vmax.f32 %v5745_v27, %v5746_v43  ;;  %v5747_v63 = vadd.f32 %v5638_v12, %v8644_v13 }
 0x4a0   : > { %v5640_v58 = vpop.f32.mrf.mxu1 }
 0x4a1   : > { %v5748_v16 = vadd.f32 %v5640_v58, %v8647_v17  ;;  %5969 = vxpose.xlu1.b32.start [1/16] (narrow) %v5921_v10, 8 }
 0x4a2   : > { %v5644_v30 = vpop.f32.mrf.mxu1 }
 0x4a3   : > { %v5922_v2 = vmax.f32 %v5747_v63, %v5748_v16  ;;  %v5749_v6 = vadd.f32 %v5644_v30, %v8650_v55 }
 0x4a4   : > { %v5646_v62 = vpop.f32.mrf.mxu1 }
 0x4a5   : > { %v5750_v25 = vadd.f32 %v5646_v62, %v8653_v53  ;;  %5970 = vxpose.xlu1.b32.cont [2/16] (narrow) %v5922_v2, 8 }
 0x4a6   : > { %v5648_v32 = vpop.f32.mrf.mxu1 }
 0x4a7   : > { %v5923_v48 = vmax.f32 %v5749_v6, %v5750_v25  ;;  %v5751_v45 = vadd.f32 %v5648_v32, %v9022_v39 }
 0x4a8   : > { %v5650_v23 = vpop.f32.mrf.mxu1 }
 0x4a9   : > { %v5752_v5 = vadd.f32 %v5650_v23, %v9023_v31  ;;  %5971 = vxpose.xlu1.b32.cont [3/16] (narrow) %v5923_v48, 8 }
 0x4aa   : > { %v5654_v13 = vpop.f32.mrf.mxu1 }
 0x4ab   : > { %v5924_v11 = vmax.f32 %v5751_v45, %v5752_v5  ;;  %v5753_v8 = vadd.f32 %v5654_v13, %v8662_v61 }
 0x4ac   : > { %v5656_v17 = vpop.f32.mrf.mxu1 }
 0x4ad   : > { %v5754_v0 = vadd.f32 %v5656_v17, %v9024_v35  ;;  %5972 = vxpose.xlu1.b32.cont [4/16] (narrow) %v5924_v11, 8 }
 0x4ae   : > { %v5658_v55 = vpop.f32.mrf.mxu1 }
 0x4af   : > { %v5925_v24 = vmax.f32 %v5753_v8, %v5754_v0  ;;  %v5755_v28 = vadd.f32 %v5658_v55, %v9025_v15 }
 0x4b0   : > { %v5660_v53 = vpop.f32.mrf.mxu1 }
 0x4b1   : > { %v5756_v47 = vadd.f32 %v5660_v53, %v9026_v36  ;;  %5973 = vxpose.xlu1.b32.cont [5/16] (narrow) %v5925_v24, 8 }
 0x4b2   : > { %v5664_v22 = vpop.f32.mrf.mxu1 }
 0x4b3   : > { %v5926_v1 = vmax.f32 %v5755_v28, %v5756_v47  ;;  %v5757_v26 = vadd.f32 %v5664_v22, %v8674_v60 }
 0x4b4   : > { %v5666_v29 = vpop.f32.mrf.mxu1 }
 0x4b5   : > { %v5758_v59 = vadd.f32 %v5666_v29, %v9027_v19  ;;  %5974 = vxpose.xlu1.b32.cont [6/16] (narrow) %v5926_v1, 8 }
 0x4b6   : > { %v5668_v61 = vpop.f32.mrf.mxu1 }
 0x4b7   : > { %v5927_v52 = vmax.f32 %v5757_v26, %v5758_v59  ;;  %v5759_v33 = vadd.f32 %v5668_v61, %v9028_v54 }
 0x4b8   : > { %v5670_v50 = vpop.f32.mrf.mxu1 }
 0x4b9   : > { %v5760_v18 = vadd.f32 %v5670_v50, %v9029_v4  ;;  %5975 = vxpose.xlu1.b32.cont [7/16] (narrow) %v5927_v52, 8 }
 0x4ba   : > { %v5674_v34 = vpop.f32.mrf.mxu1 }
 0x4bb   : > { %v5928_v27 = vmax.f32 %v5759_v33, %v5760_v18  ;;  %v5761_v43 = vadd.f32 %v5674_v34, %v8686_v42 }
 0x4bc   : > { %v5676_v20 = vpop.f32.mrf.mxu1 }
 0x4bd   : > { %v5762_v12 = vadd.f32 %v5676_v20, %v8689_v41  ;;  %5976 = vxpose.xlu1.b32.cont [8/16] (narrow) %v5928_v27, 8 }
 0x4be   : > { %v5678_v60 = vpop.f32.mrf.mxu1 }
 0x4bf   : > { %v5929_v10 = vmax.f32 %v5761_v43, %v5762_v12  ;;  %v5763_v63 = vadd.f32 %v5678_v60, %v8692_v44 }
 0x4c0   : > { %v5680_v58 = vpop.f32.mrf.mxu1 }
 0x4c1   : > { %v5764_v16 = vadd.f32 %v5680_v58, %v8695_v37  ;;  %5977 = vxpose.xlu1.b32.cont [9/16] (narrow) %v5929_v10, 8 }
 0x4c2   : > { %v5684_v30 = vpop.f32.mrf.mxu1 }
 0x4c3   : > { %v5930_v2 = vmax.f32 %v5763_v63, %v5764_v16  ;;  %v5765_v6 = vadd.f32 %v5684_v30, %v8698_v40 }
 0x4c4   : > { %v5686_v62 = vpop.f32.mrf.mxu1 }
 0x4c5   : > { %v5766_v25 = vadd.f32 %v5686_v62, %v8701_v51  ;;  %5978 = vxpose.xlu1.b32.cont [10/16] (narrow) %v5930_v2, 8 }
 0x4c6   : > { %v5688_v42 = vpop.f32.mrf.mxu1 }
 0x4c7   : > { %v5931_v32 = vmax.f32 %v5765_v6, %v5766_v25  ;;  %v5767_v48 = vadd.f32 %v5688_v42, %v8704_v3 }
 0x4c8   : > { %v5690_v41 = vpop.f32.mrf.mxu1 }
 0x4c9   : > { %v5768_v23 = vadd.f32 %v5690_v41, %v8707_v9  ;;  %5979 = vxpose.xlu1.b32.cont [11/16] (narrow) %v5931_v32, 8 }
 0x4ca   : > { %v5694_v44 = vpop.f32.mrf.mxu1 }
 0x4cb   : > { %v5932_v39 = vmax.f32 %v5767_v48, %v5768_v23  ;;  %v5769_v45 = vadd.f32 %v5694_v44, %v8710_v7 }
 0x4cc   : > { %v5696_v37 = vpop.f32.mrf.mxu1 }
 0x4cd   : > { %v5770_v31 = vadd.f32 %v5696_v37, %v8713_v56  ;;  %5980 = vxpose.xlu1.b32.cont [12/16] (narrow) %v5932_v39, 8 }
 0x4ce   : > { %v5698_v40 = vpop.f32.mrf.mxu1 }
 0x4cf   : > { %v5933_v51 = vmax.f32 %v5769_v45, %v5770_v31  ;;  %v5771_v13 = vadd.f32 %v5698_v40, %v8716_v49 }
 0x4d0   : > { %v5700_v5 = vpop.f32.mrf.mxu1 }
 0x4d1   : > { %v5772_v11 = vadd.f32 %v5700_v5, %v8719_v14  ;;  %5981 = vxpose.xlu1.b32.cont [13/16] (narrow) %v5933_v51, 8 }
 0x4d2   : > { %v5704_v3 = vpop.f32.mrf.mxu1 }
 0x4d3   : > { %v5934_v9 = vmax.f32 %v5771_v13, %v5772_v11  ;;  %v5773_v8 = vadd.f32 %v5704_v3, %v8722_v21 }
 0x4d4   : > { %v5706_v17 = vpop.f32.mrf.mxu1 }
 0x4d5   : > { %v5774_v35 = vadd.f32 %v5706_v17, %v8727_v57  ;;  %5982 = vxpose.xlu1.b32.cont [14/16] (narrow) %v5934_v9, 8 }
 0x4d6   : > { %v5708_v7 = vpop.f32.mrf.mxu1 }
 0x4d7   : > { %v5935_v56 = vmax.f32 %v5773_v8, %v5774_v35  ;;  %v5775_v55 = vadd.f32 %v5708_v7, %v8730_v46 }
 0x4d8   : > { %v5710_v0 = vpop.f32.mrf.mxu1 }
 0x4d9   : > { %v5776_v24 = vadd.f32 %v5710_v0, %v8735_v38  ;;  %5983 = vxpose.xlu1.b32.cont [15/16] (narrow) %v5935_v56, 8 }
 0x4db   : > { %v5936_v49 = vmax.f32 %v5775_v55, %v5776_v24 }
 0x4dd   : > { %5984 = vxpose.xlu1.b32.end [16/16] (narrow) %v5936_v49, 8  ;;  %v5953_v14 = vpop.trf.xlu0 }
 0x4de   : > { %6001 = vst [vmem:[%s246_s12] sm:$0xff] %v5953_v14 }
 0x51d   : > { %v5985_v21 = vpop.trf.xlu1 }
 0x51e   : > { %6002 = vst [vmem:[%s246_s12 + $0x8] sm:$0xff] %v5985_v21 }
 0x51f PF: > { %s15_s20 = sadd.s32 1, %s6776_s20   ;;  %s9030_s18 = smov %s6772_s19 }
 0x520   : > { %p12_p5 = scmp.ge.s32.totalorder %s15_s20, 4   ;;  %s9031_s19 = smov %s9033_s21 }
 0x522   :  { %14 = sbr.rel (!%p12_p5) target bundleno = 2 (0x2), region = 78 }

</bundles_post_ra>
